<compile_context>
chip_gen: v5e
topology: v5e:2x2
jax: 0.10.0
libtpu: 0.0.40
codegen_flags: <defaults>
</compile_context>

<pallas_src>
import jax
import jax.numpy as jnp
from jax.experimental import pallas as pl
from jax.experimental.pallas import tpu as pltpu

# ----------------------------- static geometry -----------------------------
L_IN, C_IN = 20, 6
L1, L2 = 18, 16          # after conv1 (k=3), conv2 (k=3)
LP = 5                   # after MaxPool1d(3)
L3, L4 = 4, 3            # after conv3 (k=2), conv4 (k=2)
C1 = 100                 # conv1/conv2 logical output channels
C1P = 128                # padded to a full lane group (lane-aligned im2col)
C2 = 160                 # conv3/conv4 output channels
F1 = 32                  # fc1 width
OUT_PAD = 128            # lane-dense logit slab; logit lives in lane 0
B_TILE = 8               # samples folded into matmul rows per grid step


def wrench_kernel(x_ref, w1_ref, b1_ref, w2_ref, b2_ref, w3_ref, b3_ref,
                  w4_ref, b4_ref, fw1_ref, fb1_ref, fw2_ref, fb2_ref,
                  o_ref, h2_scr):
    """Forward pass for one B_TILE batch tile; everything lives in VMEM."""
    bf16, f32 = jnp.bfloat16, jnp.float32

    def mm(lhs_bf16, w_ref, b_ref):
        # One MXU push: bf16 operands, f32 accumulation, bias folded in.
        return jnp.dot(lhs_bf16, w_ref[...], preferred_element_type=f32) + b_ref[...]

    def relu(v):
        return jnp.maximum(v, 0.0)

    def im2col(h, base, K, l_out):
        # K shifted row-windows concatenated along channels (k-major), matching the
        # host-side (K, C_in, C_out) -> (K*C_in, C_out) weight flattening.
        return jnp.concatenate(
            [h[base + k: base + k + l_out, :] for k in range(K)], axis=1)

    # ---- conv1 + ReLU: (B*18, 18) @ (18, 128) ----
    x = x_ref[...].astype(bf16)                                    # (B_TILE, 20, 6)
    lhs1 = jnp.concatenate([im2col(x[b], 0, 3, L1) for b in range(B_TILE)], axis=0)
    h1 = relu(mm(lhs1, w1_ref, b1_ref)).astype(bf16)               # (B*18, 128) bf16

    # ---- conv2 + ReLU: (B*16, 384) @ (384, 128), tap offsets lane-aligned ----
    lhs2 = jnp.concatenate([im2col(h1, b * L1, 3, L2) for b in range(B_TILE)], axis=0)
    h2 = relu(mm(lhs2, w2_ref, b2_ref))                            # (B*16, 128) f32

    # ---- MaxPool1d(3): strided sublane reads + VPU max (f32, exact) ----
    h2_scr[...] = h2

    def pool_and_im2col(b):
        base = b * L2                                              # multiple of 8
        a0 = h2_scr[pl.ds(base + 0, LP, stride=3), :]              # rows 0,3,6,9,12
        a1 = h2_scr[pl.ds(base + 1, LP, stride=3), :]
        a2 = h2_scr[pl.ds(base + 2, LP, stride=3), :]
        p = jnp.maximum(jnp.maximum(a0, a1), a2).astype(bf16)      # (5, 128) bf16
        return im2col(p, 0, 2, L3)                                 # (4, 256) lane-aligned

    # ---- conv3 + ReLU: (B*4, 256) @ (256, 160) ----
    lhs3 = jnp.concatenate([pool_and_im2col(b) for b in range(B_TILE)], axis=0)
    h3 = relu(mm(lhs3, w3_ref, b3_ref)).astype(bf16)               # (B*4, 160) bf16

    # ---- conv4 + ReLU: two per-tap dots (no lane concat at offset 160) ----
    t0 = jnp.concatenate([h3[b * L3 + 0: b * L3 + 0 + L4, :] for b in range(B_TILE)], axis=0)
    t1 = jnp.concatenate([h3[b * L3 + 1: b * L3 + 1 + L4, :] for b in range(B_TILE)], axis=0)
    h4 = relu(jnp.dot(t0, w4_ref[0], preferred_element_type=f32)
              + jnp.dot(t1, w4_ref[1], preferred_element_type=f32)
              + b4_ref[...])                                       # (B*3, 160) f32

    # ---- AvgPool1d(3): contiguous rows + VPU adds -> (B, 160) ----
    g = jnp.concatenate(
        [(h4[3 * b: 3 * b + 1, :] + h4[3 * b + 1: 3 * b + 2, :]
          + h4[3 * b + 2: 3 * b + 3, :]) for b in range(B_TILE)],
        axis=0) * (1.0 / 3.0)
    g = g.astype(bf16)                                             # (B, 160)

    # ---- MLP head (Dropout layers are identity at inference) ----
    f = relu(mm(g, fw1_ref, fb1_ref)).astype(bf16)                 # (B, 32)
    # Lane-dense output: fc2 columns 1..127 are zero-padded, so the slab is a
    # full (8, 128) vreg store with the logit in lane 0.
    o_ref[...] = mm(f, fw2_ref, fb2_ref).astype(o_ref.dtype)       # (B, 128)


def _resident_spec(a):
    """Full-array block with a constant index map -> stays VMEM-resident across steps."""
    if a.ndim == 3:
        return pl.BlockSpec(a.shape, lambda i: (0, 0, 0))
    return pl.BlockSpec(a.shape, lambda i: (0, 0))


def wrenchnet_forward(x, kernel_params):
    """x: (NB, 20, 6) channels-last f32 (PyTorch NCL (NB, 6, 20) transposed)."""
    nb = x.shape[0]
    nb_pad = ((nb + B_TILE - 1) // B_TILE) * B_TILE
    if nb_pad != nb:
        x = jnp.pad(x, ((0, nb_pad - nb), (0, 0), (0, 0)))
    grid = (nb_pad // B_TILE,)

    in_specs = [pl.BlockSpec((B_TILE, L_IN, C_IN), lambda i: (i, 0, 0))]
    in_specs += [_resident_spec(p) for p in kernel_params]
    out_specs = pl.BlockSpec((B_TILE, OUT_PAD), lambda i: (i, 0))

    out = pl.pallas_call(
        wrench_kernel,
        out_shape=jax.ShapeDtypeStruct((nb_pad, OUT_PAD), jnp.float32),
        grid=grid,
        in_specs=in_specs,
        out_specs=out_specs,
        scratch_shapes=[pltpu.VMEM((B_TILE * L2, C1P), jnp.float32)],
        compiler_params=pltpu.CompilerParams(
            dimension_semantics=("parallel",)),   # shards batch tiles across v7x TCs
    )(x, *kernel_params)
    return out[:nb, :1]                            # keep only the real logit lane


def init_params(key):
    """Deterministic synthetic parameters (PyTorch-style uniform fan-in init).

    Conv weights stored as (K, C_in, C_out); biases as (1, C_out); fc as (in, out)."""
    ks = jax.random.split(key, 12)

    def u(k, shape, fan_in):
        bound = 1.0 / jnp.sqrt(float(fan_in))
        return jax.random.uniform(k, shape, jnp.float32, -bound, bound)

    w1 = u(ks[0], (3, C_IN, C1), C_IN * 3);   b1 = u(ks[1], (1, C1), C_IN * 3)
    w2 = u(ks[2], (3, C1, C1), C1 * 3);       b2 = u(ks[3], (1, C1), C1 * 3)
    w3 = u(ks[4], (2, C1, C2), C1 * 2);       b3 = u(ks[5], (1, C2), C1 * 2)
    w4 = u(ks[6], (2, C2, C2), C2 * 2);       b4 = u(ks[7], (1, C2), C2 * 2)
    fw1 = u(ks[8], (C2, F1), C2);             fb1 = u(ks[9], (1, F1), C2)
    fw2 = u(ks[10], (F1, 1), F1);             fb2 = u(ks[11], (1, 1), F1)
    return (w1, b1, w2, b2, w3, b3, w4, b4, fw1, fb1, fw2, fb2)


def prepare_params(params):
    """Host-side layout plumbing: zero-pad conv1/2 channels 100->128, flatten conv
    taps to (K*C_in, C_out), pad fc2 output to 128 lanes, cast matmul weights to
    bf16 (MXU-native); biases stay f32 (accumulator dtype).  Padded rows/cols are
    zero so they contribute exactly 0 through ReLU and every later layer."""
    w1, b1, w2, b2, w3, b3, w4, b4, fw1, fb1, fw2, fb2 = params
    bf16 = jnp.bfloat16

    def pad_last(a, n):
        return jnp.pad(a, [(0, 0)] * (a.ndim - 1) + [(0, n - a.shape[-1])])

    w1p = pad_last(w1, C1P).reshape(-1, C1P).astype(bf16)                       # (18, 128)
    b1p = pad_last(b1, C1P)
    w2p = pad_last(jnp.pad(w2, ((0, 0), (0, C1P - C1), (0, 0))), C1P)
    w2p = w2p.reshape(-1, C1P).astype(bf16)                                     # (384, 128)
    b2p = pad_last(b2, C1P)
    w3p = jnp.pad(w3, ((0, 0), (0, C1P - C1), (0, 0))).reshape(-1, C2).astype(bf16)  # (256, 160)
    w4p = w4.astype(bf16)                                                       # (2, 160, 160)
    fw1p = fw1.astype(bf16)
    fw2p = pad_last(fw2, OUT_PAD).astype(bf16)                                  # (32, 128)
    fb2p = pad_last(fb2, OUT_PAD)
    return (w1p, b1p, w2p, b2p, w3p, b3, w4p, b4, fw1p, fb1, fw2p, fb2p)


def ref_forward(x, params, bf16=True):
    """Pure-JAX reference (per-tap convs). bf16=True mirrors the kernel's MXU
    precision (bf16 operands, f32 accumulation); bf16=False is full f32."""
    w1, b1, w2, b2, w3, b3, w4, b4, fw1, fb1, fw2, fb2 = params
    cast = (lambda a: a.astype(jnp.bfloat16)) if bf16 else (lambda a: a)

    def dot(a, w):
        return jnp.dot(cast(a), cast(w), preferred_element_type=jnp.float32)

    def conv(h, w, b):
        K = w.shape[0]
        l_out = h.shape[0] - K + 1
        acc = b.astype(jnp.float32)
        for k in range(K):
            acc = acc + dot(h[k:k + l_out], w[k])
        return jax.nn.relu(acc)

    ys = []
    for i in range(x.shape[0]):
        h = x[i]                                                    # (20, 6)
        h = conv(h, w1, b1)                                         # (18, 100)
        h = conv(h, w2, b2)                                         # (16, 100)
        h = jnp.stack([h[3 * t: 3 * t + 3].max(axis=0) for t in range(LP)], axis=0)
        h = conv(h, w3, b3)                                         # (4, 160)
        h = conv(h, w4, b4)                                         # (3, 160)
        g = h.mean(axis=0, keepdims=True)                           # (1, 160)
        f = jax.nn.relu(dot(g, fw1) + fb1)
        ys.append((dot(f, fw2) + fb2)[0])
    return jnp.stack(ys, axis=0)                                    # (NB, 1)


if __name__ == "__main__":
    key = jax.random.PRNGKey(0)
    pkey, xkey = jax.random.split(key)
    params = init_params(pkey)

    NB = 16                                                         # 2 grid steps of 8
    x_ncl = jax.random.normal(xkey, (NB, C_IN, L_IN), jnp.float32)  # PyTorch (B, 6, 20)
    x_cl = jnp.transpose(x_ncl, (0, 2, 1))                          # (B, 20, 6)

    y = wrenchnet_forward(x_cl, prepare_params(params))
    y = jax.block_until_ready(y)
    assert y.shape == (NB, 1), y.shape

    # Reference at the same MXU precision (bf16 operands, f32 accumulation).
    y_bf16 = ref_forward(x_cl, params, bf16=True)
    assert jnp.allclose(y, y_bf16, rtol=2e-2, atol=2e-2), (y, y_bf16)
    # Loose sanity check against the full-f32 reference (bf16 operand rounding only).
    y_f32 = ref_forward(x_cl, params, bf16=False)
    assert jnp.allclose(y, y_f32, rtol=1e-1, atol=1e-1), (y, y_f32)
    print("KERNEL_OK")
</pallas_src>

<mosaic_0001>
module attributes {stable_mosaic.version = 11 : i64} {
  func.func @wrench_kernel(%arg0: i32, %arg1: memref<8x20x6xf32, #tpu.memory_space<vmem>>, %arg2: memref<18x128xbf16, #tpu.memory_space<vmem>>, %arg3: memref<1x128xf32, #tpu.memory_space<vmem>>, %arg4: memref<384x128xbf16, #tpu.memory_space<vmem>>, %arg5: memref<1x128xf32, #tpu.memory_space<vmem>>, %arg6: memref<256x160xbf16, #tpu.memory_space<vmem>>, %arg7: memref<1x160xf32, #tpu.memory_space<vmem>>, %arg8: memref<2x160x160xbf16, #tpu.memory_space<vmem>>, %arg9: memref<1x160xf32, #tpu.memory_space<vmem>>, %arg10: memref<160x32xbf16, #tpu.memory_space<vmem>>, %arg11: memref<1x32xf32, #tpu.memory_space<vmem>>, %arg12: memref<32x128xbf16, #tpu.memory_space<vmem>>, %arg13: memref<1x128xf32, #tpu.memory_space<vmem>>, %arg14: memref<8x128xf32, #tpu.memory_space<vmem>>, %arg15: memref<128x128xf32, #tpu.memory_space<vmem>>) attributes {dimension_semantics = [#tpu.dimension_semantics<parallel>], iteration_bounds = array<i64: 2>, scalar_prefetch = 0 : i64, scratch_operands = 1 : i64, tpu.core_type = #tpu.core_type<tc>, window_params = [{transform_indices = @transform_0, window_bounds = array<i64: 8, 20, 6>}, {pipeline_mode = #tpu.pipeline_mode<synchronous>, transform_indices = @transform_1, window_bounds = array<i64: 18, 128>}, {pipeline_mode = #tpu.pipeline_mode<synchronous>, transform_indices = @transform_2, window_bounds = array<i64: 1, 128>}, {pipeline_mode = #tpu.pipeline_mode<synchronous>, transform_indices = @transform_3, window_bounds = array<i64: 384, 128>}, {pipeline_mode = #tpu.pipeline_mode<synchronous>, transform_indices = @transform_4, window_bounds = array<i64: 1, 128>}, {pipeline_mode = #tpu.pipeline_mode<synchronous>, transform_indices = @transform_5, window_bounds = array<i64: 256, 160>}, {pipeline_mode = #tpu.pipeline_mode<synchronous>, transform_indices = @transform_6, window_bounds = array<i64: 1, 160>}, {pipeline_mode = #tpu.pipeline_mode<synchronous>, transform_indices = @transform_7, window_bounds = array<i64: 2, 160, 160>}, {pipeline_mode = #tpu.pipeline_mode<synchronous>, transform_indices = @transform_8, window_bounds = array<i64: 1, 160>}, {pipeline_mode = #tpu.pipeline_mode<synchronous>, transform_indices = @transform_9, window_bounds = array<i64: 160, 32>}, {pipeline_mode = #tpu.pipeline_mode<synchronous>, transform_indices = @transform_10, window_bounds = array<i64: 1, 32>}, {pipeline_mode = #tpu.pipeline_mode<synchronous>, transform_indices = @transform_11, window_bounds = array<i64: 32, 128>}, {pipeline_mode = #tpu.pipeline_mode<synchronous>, transform_indices = @transform_12, window_bounds = array<i64: 1, 128>}, {transform_indices = @transform_13, window_bounds = array<i64: 8, 128>}]} {
    %c0 = arith.constant 0 : index
    %c0_0 = arith.constant 0 : index
    %c0_1 = arith.constant 0 : index
    %0 = vector.load %arg1[%c0, %c0_0, %c0_1] : memref<8x20x6xf32, #tpu.memory_space<vmem>>, vector<8x20x6xf32>
    %1 = arith.truncf %0 : vector<8x20x6xf32> to vector<8x20x6xbf16>
    %2 = vector.extract_strided_slice %1 {offsets = [0, 0, 0], sizes = [1, 20, 6], strides = [1, 1, 1]} : vector<8x20x6xbf16> to vector<1x20x6xbf16>
    %3 = vector.shape_cast %2 : vector<1x20x6xbf16> to vector<20x6xbf16>
    %4 = vector.extract_strided_slice %3 {offsets = [0, 0], sizes = [18, 6], strides = [1, 1]} : vector<20x6xbf16> to vector<18x6xbf16>
    %5 = vector.extract_strided_slice %3 {offsets = [1, 0], sizes = [18, 6], strides = [1, 1]} : vector<20x6xbf16> to vector<18x6xbf16>
    %6 = vector.extract_strided_slice %3 {offsets = [2, 0], sizes = [18, 6], strides = [1, 1]} : vector<20x6xbf16> to vector<18x6xbf16>
    %7 = tpu.concatenate %4, %5, %6 in 1 : vector<18x6xbf16>, vector<18x6xbf16>, vector<18x6xbf16> -> vector<18x18xbf16>
    %8 = vector.extract_strided_slice %1 {offsets = [1, 0, 0], sizes = [1, 20, 6], strides = [1, 1, 1]} : vector<8x20x6xbf16> to vector<1x20x6xbf16>
    %9 = vector.shape_cast %8 : vector<1x20x6xbf16> to vector<20x6xbf16>
    %10 = vector.extract_strided_slice %9 {offsets = [0, 0], sizes = [18, 6], strides = [1, 1]} : vector<20x6xbf16> to vector<18x6xbf16>
    %11 = vector.extract_strided_slice %9 {offsets = [1, 0], sizes = [18, 6], strides = [1, 1]} : vector<20x6xbf16> to vector<18x6xbf16>
    %12 = vector.extract_strided_slice %9 {offsets = [2, 0], sizes = [18, 6], strides = [1, 1]} : vector<20x6xbf16> to vector<18x6xbf16>
    %13 = tpu.concatenate %10, %11, %12 in 1 : vector<18x6xbf16>, vector<18x6xbf16>, vector<18x6xbf16> -> vector<18x18xbf16>
    %14 = vector.extract_strided_slice %1 {offsets = [2, 0, 0], sizes = [1, 20, 6], strides = [1, 1, 1]} : vector<8x20x6xbf16> to vector<1x20x6xbf16>
    %15 = vector.shape_cast %14 : vector<1x20x6xbf16> to vector<20x6xbf16>
    %16 = vector.extract_strided_slice %15 {offsets = [0, 0], sizes = [18, 6], strides = [1, 1]} : vector<20x6xbf16> to vector<18x6xbf16>
    %17 = vector.extract_strided_slice %15 {offsets = [1, 0], sizes = [18, 6], strides = [1, 1]} : vector<20x6xbf16> to vector<18x6xbf16>
    %18 = vector.extract_strided_slice %15 {offsets = [2, 0], sizes = [18, 6], strides = [1, 1]} : vector<20x6xbf16> to vector<18x6xbf16>
    %19 = tpu.concatenate %16, %17, %18 in 1 : vector<18x6xbf16>, vector<18x6xbf16>, vector<18x6xbf16> -> vector<18x18xbf16>
    %20 = vector.extract_strided_slice %1 {offsets = [3, 0, 0], sizes = [1, 20, 6], strides = [1, 1, 1]} : vector<8x20x6xbf16> to vector<1x20x6xbf16>
    %21 = vector.shape_cast %20 : vector<1x20x6xbf16> to vector<20x6xbf16>
    %22 = vector.extract_strided_slice %21 {offsets = [0, 0], sizes = [18, 6], strides = [1, 1]} : vector<20x6xbf16> to vector<18x6xbf16>
    %23 = vector.extract_strided_slice %21 {offsets = [1, 0], sizes = [18, 6], strides = [1, 1]} : vector<20x6xbf16> to vector<18x6xbf16>
    %24 = vector.extract_strided_slice %21 {offsets = [2, 0], sizes = [18, 6], strides = [1, 1]} : vector<20x6xbf16> to vector<18x6xbf16>
    %25 = tpu.concatenate %22, %23, %24 in 1 : vector<18x6xbf16>, vector<18x6xbf16>, vector<18x6xbf16> -> vector<18x18xbf16>
    %26 = vector.extract_strided_slice %1 {offsets = [4, 0, 0], sizes = [1, 20, 6], strides = [1, 1, 1]} : vector<8x20x6xbf16> to vector<1x20x6xbf16>
    %27 = vector.shape_cast %26 : vector<1x20x6xbf16> to vector<20x6xbf16>
    %28 = vector.extract_strided_slice %27 {offsets = [0, 0], sizes = [18, 6], strides = [1, 1]} : vector<20x6xbf16> to vector<18x6xbf16>
    %29 = vector.extract_strided_slice %27 {offsets = [1, 0], sizes = [18, 6], strides = [1, 1]} : vector<20x6xbf16> to vector<18x6xbf16>
    %30 = vector.extract_strided_slice %27 {offsets = [2, 0], sizes = [18, 6], strides = [1, 1]} : vector<20x6xbf16> to vector<18x6xbf16>
    %31 = tpu.concatenate %28, %29, %30 in 1 : vector<18x6xbf16>, vector<18x6xbf16>, vector<18x6xbf16> -> vector<18x18xbf16>
    %32 = vector.extract_strided_slice %1 {offsets = [5, 0, 0], sizes = [1, 20, 6], strides = [1, 1, 1]} : vector<8x20x6xbf16> to vector<1x20x6xbf16>
    %33 = vector.shape_cast %32 : vector<1x20x6xbf16> to vector<20x6xbf16>
    %34 = vector.extract_strided_slice %33 {offsets = [0, 0], sizes = [18, 6], strides = [1, 1]} : vector<20x6xbf16> to vector<18x6xbf16>
    %35 = vector.extract_strided_slice %33 {offsets = [1, 0], sizes = [18, 6], strides = [1, 1]} : vector<20x6xbf16> to vector<18x6xbf16>
    %36 = vector.extract_strided_slice %33 {offsets = [2, 0], sizes = [18, 6], strides = [1, 1]} : vector<20x6xbf16> to vector<18x6xbf16>
    %37 = tpu.concatenate %34, %35, %36 in 1 : vector<18x6xbf16>, vector<18x6xbf16>, vector<18x6xbf16> -> vector<18x18xbf16>
    %38 = vector.extract_strided_slice %1 {offsets = [6, 0, 0], sizes = [1, 20, 6], strides = [1, 1, 1]} : vector<8x20x6xbf16> to vector<1x20x6xbf16>
    %39 = vector.shape_cast %38 : vector<1x20x6xbf16> to vector<20x6xbf16>
    %40 = vector.extract_strided_slice %39 {offsets = [0, 0], sizes = [18, 6], strides = [1, 1]} : vector<20x6xbf16> to vector<18x6xbf16>
    %41 = vector.extract_strided_slice %39 {offsets = [1, 0], sizes = [18, 6], strides = [1, 1]} : vector<20x6xbf16> to vector<18x6xbf16>
    %42 = vector.extract_strided_slice %39 {offsets = [2, 0], sizes = [18, 6], strides = [1, 1]} : vector<20x6xbf16> to vector<18x6xbf16>
    %43 = tpu.concatenate %40, %41, %42 in 1 : vector<18x6xbf16>, vector<18x6xbf16>, vector<18x6xbf16> -> vector<18x18xbf16>
    %44 = vector.extract_strided_slice %1 {offsets = [7, 0, 0], sizes = [1, 20, 6], strides = [1, 1, 1]} : vector<8x20x6xbf16> to vector<1x20x6xbf16>
    %45 = vector.shape_cast %44 : vector<1x20x6xbf16> to vector<20x6xbf16>
    %46 = vector.extract_strided_slice %45 {offsets = [0, 0], sizes = [18, 6], strides = [1, 1]} : vector<20x6xbf16> to vector<18x6xbf16>
    %47 = vector.extract_strided_slice %45 {offsets = [1, 0], sizes = [18, 6], strides = [1, 1]} : vector<20x6xbf16> to vector<18x6xbf16>
    %48 = vector.extract_strided_slice %45 {offsets = [2, 0], sizes = [18, 6], strides = [1, 1]} : vector<20x6xbf16> to vector<18x6xbf16>
    %49 = tpu.concatenate %46, %47, %48 in 1 : vector<18x6xbf16>, vector<18x6xbf16>, vector<18x6xbf16> -> vector<18x18xbf16>
    %50 = tpu.concatenate %7, %13, %19, %25, %31, %37, %43, %49 in 0 : vector<18x18xbf16>, vector<18x18xbf16>, vector<18x18xbf16>, vector<18x18xbf16>, vector<18x18xbf16>, vector<18x18xbf16>, vector<18x18xbf16>, vector<18x18xbf16> -> vector<144x18xbf16>
    %c0_2 = arith.constant 0 : index
    %c0_3 = arith.constant 0 : index
    %51 = vector.load %arg2[%c0_2, %c0_3] : memref<18x128xbf16, #tpu.memory_space<vmem>>, vector<18x128xbf16>
    %cst = arith.constant dense<0.000000e+00> : vector<144x128xf32>
    %52 = tpu.matmul %50, %51, %cst {dimension_numbers = #tpu.dot_dimension_numbers<[1], [0], [0], [1], [0, 0, 1, 1], [], []>} : vector<144x18xbf16>, vector<18x128xbf16>, vector<144x128xf32> -> vector<144x128xf32>
    %c0_4 = arith.constant 0 : index
    %c0_5 = arith.constant 0 : index
    %53 = vector.load %arg3[%c0_4, %c0_5] : memref<1x128xf32, #tpu.memory_space<vmem>>, vector<1x128xf32>
    %54 = vector.broadcast %53 : vector<1x128xf32> to vector<144x128xf32>
    %55 = arith.addf %52, %54 : vector<144x128xf32>
    %cst_6 = arith.constant 0.000000e+00 : f32
    %56 = vector.broadcast %cst_6 : f32 to vector<144x128xf32>
    %57 = arith.maximumf %55, %56 : vector<144x128xf32>
    %58 = arith.truncf %57 : vector<144x128xf32> to vector<144x128xbf16>
    %59 = vector.extract_strided_slice %58 {offsets = [0, 0], sizes = [16, 128], strides = [1, 1]} : vector<144x128xbf16> to vector<16x128xbf16>
    %60 = vector.extract_strided_slice %58 {offsets = [1, 0], sizes = [16, 128], strides = [1, 1]} : vector<144x128xbf16> to vector<16x128xbf16>
    %61 = vector.extract_strided_slice %58 {offsets = [2, 0], sizes = [16, 128], strides = [1, 1]} : vector<144x128xbf16> to vector<16x128xbf16>
    %62 = tpu.concatenate %59, %60, %61 in 1 : vector<16x128xbf16>, vector<16x128xbf16>, vector<16x128xbf16> -> vector<16x384xbf16>
    %63 = vector.extract_strided_slice %58 {offsets = [18, 0], sizes = [16, 128], strides = [1, 1]} : vector<144x128xbf16> to vector<16x128xbf16>
    %64 = vector.extract_strided_slice %58 {offsets = [19, 0], sizes = [16, 128], strides = [1, 1]} : vector<144x128xbf16> to vector<16x128xbf16>
    %65 = vector.extract_strided_slice %58 {offsets = [20, 0], sizes = [16, 128], strides = [1, 1]} : vector<144x128xbf16> to vector<16x128xbf16>
    %66 = tpu.concatenate %63, %64, %65 in 1 : vector<16x128xbf16>, vector<16x128xbf16>, vector<16x128xbf16> -> vector<16x384xbf16>
    %67 = vector.extract_strided_slice %58 {offsets = [36, 0], sizes = [16, 128], strides = [1, 1]} : vector<144x128xbf16> to vector<16x128xbf16>
    %68 = vector.extract_strided_slice %58 {offsets = [37, 0], sizes = [16, 128], strides = [1, 1]} : vector<144x128xbf16> to vector<16x128xbf16>
    %69 = vector.extract_strided_slice %58 {offsets = [38, 0], sizes = [16, 128], strides = [1, 1]} : vector<144x128xbf16> to vector<16x128xbf16>
    %70 = tpu.concatenate %67, %68, %69 in 1 : vector<16x128xbf16>, vector<16x128xbf16>, vector<16x128xbf16> -> vector<16x384xbf16>
    %71 = vector.extract_strided_slice %58 {offsets = [54, 0], sizes = [16, 128], strides = [1, 1]} : vector<144x128xbf16> to vector<16x128xbf16>
    %72 = vector.extract_strided_slice %58 {offsets = [55, 0], sizes = [16, 128], strides = [1, 1]} : vector<144x128xbf16> to vector<16x128xbf16>
    %73 = vector.extract_strided_slice %58 {offsets = [56, 0], sizes = [16, 128], strides = [1, 1]} : vector<144x128xbf16> to vector<16x128xbf16>
    %74 = tpu.concatenate %71, %72, %73 in 1 : vector<16x128xbf16>, vector<16x128xbf16>, vector<16x128xbf16> -> vector<16x384xbf16>
    %75 = vector.extract_strided_slice %58 {offsets = [72, 0], sizes = [16, 128], strides = [1, 1]} : vector<144x128xbf16> to vector<16x128xbf16>
    %76 = vector.extract_strided_slice %58 {offsets = [73, 0], sizes = [16, 128], strides = [1, 1]} : vector<144x128xbf16> to vector<16x128xbf16>
    %77 = vector.extract_strided_slice %58 {offsets = [74, 0], sizes = [16, 128], strides = [1, 1]} : vector<144x128xbf16> to vector<16x128xbf16>
    %78 = tpu.concatenate %75, %76, %77 in 1 : vector<16x128xbf16>, vector<16x128xbf16>, vector<16x128xbf16> -> vector<16x384xbf16>
    %79 = vector.extract_strided_slice %58 {offsets = [90, 0], sizes = [16, 128], strides = [1, 1]} : vector<144x128xbf16> to vector<16x128xbf16>
    %80 = vector.extract_strided_slice %58 {offsets = [91, 0], sizes = [16, 128], strides = [1, 1]} : vector<144x128xbf16> to vector<16x128xbf16>
    %81 = vector.extract_strided_slice %58 {offsets = [92, 0], sizes = [16, 128], strides = [1, 1]} : vector<144x128xbf16> to vector<16x128xbf16>
    %82 = tpu.concatenate %79, %80, %81 in 1 : vector<16x128xbf16>, vector<16x128xbf16>, vector<16x128xbf16> -> vector<16x384xbf16>
    %83 = vector.extract_strided_slice %58 {offsets = [108, 0], sizes = [16, 128], strides = [1, 1]} : vector<144x128xbf16> to vector<16x128xbf16>
    %84 = vector.extract_strided_slice %58 {offsets = [109, 0], sizes = [16, 128], strides = [1, 1]} : vector<144x128xbf16> to vector<16x128xbf16>
    %85 = vector.extract_strided_slice %58 {offsets = [110, 0], sizes = [16, 128], strides = [1, 1]} : vector<144x128xbf16> to vector<16x128xbf16>
    %86 = tpu.concatenate %83, %84, %85 in 1 : vector<16x128xbf16>, vector<16x128xbf16>, vector<16x128xbf16> -> vector<16x384xbf16>
    %87 = vector.extract_strided_slice %58 {offsets = [126, 0], sizes = [16, 128], strides = [1, 1]} : vector<144x128xbf16> to vector<16x128xbf16>
    %88 = vector.extract_strided_slice %58 {offsets = [127, 0], sizes = [16, 128], strides = [1, 1]} : vector<144x128xbf16> to vector<16x128xbf16>
    %89 = vector.extract_strided_slice %58 {offsets = [128, 0], sizes = [16, 128], strides = [1, 1]} : vector<144x128xbf16> to vector<16x128xbf16>
    %90 = tpu.concatenate %87, %88, %89 in 1 : vector<16x128xbf16>, vector<16x128xbf16>, vector<16x128xbf16> -> vector<16x384xbf16>
    %91 = tpu.concatenate %62, %66, %70, %74, %78, %82, %86, %90 in 0 : vector<16x384xbf16>, vector<16x384xbf16>, vector<16x384xbf16>, vector<16x384xbf16>, vector<16x384xbf16>, vector<16x384xbf16>, vector<16x384xbf16>, vector<16x384xbf16> -> vector<128x384xbf16>
    %c0_7 = arith.constant 0 : index
    %c0_8 = arith.constant 0 : index
    %92 = vector.load %arg4[%c0_7, %c0_8] : memref<384x128xbf16, #tpu.memory_space<vmem>>, vector<384x128xbf16>
    %cst_9 = arith.constant dense<0.000000e+00> : vector<128x128xf32>
    %93 = tpu.matmul %91, %92, %cst_9 {dimension_numbers = #tpu.dot_dimension_numbers<[1], [0], [0], [1], [0, 0, 1, 1], [], []>} : vector<128x384xbf16>, vector<384x128xbf16>, vector<128x128xf32> -> vector<128x128xf32>
    %c0_10 = arith.constant 0 : index
    %c0_11 = arith.constant 0 : index
    %94 = vector.load %arg5[%c0_10, %c0_11] : memref<1x128xf32, #tpu.memory_space<vmem>>, vector<1x128xf32>
    %95 = vector.broadcast %94 : vector<1x128xf32> to vector<128x128xf32>
    %96 = arith.addf %93, %95 : vector<128x128xf32>
    %cst_12 = arith.constant 0.000000e+00 : f32
    %97 = vector.broadcast %cst_12 : f32 to vector<128x128xf32>
    %98 = arith.maximumf %96, %97 : vector<128x128xf32>
    %c0_13 = arith.constant 0 : index
    %c0_14 = arith.constant 0 : index
    %99 = vector.load %arg15[%c0_13, %c0_14] : memref<128x128xf32, #tpu.memory_space<vmem>>, vector<128x128xf32>
    tpu.vector_store %arg15[%c0_13, %c0_14], %98 {strides = array<i32>} : memref<128x128xf32, #tpu.memory_space<vmem>>, vector<128x128xf32>,
    %c0_15 = arith.constant 0 : index
    %c0_16 = arith.constant 0 : index
    %100 = tpu.strided_load %arg15[%c0_15, %c0_16] {strides = array<i32: 3, 1>} : memref<128x128xf32, #tpu.memory_space<vmem>>, vector<5x128xf32>
    %c1 = arith.constant 1 : index
    %c0_17 = arith.constant 0 : index
    %101 = tpu.strided_load %arg15[%c1, %c0_17] {strides = array<i32: 3, 1>} : memref<128x128xf32, #tpu.memory_space<vmem>>, vector<5x128xf32>
    %c2 = arith.constant 2 : index
    %c0_18 = arith.constant 0 : index
    %102 = tpu.strided_load %arg15[%c2, %c0_18] {strides = array<i32: 3, 1>} : memref<128x128xf32, #tpu.memory_space<vmem>>, vector<5x128xf32>
    %103 = arith.maximumf %100, %101 : vector<5x128xf32>
    %104 = arith.maximumf %103, %102 : vector<5x128xf32>
    %105 = arith.truncf %104 : vector<5x128xf32> to vector<5x128xbf16>
    %106 = vector.extract_strided_slice %105 {offsets = [0, 0], sizes = [4, 128], strides = [1, 1]} : vector<5x128xbf16> to vector<4x128xbf16>
    %107 = vector.extract_strided_slice %105 {offsets = [1, 0], sizes = [4, 128], strides = [1, 1]} : vector<5x128xbf16> to vector<4x128xbf16>
    %108 = tpu.concatenate %106, %107 in 1 : vector<4x128xbf16>, vector<4x128xbf16> -> vector<4x256xbf16>
    %c16 = arith.constant 16 : index
    %c0_19 = arith.constant 0 : index
    %109 = tpu.strided_load %arg15[%c16, %c0_19] {strides = array<i32: 3, 1>} : memref<128x128xf32, #tpu.memory_space<vmem>>, vector<5x128xf32>
    %c17 = arith.constant 17 : index
    %c0_20 = arith.constant 0 : index
    %110 = tpu.strided_load %arg15[%c17, %c0_20] {strides = array<i32: 3, 1>} : memref<128x128xf32, #tpu.memory_space<vmem>>, vector<5x128xf32>
    %c18 = arith.constant 18 : index
    %c0_21 = arith.constant 0 : index
    %111 = tpu.strided_load %arg15[%c18, %c0_21] {strides = array<i32: 3, 1>} : memref<128x128xf32, #tpu.memory_space<vmem>>, vector<5x128xf32>
    %112 = arith.maximumf %109, %110 : vector<5x128xf32>
    %113 = arith.maximumf %112, %111 : vector<5x128xf32>
    %114 = arith.truncf %113 : vector<5x128xf32> to vector<5x128xbf16>
    %115 = vector.extract_strided_slice %114 {offsets = [0, 0], sizes = [4, 128], strides = [1, 1]} : vector<5x128xbf16> to vector<4x128xbf16>
    %116 = vector.extract_strided_slice %114 {offsets = [1, 0], sizes = [4, 128], strides = [1, 1]} : vector<5x128xbf16> to vector<4x128xbf16>
    %117 = tpu.concatenate %115, %116 in 1 : vector<4x128xbf16>, vector<4x128xbf16> -> vector<4x256xbf16>
    %c32 = arith.constant 32 : index
    %c0_22 = arith.constant 0 : index
    %118 = tpu.strided_load %arg15[%c32, %c0_22] {strides = array<i32: 3, 1>} : memref<128x128xf32, #tpu.memory_space<vmem>>, vector<5x128xf32>
    %c33 = arith.constant 33 : index
    %c0_23 = arith.constant 0 : index
    %119 = tpu.strided_load %arg15[%c33, %c0_23] {strides = array<i32: 3, 1>} : memref<128x128xf32, #tpu.memory_space<vmem>>, vector<5x128xf32>
    %c34 = arith.constant 34 : index
    %c0_24 = arith.constant 0 : index
    %120 = tpu.strided_load %arg15[%c34, %c0_24] {strides = array<i32: 3, 1>} : memref<128x128xf32, #tpu.memory_space<vmem>>, vector<5x128xf32>
    %121 = arith.maximumf %118, %119 : vector<5x128xf32>
    %122 = arith.maximumf %121, %120 : vector<5x128xf32>
    %123 = arith.truncf %122 : vector<5x128xf32> to vector<5x128xbf16>
    %124 = vector.extract_strided_slice %123 {offsets = [0, 0], sizes = [4, 128], strides = [1, 1]} : vector<5x128xbf16> to vector<4x128xbf16>
    %125 = vector.extract_strided_slice %123 {offsets = [1, 0], sizes = [4, 128], strides = [1, 1]} : vector<5x128xbf16> to vector<4x128xbf16>
    %126 = tpu.concatenate %124, %125 in 1 : vector<4x128xbf16>, vector<4x128xbf16> -> vector<4x256xbf16>
    %c48 = arith.constant 48 : index
    %c0_25 = arith.constant 0 : index
    %127 = tpu.strided_load %arg15[%c48, %c0_25] {strides = array<i32: 3, 1>} : memref<128x128xf32, #tpu.memory_space<vmem>>, vector<5x128xf32>
    %c49 = arith.constant 49 : index
    %c0_26 = arith.constant 0 : index
    %128 = tpu.strided_load %arg15[%c49, %c0_26] {strides = array<i32: 3, 1>} : memref<128x128xf32, #tpu.memory_space<vmem>>, vector<5x128xf32>
    %c50 = arith.constant 50 : index
    %c0_27 = arith.constant 0 : index
    %129 = tpu.strided_load %arg15[%c50, %c0_27] {strides = array<i32: 3, 1>} : memref<128x128xf32, #tpu.memory_space<vmem>>, vector<5x128xf32>
    %130 = arith.maximumf %127, %128 : vector<5x128xf32>
    %131 = arith.maximumf %130, %129 : vector<5x128xf32>
    %132 = arith.truncf %131 : vector<5x128xf32> to vector<5x128xbf16>
    %133 = vector.extract_strided_slice %132 {offsets = [0, 0], sizes = [4, 128], strides = [1, 1]} : vector<5x128xbf16> to vector<4x128xbf16>
    %134 = vector.extract_strided_slice %132 {offsets = [1, 0], sizes = [4, 128], strides = [1, 1]} : vector<5x128xbf16> to vector<4x128xbf16>
    %135 = tpu.concatenate %133, %134 in 1 : vector<4x128xbf16>, vector<4x128xbf16> -> vector<4x256xbf16>
    %c64 = arith.constant 64 : index
    %c0_28 = arith.constant 0 : index
    %136 = tpu.strided_load %arg15[%c64, %c0_28] {strides = array<i32: 3, 1>} : memref<128x128xf32, #tpu.memory_space<vmem>>, vector<5x128xf32>
    %c65 = arith.constant 65 : index
    %c0_29 = arith.constant 0 : index
    %137 = tpu.strided_load %arg15[%c65, %c0_29] {strides = array<i32: 3, 1>} : memref<128x128xf32, #tpu.memory_space<vmem>>, vector<5x128xf32>
    %c66 = arith.constant 66 : index
    %c0_30 = arith.constant 0 : index
    %138 = tpu.strided_load %arg15[%c66, %c0_30] {strides = array<i32: 3, 1>} : memref<128x128xf32, #tpu.memory_space<vmem>>, vector<5x128xf32>
    %139 = arith.maximumf %136, %137 : vector<5x128xf32>
    %140 = arith.maximumf %139, %138 : vector<5x128xf32>
    %141 = arith.truncf %140 : vector<5x128xf32> to vector<5x128xbf16>
    %142 = vector.extract_strided_slice %141 {offsets = [0, 0], sizes = [4, 128], strides = [1, 1]} : vector<5x128xbf16> to vector<4x128xbf16>
    %143 = vector.extract_strided_slice %141 {offsets = [1, 0], sizes = [4, 128], strides = [1, 1]} : vector<5x128xbf16> to vector<4x128xbf16>
    %144 = tpu.concatenate %142, %143 in 1 : vector<4x128xbf16>, vector<4x128xbf16> -> vector<4x256xbf16>
    %c80 = arith.constant 80 : index
    %c0_31 = arith.constant 0 : index
    %145 = tpu.strided_load %arg15[%c80, %c0_31] {strides = array<i32: 3, 1>} : memref<128x128xf32, #tpu.memory_space<vmem>>, vector<5x128xf32>
    %c81 = arith.constant 81 : index
    %c0_32 = arith.constant 0 : index
    %146 = tpu.strided_load %arg15[%c81, %c0_32] {strides = array<i32: 3, 1>} : memref<128x128xf32, #tpu.memory_space<vmem>>, vector<5x128xf32>
    %c82 = arith.constant 82 : index
    %c0_33 = arith.constant 0 : index
    %147 = tpu.strided_load %arg15[%c82, %c0_33] {strides = array<i32: 3, 1>} : memref<128x128xf32, #tpu.memory_space<vmem>>, vector<5x128xf32>
    %148 = arith.maximumf %145, %146 : vector<5x128xf32>
    %149 = arith.maximumf %148, %147 : vector<5x128xf32>
    %150 = arith.truncf %149 : vector<5x128xf32> to vector<5x128xbf16>
    %151 = vector.extract_strided_slice %150 {offsets = [0, 0], sizes = [4, 128], strides = [1, 1]} : vector<5x128xbf16> to vector<4x128xbf16>
    %152 = vector.extract_strided_slice %150 {offsets = [1, 0], sizes = [4, 128], strides = [1, 1]} : vector<5x128xbf16> to vector<4x128xbf16>
    %153 = tpu.concatenate %151, %152 in 1 : vector<4x128xbf16>, vector<4x128xbf16> -> vector<4x256xbf16>
    %c96 = arith.constant 96 : index
    %c0_34 = arith.constant 0 : index
    %154 = tpu.strided_load %arg15[%c96, %c0_34] {strides = array<i32: 3, 1>} : memref<128x128xf32, #tpu.memory_space<vmem>>, vector<5x128xf32>
    %c97 = arith.constant 97 : index
    %c0_35 = arith.constant 0 : index
    %155 = tpu.strided_load %arg15[%c97, %c0_35] {strides = array<i32: 3, 1>} : memref<128x128xf32, #tpu.memory_space<vmem>>, vector<5x128xf32>
    %c98 = arith.constant 98 : index
    %c0_36 = arith.constant 0 : index
    %156 = tpu.strided_load %arg15[%c98, %c0_36] {strides = array<i32: 3, 1>} : memref<128x128xf32, #tpu.memory_space<vmem>>, vector<5x128xf32>
    %157 = arith.maximumf %154, %155 : vector<5x128xf32>
    %158 = arith.maximumf %157, %156 : vector<5x128xf32>
    %159 = arith.truncf %158 : vector<5x128xf32> to vector<5x128xbf16>
    %160 = vector.extract_strided_slice %159 {offsets = [0, 0], sizes = [4, 128], strides = [1, 1]} : vector<5x128xbf16> to vector<4x128xbf16>
    %161 = vector.extract_strided_slice %159 {offsets = [1, 0], sizes = [4, 128], strides = [1, 1]} : vector<5x128xbf16> to vector<4x128xbf16>
    %162 = tpu.concatenate %160, %161 in 1 : vector<4x128xbf16>, vector<4x128xbf16> -> vector<4x256xbf16>
    %c112 = arith.constant 112 : index
    %c0_37 = arith.constant 0 : index
    %163 = tpu.strided_load %arg15[%c112, %c0_37] {strides = array<i32: 3, 1>} : memref<128x128xf32, #tpu.memory_space<vmem>>, vector<5x128xf32>
    %c113 = arith.constant 113 : index
    %c0_38 = arith.constant 0 : index
    %164 = tpu.strided_load %arg15[%c113, %c0_38] {strides = array<i32: 3, 1>} : memref<128x128xf32, #tpu.memory_space<vmem>>, vector<5x128xf32>
    %c114 = arith.constant 114 : index
    %c0_39 = arith.constant 0 : index
    %165 = tpu.strided_load %arg15[%c114, %c0_39] {strides = array<i32: 3, 1>} : memref<128x128xf32, #tpu.memory_space<vmem>>, vector<5x128xf32>
    %166 = arith.maximumf %163, %164 : vector<5x128xf32>
    %167 = arith.maximumf %166, %165 : vector<5x128xf32>
    %168 = arith.truncf %167 : vector<5x128xf32> to vector<5x128xbf16>
    %169 = vector.extract_strided_slice %168 {offsets = [0, 0], sizes = [4, 128], strides = [1, 1]} : vector<5x128xbf16> to vector<4x128xbf16>
    %170 = vector.extract_strided_slice %168 {offsets = [1, 0], sizes = [4, 128], strides = [1, 1]} : vector<5x128xbf16> to vector<4x128xbf16>
    %171 = tpu.concatenate %169, %170 in 1 : vector<4x128xbf16>, vector<4x128xbf16> -> vector<4x256xbf16>
    %172 = tpu.concatenate %108, %117, %126, %135, %144, %153, %162, %171 in 0 : vector<4x256xbf16>, vector<4x256xbf16>, vector<4x256xbf16>, vector<4x256xbf16>, vector<4x256xbf16>, vector<4x256xbf16>, vector<4x256xbf16>, vector<4x256xbf16> -> vector<32x256xbf16>
    %c0_40 = arith.constant 0 : index
    %c0_41 = arith.constant 0 : index
    %173 = vector.load %arg6[%c0_40, %c0_41] : memref<256x160xbf16, #tpu.memory_space<vmem>>, vector<256x160xbf16>
    %cst_42 = arith.constant dense<0.000000e+00> : vector<32x160xf32>
    %174 = tpu.matmul %172, %173, %cst_42 {dimension_numbers = #tpu.dot_dimension_numbers<[1], [0], [0], [1], [0, 0, 1, 1], [], []>} : vector<32x256xbf16>, vector<256x160xbf16>, vector<32x160xf32> -> vector<32x160xf32>
    %c0_43 = arith.constant 0 : index
    %c0_44 = arith.constant 0 : index
    %175 = vector.load %arg7[%c0_43, %c0_44] : memref<1x160xf32, #tpu.memory_space<vmem>>, vector<1x160xf32>
    %176 = vector.broadcast %175 : vector<1x160xf32> to vector<32x160xf32>
    %177 = arith.addf %174, %176 : vector<32x160xf32>
    %cst_45 = arith.constant 0.000000e+00 : f32
    %178 = vector.broadcast %cst_45 : f32 to vector<32x160xf32>
    %179 = arith.maximumf %177, %178 : vector<32x160xf32>
    %180 = arith.truncf %179 : vector<32x160xf32> to vector<32x160xbf16>
    %181 = vector.extract_strided_slice %180 {offsets = [0, 0], sizes = [3, 160], strides = [1, 1]} : vector<32x160xbf16> to vector<3x160xbf16>
    %182 = vector.extract_strided_slice %180 {offsets = [4, 0], sizes = [3, 160], strides = [1, 1]} : vector<32x160xbf16> to vector<3x160xbf16>
    %183 = vector.extract_strided_slice %180 {offsets = [8, 0], sizes = [3, 160], strides = [1, 1]} : vector<32x160xbf16> to vector<3x160xbf16>
    %184 = vector.extract_strided_slice %180 {offsets = [12, 0], sizes = [3, 160], strides = [1, 1]} : vector<32x160xbf16> to vector<3x160xbf16>
    %185 = vector.extract_strided_slice %180 {offsets = [16, 0], sizes = [3, 160], strides = [1, 1]} : vector<32x160xbf16> to vector<3x160xbf16>
    %186 = vector.extract_strided_slice %180 {offsets = [20, 0], sizes = [3, 160], strides = [1, 1]} : vector<32x160xbf16> to vector<3x160xbf16>
    %187 = vector.extract_strided_slice %180 {offsets = [24, 0], sizes = [3, 160], strides = [1, 1]} : vector<32x160xbf16> to vector<3x160xbf16>
    %188 = vector.extract_strided_slice %180 {offsets = [28, 0], sizes = [3, 160], strides = [1, 1]} : vector<32x160xbf16> to vector<3x160xbf16>
    %189 = tpu.concatenate %181, %182, %183, %184, %185, %186, %187, %188 in 0 : vector<3x160xbf16>, vector<3x160xbf16>, vector<3x160xbf16>, vector<3x160xbf16>, vector<3x160xbf16>, vector<3x160xbf16>, vector<3x160xbf16>, vector<3x160xbf16> -> vector<24x160xbf16>
    %190 = vector.extract_strided_slice %180 {offsets = [1, 0], sizes = [3, 160], strides = [1, 1]} : vector<32x160xbf16> to vector<3x160xbf16>
    %191 = vector.extract_strided_slice %180 {offsets = [5, 0], sizes = [3, 160], strides = [1, 1]} : vector<32x160xbf16> to vector<3x160xbf16>
    %192 = vector.extract_strided_slice %180 {offsets = [9, 0], sizes = [3, 160], strides = [1, 1]} : vector<32x160xbf16> to vector<3x160xbf16>
    %193 = vector.extract_strided_slice %180 {offsets = [13, 0], sizes = [3, 160], strides = [1, 1]} : vector<32x160xbf16> to vector<3x160xbf16>
    %194 = vector.extract_strided_slice %180 {offsets = [17, 0], sizes = [3, 160], strides = [1, 1]} : vector<32x160xbf16> to vector<3x160xbf16>
    %195 = vector.extract_strided_slice %180 {offsets = [21, 0], sizes = [3, 160], strides = [1, 1]} : vector<32x160xbf16> to vector<3x160xbf16>
    %196 = vector.extract_strided_slice %180 {offsets = [25, 0], sizes = [3, 160], strides = [1, 1]} : vector<32x160xbf16> to vector<3x160xbf16>
    %197 = vector.extract_strided_slice %180 {offsets = [29, 0], sizes = [3, 160], strides = [1, 1]} : vector<32x160xbf16> to vector<3x160xbf16>
    %198 = tpu.concatenate %190, %191, %192, %193, %194, %195, %196, %197 in 0 : vector<3x160xbf16>, vector<3x160xbf16>, vector<3x160xbf16>, vector<3x160xbf16>, vector<3x160xbf16>, vector<3x160xbf16>, vector<3x160xbf16>, vector<3x160xbf16> -> vector<24x160xbf16>
    %c0_46 = arith.constant 0 : index
    %c0_47 = arith.constant 0 : index
    %c0_48 = arith.constant 0 : index
    %199 = vector.load %arg8[%c0_46, %c0_47, %c0_48] : memref<2x160x160xbf16, #tpu.memory_space<vmem>>, vector<1x160x160xbf16>
    %200 = vector.shape_cast %199 : vector<1x160x160xbf16> to vector<160x160xbf16>
    %cst_49 = arith.constant dense<0.000000e+00> : vector<24x160xf32>
    %201 = tpu.matmul %189, %200, %cst_49 {dimension_numbers = #tpu.dot_dimension_numbers<[1], [0], [0], [1], [0, 0, 1, 1], [], []>} : vector<24x160xbf16>, vector<160x160xbf16>, vector<24x160xf32> -> vector<24x160xf32>
    %c1_50 = arith.constant 1 : index
    %c0_51 = arith.constant 0 : index
    %c0_52 = arith.constant 0 : index
    %202 = vector.load %arg8[%c1_50, %c0_51, %c0_52] : memref<2x160x160xbf16, #tpu.memory_space<vmem>>, vector<1x160x160xbf16>
    %203 = vector.shape_cast %202 : vector<1x160x160xbf16> to vector<160x160xbf16>
    %cst_53 = arith.constant dense<0.000000e+00> : vector<24x160xf32>
    %204 = tpu.matmul %198, %203, %cst_53 {dimension_numbers = #tpu.dot_dimension_numbers<[1], [0], [0], [1], [0, 0, 1, 1], [], []>} : vector<24x160xbf16>, vector<160x160xbf16>, vector<24x160xf32> -> vector<24x160xf32>
    %205 = arith.addf %201, %204 : vector<24x160xf32>
    %c0_54 = arith.constant 0 : index
    %c0_55 = arith.constant 0 : index
    %206 = vector.load %arg9[%c0_54, %c0_55] : memref<1x160xf32, #tpu.memory_space<vmem>>, vector<1x160xf32>
    %207 = vector.broadcast %206 : vector<1x160xf32> to vector<24x160xf32>
    %208 = arith.addf %205, %207 : vector<24x160xf32>
    %cst_56 = arith.constant 0.000000e+00 : f32
    %209 = vector.broadcast %cst_56 : f32 to vector<24x160xf32>
    %210 = arith.maximumf %208, %209 : vector<24x160xf32>
    %211 = vector.extract_strided_slice %210 {offsets = [0, 0], sizes = [1, 160], strides = [1, 1]} : vector<24x160xf32> to vector<1x160xf32>
    %212 = vector.extract_strided_slice %210 {offsets = [1, 0], sizes = [1, 160], strides = [1, 1]} : vector<24x160xf32> to vector<1x160xf32>
    %213 = arith.addf %211, %212 : vector<1x160xf32>
    %214 = vector.extract_strided_slice %210 {offsets = [2, 0], sizes = [1, 160], strides = [1, 1]} : vector<24x160xf32> to vector<1x160xf32>
    %215 = arith.addf %213, %214 : vector<1x160xf32>
    %216 = vector.extract_strided_slice %210 {offsets = [3, 0], sizes = [1, 160], strides = [1, 1]} : vector<24x160xf32> to vector<1x160xf32>
    %217 = vector.extract_strided_slice %210 {offsets = [4, 0], sizes = [1, 160], strides = [1, 1]} : vector<24x160xf32> to vector<1x160xf32>
    %218 = arith.addf %216, %217 : vector<1x160xf32>
    %219 = vector.extract_strided_slice %210 {offsets = [5, 0], sizes = [1, 160], strides = [1, 1]} : vector<24x160xf32> to vector<1x160xf32>
    %220 = arith.addf %218, %219 : vector<1x160xf32>
    %221 = vector.extract_strided_slice %210 {offsets = [6, 0], sizes = [1, 160], strides = [1, 1]} : vector<24x160xf32> to vector<1x160xf32>
    %222 = vector.extract_strided_slice %210 {offsets = [7, 0], sizes = [1, 160], strides = [1, 1]} : vector<24x160xf32> to vector<1x160xf32>
    %223 = arith.addf %221, %222 : vector<1x160xf32>
    %224 = vector.extract_strided_slice %210 {offsets = [8, 0], sizes = [1, 160], strides = [1, 1]} : vector<24x160xf32> to vector<1x160xf32>
    %225 = arith.addf %223, %224 : vector<1x160xf32>
    %226 = vector.extract_strided_slice %210 {offsets = [9, 0], sizes = [1, 160], strides = [1, 1]} : vector<24x160xf32> to vector<1x160xf32>
    %227 = vector.extract_strided_slice %210 {offsets = [10, 0], sizes = [1, 160], strides = [1, 1]} : vector<24x160xf32> to vector<1x160xf32>
    %228 = arith.addf %226, %227 : vector<1x160xf32>
    %229 = vector.extract_strided_slice %210 {offsets = [11, 0], sizes = [1, 160], strides = [1, 1]} : vector<24x160xf32> to vector<1x160xf32>
    %230 = arith.addf %228, %229 : vector<1x160xf32>
    %231 = vector.extract_strided_slice %210 {offsets = [12, 0], sizes = [1, 160], strides = [1, 1]} : vector<24x160xf32> to vector<1x160xf32>
    %232 = vector.extract_strided_slice %210 {offsets = [13, 0], sizes = [1, 160], strides = [1, 1]} : vector<24x160xf32> to vector<1x160xf32>
    %233 = arith.addf %231, %232 : vector<1x160xf32>
    %234 = vector.extract_strided_slice %210 {offsets = [14, 0], sizes = [1, 160], strides = [1, 1]} : vector<24x160xf32> to vector<1x160xf32>
    %235 = arith.addf %233, %234 : vector<1x160xf32>
    %236 = vector.extract_strided_slice %210 {offsets = [15, 0], sizes = [1, 160], strides = [1, 1]} : vector<24x160xf32> to vector<1x160xf32>
    %237 = vector.extract_strided_slice %210 {offsets = [16, 0], sizes = [1, 160], strides = [1, 1]} : vector<24x160xf32> to vector<1x160xf32>
    %238 = arith.addf %236, %237 : vector<1x160xf32>
    %239 = vector.extract_strided_slice %210 {offsets = [17, 0], sizes = [1, 160], strides = [1, 1]} : vector<24x160xf32> to vector<1x160xf32>
    %240 = arith.addf %238, %239 : vector<1x160xf32>
    %241 = vector.extract_strided_slice %210 {offsets = [18, 0], sizes = [1, 160], strides = [1, 1]} : vector<24x160xf32> to vector<1x160xf32>
    %242 = vector.extract_strided_slice %210 {offsets = [19, 0], sizes = [1, 160], strides = [1, 1]} : vector<24x160xf32> to vector<1x160xf32>
    %243 = arith.addf %241, %242 : vector<1x160xf32>
    %244 = vector.extract_strided_slice %210 {offsets = [20, 0], sizes = [1, 160], strides = [1, 1]} : vector<24x160xf32> to vector<1x160xf32>
    %245 = arith.addf %243, %244 : vector<1x160xf32>
    %246 = vector.extract_strided_slice %210 {offsets = [21, 0], sizes = [1, 160], strides = [1, 1]} : vector<24x160xf32> to vector<1x160xf32>
    %247 = vector.extract_strided_slice %210 {offsets = [22, 0], sizes = [1, 160], strides = [1, 1]} : vector<24x160xf32> to vector<1x160xf32>
    %248 = arith.addf %246, %247 : vector<1x160xf32>
    %249 = vector.extract_strided_slice %210 {offsets = [23, 0], sizes = [1, 160], strides = [1, 1]} : vector<24x160xf32> to vector<1x160xf32>
    %250 = arith.addf %248, %249 : vector<1x160xf32>
    %251 = tpu.concatenate %215, %220, %225, %230, %235, %240, %245, %250 in 0 : vector<1x160xf32>, vector<1x160xf32>, vector<1x160xf32>, vector<1x160xf32>, vector<1x160xf32>, vector<1x160xf32>, vector<1x160xf32>, vector<1x160xf32> -> vector<8x160xf32>
    %cst_57 = arith.constant 0.333333343 : f32
    %252 = vector.broadcast %cst_57 : f32 to vector<8x160xf32>
    %253 = arith.mulf %251, %252 : vector<8x160xf32>
    %254 = arith.truncf %253 : vector<8x160xf32> to vector<8x160xbf16>
    %c0_58 = arith.constant 0 : index
    %c0_59 = arith.constant 0 : index
    %255 = vector.load %arg10[%c0_58, %c0_59] : memref<160x32xbf16, #tpu.memory_space<vmem>>, vector<160x32xbf16>
    %cst_60 = arith.constant dense<0.000000e+00> : vector<8x32xf32>
    %256 = tpu.matmul %254, %255, %cst_60 {dimension_numbers = #tpu.dot_dimension_numbers<[1], [0], [0], [1], [0, 0, 1, 1], [], []>} : vector<8x160xbf16>, vector<160x32xbf16>, vector<8x32xf32> -> vector<8x32xf32>
    %c0_61 = arith.constant 0 : index
    %c0_62 = arith.constant 0 : index
    %257 = vector.load %arg11[%c0_61, %c0_62] : memref<1x32xf32, #tpu.memory_space<vmem>>, vector<1x32xf32>
    %258 = vector.broadcast %257 : vector<1x32xf32> to vector<8x32xf32>
    %259 = arith.addf %256, %258 : vector<8x32xf32>
    %cst_63 = arith.constant 0.000000e+00 : f32
    %260 = vector.broadcast %cst_63 : f32 to vector<8x32xf32>
    %261 = arith.maximumf %259, %260 : vector<8x32xf32>
    %262 = arith.truncf %261 : vector<8x32xf32> to vector<8x32xbf16>
    %c0_64 = arith.constant 0 : index
    %c0_65 = arith.constant 0 : index
    %263 = vector.load %arg12[%c0_64, %c0_65] : memref<32x128xbf16, #tpu.memory_space<vmem>>, vector<32x128xbf16>
    %cst_66 = arith.constant dense<0.000000e+00> : vector<8x128xf32>
    %264 = tpu.matmul %262, %263, %cst_66 {dimension_numbers = #tpu.dot_dimension_numbers<[1], [0], [0], [1], [0, 0, 1, 1], [], []>} : vector<8x32xbf16>, vector<32x128xbf16>, vector<8x128xf32> -> vector<8x128xf32>
    %c0_67 = arith.constant 0 : index
    %c0_68 = arith.constant 0 : index
    %265 = vector.load %arg13[%c0_67, %c0_68] : memref<1x128xf32, #tpu.memory_space<vmem>>, vector<1x128xf32>
    %266 = vector.broadcast %265 : vector<1x128xf32> to vector<8x128xf32>
    %267 = arith.addf %264, %266 : vector<8x128xf32>
    %c0_69 = arith.constant 0 : index
    %c0_70 = arith.constant 0 : index
    %268 = vector.load %arg14[%c0_69, %c0_70] : memref<8x128xf32, #tpu.memory_space<vmem>>, vector<8x128xf32>
    tpu.vector_store %arg14[%c0_69, %c0_70], %267 {strides = array<i32>} : memref<8x128xf32, #tpu.memory_space<vmem>>, vector<8x128xf32>,
    return
  }
  func.func @transform_0(%arg0: i32) -> (i32, i32, i32) {
    %c0_i32 = arith.constant 0 : i32
    %c0_i32_0 = arith.constant 0 : i32
    %c0_i32_1 = arith.constant 0 : i32
    return %arg0, %c0_i32, %c0_i32_0 : i32, i32, i32
  }
  func.func @transform_1(%arg0: i32) -> (i32, i32) {
    %c0_i32 = arith.constant 0 : i32
    %c0_i32_0 = arith.constant 0 : i32
    %c0_i32_1 = arith.constant 0 : i32
    return %c0_i32, %c0_i32_0 : i32, i32
  }
  func.func @transform_2(%arg0: i32) -> (i32, i32) {
    %c0_i32 = arith.constant 0 : i32
    %c0_i32_0 = arith.constant 0 : i32
    %c0_i32_1 = arith.constant 0 : i32
    return %c0_i32, %c0_i32_0 : i32, i32
  }
  func.func @transform_3(%arg0: i32) -> (i32, i32) {
    %c0_i32 = arith.constant 0 : i32
    %c0_i32_0 = arith.constant 0 : i32
    %c0_i32_1 = arith.constant 0 : i32
    return %c0_i32, %c0_i32_0 : i32, i32
  }
  func.func @transform_4(%arg0: i32) -> (i32, i32) {
    %c0_i32 = arith.constant 0 : i32
    %c0_i32_0 = arith.constant 0 : i32
    %c0_i32_1 = arith.constant 0 : i32
    return %c0_i32, %c0_i32_0 : i32, i32
  }
  func.func @transform_5(%arg0: i32) -> (i32, i32) {
    %c0_i32 = arith.constant 0 : i32
    %c0_i32_0 = arith.constant 0 : i32
    %c0_i32_1 = arith.constant 0 : i32
    return %c0_i32, %c0_i32_0 : i32, i32
  }
  func.func @transform_6(%arg0: i32) -> (i32, i32) {
    %c0_i32 = arith.constant 0 : i32
    %c0_i32_0 = arith.constant 0 : i32
    %c0_i32_1 = arith.constant 0 : i32
    return %c0_i32, %c0_i32_0 : i32, i32
  }
  func.func @transform_7(%arg0: i32) -> (i32, i32, i32) {
    %c0_i32 = arith.constant 0 : i32
    %c0_i32_0 = arith.constant 0 : i32
    %c0_i32_1 = arith.constant 0 : i32
    %c0_i32_2 = arith.constant 0 : i32
    return %c0_i32, %c0_i32_0, %c0_i32_1 : i32, i32, i32
  }
  func.func @transform_8(%arg0: i32) -> (i32, i32) {
    %c0_i32 = arith.constant 0 : i32
    %c0_i32_0 = arith.constant 0 : i32
    %c0_i32_1 = arith.constant 0 : i32
    return %c0_i32, %c0_i32_0 : i32, i32
  }
  func.func @transform_9(%arg0: i32) -> (i32, i32) {
    %c0_i32 = arith.constant 0 : i32
    %c0_i32_0 = arith.constant 0 : i32
    %c0_i32_1 = arith.constant 0 : i32
    return %c0_i32, %c0_i32_0 : i32, i32
  }
  func.func @transform_10(%arg0: i32) -> (i32, i32) {
    %c0_i32 = arith.constant 0 : i32
    %c0_i32_0 = arith.constant 0 : i32
    %c0_i32_1 = arith.constant 0 : i32
    return %c0_i32, %c0_i32_0 : i32, i32
  }
  func.func @transform_11(%arg0: i32) -> (i32, i32) {
    %c0_i32 = arith.constant 0 : i32
    %c0_i32_0 = arith.constant 0 : i32
    %c0_i32_1 = arith.constant 0 : i32
    return %c0_i32, %c0_i32_0 : i32, i32
  }
  func.func @transform_12(%arg0: i32) -> (i32, i32) {
    %c0_i32 = arith.constant 0 : i32
    %c0_i32_0 = arith.constant 0 : i32
    %c0_i32_1 = arith.constant 0 : i32
    return %c0_i32, %c0_i32_0 : i32, i32
  }
  func.func @transform_13(%arg0: i32) -> (i32, i32) {
    %c0_i32 = arith.constant 0 : i32
    %c0_i32_0 = arith.constant 0 : i32
    return %arg0, %c0_i32 : i32, i32
  }
}

</mosaic_0001>

<bundles_post_ra>
// kernel: tpu_custom_call.1
= control target key start
LH: loop header
LB: loop body
LE: loop exit
PB: predicated region body
PF: predicated region fallthrough
CT: control target
= control target key end

     0   :  { %s4968_s0 = inlined_call_operand.vmem [shape: f32[16,20,6], index: 0, kind: input, shape index: {}]   ;;  %s4969_s1 = inlined_call_operand.vmem [shape: bf16[18,128], index: 1, kind: input, shape index: {}]   ;;  %s4970_s2 = inlined_call_operand.vmem [shape: f32[1,128], index: 2, kind: input, shape index: {}]   ;;  %s4971_s3 = inlined_call_operand.vmem [shape: bf16[384,128], index: 3, kind: input, shape index: {}]   ;;  %s4972_s4 = inlined_call_operand.vmem [shape: f32[1,128], index: 4, kind: input, shape index: {}]   ;;  %s4973_s5 = inlined_call_operand.vmem [shape: bf16[256,160], index: 5, kind: input, shape index: {}]   ;;  %s4974_s6 = inlined_call_operand.vmem [shape: f32[1,160], index: 6, kind: input, shape index: {}]   ;;  %s4975_s7 = inlined_call_operand.vmem [shape: bf16[2,160,160], index: 7, kind: input, shape index: {}]   ;;  %s4976_s8 = inlined_call_operand.vmem [shape: f32[1,160], index: 8, kind: input, shape index: {}]   ;;  %s4977_s9 = inlined_call_operand.vmem [shape: bf16[160,32], index: 9, kind: input, shape index: {}]   ;;  %s4978_s10 = inlined_call_operand.vmem [shape: f32[1,32], index: 10, kind: input, shape index: {}]   ;;  %s4979_s11 = inlined_call_operand.vmem [shape: bf16[32,128], index: 11, kind: input, shape index: {}]   ;;  %s4980_s12 = inlined_call_operand.vmem [shape: f32[1,128], index: 12, kind: input, shape index: {}]   ;;  %s4981_s13 = inlined_call_operand.hbm [shape: f32[16,128], index: 13, kind: output, shape index: {}]  }
   0x1   :  { %4982 = sst [smem:[#allocation6_spill]] %s4968_s0 }
   0x2   :  { %4983 = sst [smem:[#allocation7_spill]] %s4969_s1 }
   0x3   :  { %4984 = sst [smem:[#allocation8_spill]] %s4970_s2 }
   0x4   :  { %4985 = sst [smem:[#allocation9_spill]] %s4971_s3 }
   0x5   :  { %4986 = sst [smem:[#allocation10_spill]] %s4972_s4 }
   0x6   :  { %18 = vsyncpa [#allocation4], 0 }
   0x7   :  { %20 = vsyncpa [#allocation4 + $0x1], 0  ;;  %s3846_s25 = smov 0   ;;  %s3848_s26 = smov 0  }
   0x8   :  { %s3850_s27 = smov 0   ;;  %s3852_s28 = smov 0  }
   0x9 LB: > { %s3066_s29 = sadd.s32 4294967295, %s3772_s28   ;;  %s3067_s30 = sadd.s32 4294967294, %s3772_s28   ;;  %s3772_s28 = sphi %s3852_s28, %s5005_s28   ;;  %s3768_s27 = sphi %s3850_s27, %s5004_s27   ;;  %s3764_s26 = sphi %s3848_s26, %s5003_s26   ;;  %s3760_s25 = sphi %s3846_s25, %s5002_s25  }
   0xa   : > { %s3869_s14 = sadd.s32 1, %s3772_s28   ;;  %s311_s15 = sadd.s32 1, %s3768_s27 }
   0xb   : > { %s308_s16 = ssub.s32 %s3772_s28, %s3869_s14  ;;  %p321_p0 = scmp.ne.s32.totalorder %s3768_s27, %s3764_s26 }
   0xc   : > { %p309_p1 = scmp.eq.s32.totalorder %s308_s16, 0  ;;  %p322_p2 = scmp.eq.s32.totalorder %s3066_s29, 1 }
   0xd   : > { %p327_p3 = scmp.ne.s32.totalorder %s3764_s26, %s3760_s25  ;;  %p328_p4 = scmp.eq.s32.totalorder %s3067_s30, 1 }
   0xe   : > { %s3879_s17 = scalar_select %p309_p1, %s3768_s27, %s311_s15  }
   0xf   : > { %p3881_p5 = por %p322_p2, %p321_p0  ;;  %p3885_p6 = por %p328_p4, %p327_p3 }
  0x10   : > { %p3070_p7 = scmp.ge.s32.totalorder %s3772_s28, 1  ;;  %p392_p8 = scmp.lt.s32.totalorder %s3772_s28, 3 }
  0x12   : > { %p393_p9 = pnand %p3070_p7, %p392_p8 }
  0x13   : > { %s3891_s20 = sshll.u32 (!%p393_p9), %s3066_s29, 3  ;;  %s4989_s0 = sld [smem:[#allocation6_spill]] (!%p393_p9) }
  0x14   : > { %396 = sbr.rel (%p393_p9) target bundleno = 1249 (0x4e1), region = 72  ;;  %p438_p10 = scmp.lt.s32.totalorder (!%p393_p9), %s3891_s20, 15 }
  0x15   : > { %s3774_s29 = smov (!%p393_p9), 6   ;;  %s3775_s15 = smov (!%p393_p9), 12  }
  0x16   : > { %s4990_s1 = sld [smem:[#allocation7_spill]] (!%p393_p9)  ;;  %s3730_s24 = scalar_lea.hbm (!%p393_p9), %s4981_s13, 16 }
  0x17   : > { %s4991_s3 = sld [smem:[#allocation9_spill]] (!%p393_p9) }
  0x18   : > { %s4992_s2 = sld [smem:[#allocation8_spill]] (!%p393_p9) }
  0x19   : > { %s439_s21 = scalar_select %p438_p10, %s3891_s20, 15  ;;  %vm501_vm0 = vsmask.f32 7424  ;;  %vm521_vm1 = vcmask 1046528   ;;  %vm835_vm2 = vcmask 1040384   ;;  %vm529_vm3 = vcmask 48128  }
  0x1a   : > { %vm534_vm4 = vcmask 97280   ;;  %vm917_vm5 = vcmask 146432   ;;  %vm841_vm6 = vcmask 1041408   ;;  %vm847_vm7 = vcmask 1042432   ;;  %s4993_s4 = sld [smem:[#allocation10_spill]] }
  0x1b   : > { %s3664_s22 = smul.u32 24, %s439_s21  ;;  %vm853_vm8 = vcmask 1043456   ;;  %vm859_vm9 = vcmask 1044480   ;;  %vm865_vm10 = vcmask 1045504   ;;  %vm2240_vm11 = vsmask.f32 1280 }
  0x1c   : > { %vm2252_vm12 = vsmask.f32 4352  ;;  %vm4705_vm13 = vmand %vm841_vm6, %vm2240_vm11  ;;  %vm2264_vm15 = vcmask 1047552   ;;  %s434_s21 = sand.u32 1, %s3764_s26  }
  0x1d   : > { %s3898_s30 = scalar_lea.vmem %s4989_s0, %s3664_s22  ;;  %vm4773_vm14 = vmand %vm859_vm9, %vm2252_vm12  ;;  %s3071_s22 = sshll.u32 %s434_s21, 3 }
  0x1e   : > { %v445_v0 = vld [vmem:[%s3898_s30] sm:$0xff]  ;;  %v446_v1 = vld [vmem:[%s3898_s30 + $0x8] sm:$0xff]  ;;  %v447_v2 = vld [vmem:[%s3898_s30 + $0x10] sm:$0xf]  ;;  %s2993_s16 = scalar_lea.sflag [#allocation4], %s434_s21 }
  0x1f   : > { %v469_v3 = vpack.c.bf16 %v445_v0, %v445_v0  ;;  %v470_v4 = vpack.c.bf16 %v446_v1, %v446_v1  ;;  %v471_v5 = vpack.c.bf16 %v447_v2, %v447_v2  ;;  %v448_v6 = vld [vmem:[%s3898_s30 + $0x18] sm:$0xff]  ;;  %v449_v7 = vld [vmem:[%s3898_s30 + $0x20] sm:$0xff]  ;;  %v450_v8 = vld [vmem:[%s3898_s30 + $0x28] sm:$0xf] }
  0x20   : > { %v472_v9 = vpack.c.bf16 %v448_v6, %v448_v6  ;;  %v473_v10 = vpack.c.bf16 %v449_v7, %v449_v7  ;;  %v474_v11 = vpack.c.bf16 %v450_v8, %v450_v8  ;;  %v451_v15 = vld [vmem:[%s3898_s30 + $0x30] sm:$0xff]  ;;  %v452_v19 = vld [vmem:[%s3898_s30 + $0x38] sm:$0xff]  ;;  %v453_v36 = vld [vmem:[%s3898_s30 + $0x40] sm:$0xf] }
  0x21   : > { %v496_v12 = vunpack.c.l.b16 %v469_v3  ;;  %v497_v13 = vunpack.c.l.b16 %v470_v4  ;;  %v498_v14 = vunpack.c.l.b16 %v471_v5  ;;  %v475_v24 = vpack.c.bf16 %v451_v15, %v451_v15  ;;  %v454_v51 = vld [vmem:[%s3898_s30 + $0x48] sm:$0xff]  ;;  %v455_v52 = vld [vmem:[%s3898_s30 + $0x50] sm:$0xff]  ;;  %v456_v59 = vld [vmem:[%s3898_s30 + $0x58] sm:$0xf] }
  0x22   : > { %v542_v16 = vunpack.c.l.b16 %v472_v9  ;;  %v543_v17 = vunpack.c.l.b16 %v473_v10  ;;  %v544_v18 = vunpack.c.l.b16 %v474_v11  ;;  %v476_v28 = vpack.c.bf16 %v452_v19, %v452_v19  ;;  %v457_v5 = vld [vmem:[%s3898_s30 + $0x60] sm:$0xff]  ;;  %v458_v6 = vld [vmem:[%s3898_s30 + $0x68] sm:$0xff] }
  0x23   : > { %v3908_v20 = vpack.c.b16 %v497_v13, %v496_v12  ;;  %v3910_v21 = vpack.c.b16 %v498_v14, %v498_v14  ;;  %v584_v38 = vunpack.c.l.b16 %v475_v24  ;;  %v477_v43 = vpack.c.bf16 %v453_v36, %v453_v36  ;;  %v459_v14 = vld [vmem:[%s3898_s30 + $0x70] sm:$0xf] }
  0x24   : > { %v3912_v22 = vpack.c.b16 %v543_v17, %v542_v16  ;;  %v3914_v23 = vpack.c.b16 %v544_v18, %v544_v18  ;;  %v585_v39 = vunpack.c.l.b16 %v476_v28  ;;  %v478_v56 = vpack.c.bf16 %v454_v51, %v454_v51 }
  0x25   : > { %v503_v25 = vshrl.u32 %v3908_v20, 16  ;;  %v505_v26 = vshll.u32 %v3908_v20, 16  ;;  %v510_v27 = vshll.u32 %v3910_v21, 16  ;;  %v514_v41 = vshrl.u32 %v3910_v21, 16 }
  0x26   : > { %v548_v29 = vshrl.u32 %v3912_v22, 16  ;;  %v550_v30 = vshll.u32 %v3912_v22, 16  ;;  %v555_v31 = vshll.u32 %v3914_v23, 16  ;;  %v522_v46 = vrot.slane %v3908_v20, 1 }
  0x27   : > { %v507_v32 = vrot.slane %v505_v26, 1  ;;  %v512_v33 = vrot.slane %v510_v27, 1  ;;  %v523_v47 = vrot.slane %v3910_v21, 1  ;;  %v3930_v48 = vpack.c.b16 %v585_v39, %v584_v38 }
  0x28   : > { %v552_v34 = vrot.slane %v550_v30, 1  ;;  %v557_v35 = vrot.slane %v555_v31, 1  ;;  %v566_v49 = vrot.slane %v3912_v22, 1  ;;  %v567_v50 = vrot.slane %v3914_v23, 1 }
  0x29   : > { %v508_v37 = vor.u32 %v507_v32, %v503_v25  ;;  %v516_v45 = vor.u32 %v514_v41, %v512_v33  ;;  %v586_v53 = vunpack.c.l.b16 %v477_v43  ;;  %v592_v54 = vshll.u32 %v3930_v48, 16 }
  0x2a   : > { %v553_v40 = vor.u32 %v552_v34, %v548_v29  ;;  %v524_v55 = vsel %vm521_vm1, %v522_v46, %v523_v47  ;;  %v479_v57 = vpack.c.bf16 %v455_v52, %v455_v52  ;;  %v568_v58 = vsel %vm521_vm1, %v566_v49, %v567_v50  ;;  %v460_v34 = vld [vmem:[%s3898_s30 + $0x78] sm:$0xff] }
  0x2b   : > { %v513_v42 = vsel %vm501_vm0, %v508_v37, %v512_v33  ;;  %519 = vrot.lane.b32.xlu2 %v516_v45, %s3774_s29  ;;  %v3941_v60 = vpack.c.b16 %v586_v53, %v586_v53  ;;  %v590_v61 = vshrl.u32 %v3930_v48, 16  ;;  %v594_v62 = vrot.slane %v592_v54, 1  ;;  %v462_v45 = vld [vmem:[%s3898_s30 + $0x88] sm:$0xf] }
  0x2c   : > { %517 = vrot.lane.b32.xlu0 %v513_v42, %s3774_s29  ;;  %v558_v44 = vsel %vm501_vm0, %v553_v40, %v557_v35  ;;  %v559_v63 = vshrl.u32 %v3914_v23, 16  ;;  %v480_v1 = vpack.c.bf16 %v456_v59, %v456_v59  ;;  %v626_v2 = vunpack.c.l.b16 %v478_v56  ;;  %v463_v59 = vld [vmem:[%s3898_s30 + $0x90] sm:$0xff] }
  0x2d   : > { %562 = vrot.lane.b32.xlu1 %v558_v44, %s3774_s29  ;;  %v597_v0 = vshll.u32 %v3941_v60, 16  ;;  %v627_v3 = vunpack.c.l.b16 %v479_v57  ;;  %v595_v4 = vor.u32 %v594_v62, %v590_v61  ;;  %v481_v11 = vpack.c.bf16 %v457_v5, %v457_v5  ;;  %v464_v61 = vld [vmem:[%s3898_s30 + $0x98] sm:$0xff]  ;;  %v465_v5 = vld [vmem:[%s3898_s30 + $0xa0] sm:$0xf] }
  0x2e   : > { %v561_v7 = vor.u32 %v559_v63, %v557_v35  ;;  %v628_v9 = vunpack.c.l.b16 %v480_v1  ;;  %v482_v12 = vpack.c.bf16 %v458_v6, %v458_v6  ;;  %v608_v15 = vrot.slane %v3930_v48, 1  ;;  %v461_v35 = vld [vmem:[%s3898_s30 + $0x80] sm:$0xff] }
  0x2f   : > { %v599_v8 = vrot.slane %v597_v0, 1  ;;  %v3951_v10 = vpack.c.b16 %v627_v3, %v626_v2  ;;  %v609_v16 = vrot.slane %v3941_v60, 1  ;;  %v601_v17 = vshrl.u32 %v3941_v60, 16 }
  0x30   : > { %v3960_v18 = vpack.c.b16 %v628_v9, %v628_v9  ;;  %v483_v24 = vpack.c.bf16 %v459_v14, %v459_v14  ;;  %v668_v25 = vunpack.c.l.b16 %v481_v11  ;;  %v669_v26 = vunpack.c.l.b16 %v482_v12 }
  0x31   : > { %v600_v13 = vsel %vm501_vm0, %v595_v4, %v599_v8  ;;  %v634_v19 = vshll.u32 %v3951_v10, 16  ;;  %v610_v27 = vsel %vm521_vm1, %v608_v15, %v609_v16  ;;  %v603_v28 = vor.u32 %v601_v17, %v599_v8  ;;  %v466_v17 = vld [vmem:[%s3898_s30 + $0xa8] sm:$0xff] }
  0x32   : > { %v632_v29 = vshrl.u32 %v3951_v10, 16  ;;  %v639_v31 = vshll.u32 %v3960_v18, 16  ;;  %v670_v32 = vunpack.c.l.b16 %v483_v24  ;;  %v3967_v33 = vpack.c.b16 %v669_v26, %v668_v25 }
  0x33   : > { %527 = vrot.lane.b32.xlu2 %v523_v47, %s3775_s15  ;;  %v636_v30 = vrot.slane %v634_v19, 1  ;;  %v650_v36 = vrot.slane %v3951_v10, 1  ;;  %v651_v37 = vrot.slane %v3960_v18, 1  ;;  %v484_v40 = vpack.c.bf16 %v460_v34, %v460_v34  ;;  %v467_v19 = vld [vmem:[%s3898_s30 + $0xb0] sm:$0xff] }
  0x34   : > { %525 = vrot.lane.b32.xlu0 %v524_v55, %s3775_s15  ;;  %v641_v39 = vrot.slane %v639_v31, 1  ;;  %v485_v41 = vpack.c.bf16 %v461_v35, %v461_v35  ;;  %v3975_v42 = vpack.c.b16 %v670_v32, %v670_v32  ;;  %v676_v43 = vshll.u32 %v3967_v33, 16  ;;  %v468_v31 = vld [vmem:[%s3898_s30 + $0xb8] sm:$0xf] }
  0x35   : > { %569 = vrot.lane.b32.xlu1 %v568_v58, %s3775_s15  ;;  %v637_v38 = vor.u32 %v636_v30, %v632_v29  ;;  %v643_v44 = vshrl.u32 %v3960_v18, 16  ;;  %v652_v47 = vsel %vm521_vm1, %v650_v36, %v651_v37  ;;  %v710_v49 = vunpack.c.l.b16 %v484_v40 }
  0x36   : > { %v674_v51 = vshrl.u32 %v3967_v33, 16  ;;  %v678_v52 = vrot.slane %v676_v43, 1  ;;  %v681_v53 = vshll.u32 %v3975_v42, 16  ;;  %v486_v55 = vpack.c.bf16 %v462_v45, %v462_v45 }
  0x37   : > { %v642_v46 = vsel %vm501_vm0, %v637_v38, %v641_v39  ;;  %v645_v54 = vor.u32 %v643_v44, %v641_v39  ;;  %v692_v63 = vrot.slane %v3967_v33, 1  ;;  %v693_v1 = vrot.slane %v3975_v42, 1 }
  0x38   : > { %v679_v57 = vor.u32 %v678_v52, %v674_v51  ;;  %v683_v58 = vrot.slane %v681_v53, 1  ;;  %v712_v62 = vunpack.c.l.b16 %v486_v55  ;;  %v487_v2 = vpack.c.bf16 %v463_v59, %v463_v59 }
  0x39   : > { %v488_v3 = vpack.c.bf16 %v464_v61, %v464_v61  ;;  %v685_v11 = vshrl.u32 %v3975_v42, 16  ;;  %v491_v29 = vpack.c.bf16 %v467_v19, %v467_v19  ;;  %v492_v38 = vpack.c.bf16 %v468_v31, %v468_v31 }
  0x3a   : > { %v684_v4 = vsel %vm501_vm0, %v679_v57, %v683_v58  ;;  %v3997_v6 = vpack.c.b16 %v712_v62, %v712_v62  ;;  %v752_v14 = vunpack.c.l.b16 %v487_v2  ;;  %v903_v2 = vld [vmem:[%s4990_s1 + $0x8] sm:$0x1] }
  0x3b   : > { %604 = vrot.lane.b32.xlu2 %v600_v13, %s3774_s29  ;;  %v489_v13 = vpack.c.bf16 %v465_v5, %v465_v5  ;;  %v753_v15 = vunpack.c.l.b16 %v488_v3  ;;  %v687_v24 = vor.u32 %v685_v11, %v683_v58  ;;  %v795_v40 = vunpack.c.l.b16 %v491_v29 }
  0x3c   : > { %564 = vrot.lane.b32.xlu0 %v561_v7, %s3774_s29  ;;  %v694_v7 = vsel %vm521_vm1, %v692_v63, %v693_v1  ;;  %v723_v12 = vshll.u32 %v3997_v6, 16  ;;  %v735_v34 = vrot.slane %v3997_v6, 1  ;;  %v727_v35 = vshrl.u32 %v3997_v6, 16 }
  0x3d   : > { %571 = vrot.lane.b32.xlu1 %v567_v50, %s3775_s15  ;;  %v711_v50 = vunpack.c.l.b16 %v485_v41  ;;  %v754_v26 = vunpack.c.l.b16 %v489_v13  ;;  %v3555_v13 = vld [vmem:[%s4990_s1] sm:$0xff]  ;;  %s436_s1 = scalar_lea.vmem [#allocation3], %s3071_s22 }
  0x3e   : > { %v725_v25 = vrot.slane %v723_v12, 1 }
  0x3f   : > { %v3987_v56 = vpack.c.b16 %v711_v50, %v710_v49  ;;  %v4017_v36 = vpack.c.b16 %v754_v26, %v754_v26 }
  0x40   : > { %v729_v43 = vor.u32 %v727_v35, %v725_v25 }
  0x41   : > { %v718_v0 = vshll.u32 %v3987_v56, 16  ;;  %v716_v8 = vshrl.u32 %v3987_v56, 16  ;;  %v734_v32 = vrot.slane %v3987_v56, 1  ;;  %v777_v53 = vrot.slane %v4017_v36, 1 }
  0x43   : > { %613 = vrot.lane.b32.xlu2 %v609_v16, %s3775_s15  ;;  %v720_v9 = vrot.slane %v718_v0, 1  ;;  %v736_v41 = vsel %vm521_vm1, %v734_v32, %v735_v34 }
  0x44   : > { %611 = vrot.lane.b32.xlu0 %v610_v27, %s3775_s15  ;;  %v4008_v27 = vpack.c.b16 %v753_v15, %v752_v14 }
  0x45   : > { %606 = vrot.lane.b32.xlu1 %v603_v28, %s3774_s29  ;;  %v721_v16 = vor.u32 %v720_v9, %v716_v8  ;;  %v490_v28 = vpack.c.bf16 %v466_v17, %v466_v17  ;;  %v769_v8 = vshrl.u32 %v4017_v36, 16 }
  0x46   : > { %v758_v44 = vshrl.u32 %v4008_v27, 16  ;;  %v776_v52 = vrot.slane %v4008_v27, 1 }
  0x47   : > { %v726_v30 = vsel %vm501_vm0, %v721_v16, %v725_v25  ;;  %v794_v39 = vunpack.c.l.b16 %v490_v28 }
  0x48   : > { %v778_v58 = vsel %vm521_vm1, %v776_v52, %v777_v53 }
  0x49   : > { %v4024_v49 = vpack.c.b16 %v795_v40, %v794_v39 }
  0x4b   : > { %648 = vrot.lane.b32.xlu2 %v645_v54, %s3774_s29  ;;  %v802_v55 = vshll.u32 %v4024_v49, 16  ;;  %v800_v59 = vshrl.u32 %v4024_v49, 16  ;;  %v818_v14 = vrot.slane %v4024_v49, 1 }
  0x4c   : > { %646 = vrot.lane.b32.xlu0 %v642_v46, %s3774_s29  ;;  %v765_v46 = vshll.u32 %v4017_v36, 16 }
  0x4d   : > { %653 = vrot.lane.b32.xlu1 %v652_v47, %s3775_s15  ;;  %v796_v47 = vunpack.c.l.b16 %v492_v38  ;;  %v804_v61 = vrot.slane %v802_v55, 1 }
  0x4e   : > { %v767_v51 = vrot.slane %v765_v46, 1 }
  0x4f   : > { %v4030_v54 = vpack.c.b16 %v796_v47, %v796_v47  ;;  %v805_v63 = vor.u32 %v804_v61, %v800_v59 }
  0x50   : > { %v771_v12 = vor.u32 %v769_v8, %v767_v51 }
  0x51   : > { %v807_v62 = vshll.u32 %v4030_v54, 16  ;;  %v811_v3 = vshrl.u32 %v4030_v54, 16  ;;  %v819_v9 = vrot.slane %v4030_v54, 1 }
  0x53   : > { %695 = vrot.lane.b32.xlu2 %v694_v7, %s3775_s15  ;;  %v809_v0 = vrot.slane %v807_v62, 1  ;;  %v820_v15 = vsel %vm521_vm1, %v818_v14, %v819_v9 }
  0x54   : > { %655 = vrot.lane.b32.xlu0 %v651_v37, %s3775_s15  ;;  %v760_v37 = vshll.u32 %v4008_v27, 16 }
  0x55   : > { %688 = vrot.lane.b32.xlu1 %v684_v4, %s3774_s29  ;;  %v913_v4 = vunpack.c.l.b16 %v903_v2  ;;  %v813_v5 = vor.u32 %v811_v3, %v809_v0 }
  0x56   : > { %v762_v45 = vrot.slane %v760_v37, 1 }
  0x57   : > { %v915_v7 = vpack.c.b16 %v913_v4, %v913_v4 }
  0x58   : > { %v763_v50 = vor.u32 %v762_v45, %v758_v44 }
  0x59   : > { %v938_v11 = vsel %vm835_vm2, %v915_v7, 0 }
  0x5a   : > { %v768_v57 = vsel %vm501_vm0, %v763_v50, %v767_v51  ;;  %946 = vmatpush.bf16.msra.mxu0 %v938_v11 }
  0x5b   : > { %730 = vrot.lane.b32.xlu2 %v726_v30, %s3774_s29 }
  0x5c   : > { %690 = vrot.lane.b32.xlu0 %v687_v24, %s3774_s29 }
  0x5d   : > { %697 = vrot.lane.b32.xlu1 %v693_v1, %s3775_s15  ;;  %v810_v1 = vsel %vm501_vm0, %v805_v63, %v809_v0 }
  0x5e   : > { %947 = vmatpush.bf16.msra.mxu0 %v3555_v13 }
  0x63   : > { %739 = vrot.lane.b32.xlu2 %v735_v34, %s3775_s15 }
  0x64   : > { %737 = vrot.lane.b32.xlu0 %v736_v41, %s3775_s15 }
  0x65   : > { %732 = vrot.lane.b32.xlu1 %v729_v43, %s3774_s29 }
  0x6b   : > { %774 = vrot.lane.b32.xlu2 %v771_v12, %s3774_s29 }
  0x6c   : > { %772 = vrot.lane.b32.xlu0 %v768_v57, %s3774_s29 }
  0x6d   : > { %779 = vrot.lane.b32.xlu1 %v778_v58, %s3775_s15 }
  0x73   : > { %821 = vrot.lane.b32.xlu2 %v820_v15, %s3775_s15 }
  0x74   : > { %781 = vrot.lane.b32.xlu0 %v777_v53, %s3775_s15 }
  0x75   : > { %814 = vrot.lane.b32.xlu1 %v810_v1, %s3774_s29 }
  0x7c   : > { %816 = vrot.lane.b32.xlu0 %v813_v5, %s3774_s29  ;;  %s3005_s29 = sshll.u32 %s436_s1, 4  ;;  %s3006_s29 = int_to_ptr.vmem [resolvable:$true] %s3005_s29 }
  0x7d   : > { %823 = vrot.lane.b32.xlu1 %v819_v9, %s3775_s15 }
  0x85   : > { %v520_v24 = vpop.permute.xlu2 %519 }
  0x86   : > { %v533_v32 = vsel %vm529_vm3, %v3910_v21, %v520_v24 }
  0x8d   : > { %v528_v31 = vpop.permute.xlu2 %527 }
  0x95   : > { %v605_v38 = vpop.permute.xlu2 %604 }
  0x96   : > { %v616_v40 = vsel %vm529_vm3, %v3930_v48, %v605_v38 }
  0x9d   : > { %v614_v51 = vpop.permute.xlu2 %613 }
  0x9e   : > { %v518_v16 = vpop.permute.xlu0 %517 }
  0x9f   : > { %v563_v17 = vpop.permute.xlu1 %562  ;;  %v531_v19 = vsel %vm529_vm3, %v3908_v20, %v518_v16  ;;  %v538_v20 = vsel %vm534_vm4, %v533_v32, %v528_v31 }
  0xa0   : > { %v574_v28 = vsel %vm529_vm3, %v3912_v22, %v563_v17 }
  0xa5   : > { %v649_v61 = vpop.permute.xlu2 %648 }
  0xa6   : > { %v526_v25 = vpop.permute.xlu0 %525  ;;  %v660_v0 = vsel %vm529_vm3, %v3960_v18, %v649_v61 }
  0xa7   : > { %v536_v26 = vsel %vm534_vm4, %v531_v19, %v526_v25  ;;  %v570_v29 = vpop.permute.xlu1 %569 }
  0xa8   : > { %3078 = vmatmul.msk.bf16.vlgmr.msra.gmra.mxu0 %vm917_vm5, %v536_v26  ;;  %v578_v30 = vsel %vm534_vm4, %v574_v28, %v570_v29  ;;  %v3562_v29 = vld [vmem:[%s4991_s3 + $0x30] sm:$0xff] }
  0xa9   : > { %v836_v34 = vrot.slane %v578_v30, 7 }
  0xab   : > { %v876_v37 = vsel %vm835_vm2, %v538_v20, %v836_v34  ;;  %v3561_v20 = vld [vmem:[%s4991_s3 + $0x28] sm:$0xff] }
  0xad   : > { %v696_v3 = vpop.permute.xlu2 %695 }
  0xae   : > { %v565_v35 = vpop.permute.xlu0 %564 }
  0xaf   : > { %v572_v39 = vpop.permute.xlu1 %571  ;;  %v576_v22 = vsel %vm529_vm3, %v3914_v23, %v565_v35 }
  0xb0   : > { %v580_v43 = vsel %vm534_vm4, %v576_v22, %v572_v39 }
  0xb1   : > { %v837_v44 = vrot.slane %v580_v43, 7 }
  0xb3   : > { %v838_v47 = vsel %vm835_vm2, %v836_v34, %v837_v44  ;;  %v3570_v44 = vld [vmem:[%s4991_s3 + $0x70] sm:$0xff] }
  0xb6   : > { %v612_v41 = vpop.permute.xlu0 %611 }
  0xb7   : > { %v620_v21 = vsel %vm534_vm4, %v616_v40, %v612_v41  ;;  %v607_v46 = vpop.permute.xlu1 %606  ;;  %v3578_v41 = vld [vmem:[%s4991_s3 + $0xb0] sm:$0xff] }
  0xb8   : > { %3079 = vmatmul.msk.bf16.gmra.mxu0 %vm917_vm5, %v876_v37  ;;  %v842_v45 = vrot.slane %v620_v21, 6  ;;  %v618_v23 = vsel %vm529_vm3, %v3941_v60, %v607_v46  ;;  %v3559_v21 = vld [vmem:[%s4991_s3 + $0x18] sm:$0xff] }
  0xb9   : > { %v622_v52 = vsel %vm534_vm4, %v618_v23, %v614_v51  ;;  %v3558_v51 = vld [vmem:[%s4991_s3 + $0x10] sm:$0xff]  ;;  %v3569_v23 = vld [vmem:[%s4991_s3 + $0x68] sm:$0xff] }
  0xba   : > { %v880_v50 = vsel %vm841_vm6, %v838_v47, %v842_v45  ;;  %v843_v57 = vrot.slane %v622_v52, 6 }
  0xbc   : > { %v844_v62 = vsel %vm841_vm6, %v842_v45, %v843_v57 }
  0xbe   : > { %v647_v48 = vpop.permute.xlu0 %646 }
  0xbf   : > { %v658_v53 = vsel %vm529_vm3, %v3951_v10, %v647_v48  ;;  %v654_v55 = vpop.permute.xlu1 %653 }
  0xc0   : > { %v662_v58 = vsel %vm534_vm4, %v658_v53, %v654_v55  ;;  %v3576_v53 = vld [vmem:[%s4991_s3 + $0xa0] sm:$0xff]  ;;  %v3557_v55 = vld [vmem:[%s4991_s3 + $0x8] sm:$0xff] }
  0xc1   : > { %v848_v59 = vrot.slane %v662_v58, 5 }
  0xc3   : > { %v884_v63 = vsel %vm847_vm7, %v844_v62, %v848_v59  ;;  %v3556_v62 = vld [vmem:[%s4991_s3] sm:$0xff] }
  0xc6   : > { %v656_v60 = vpop.permute.xlu0 %655 }
  0xc7   : > { %v689_v1 = vpop.permute.xlu1 %688  ;;  %v664_v2 = vsel %vm534_vm4, %v660_v0, %v656_v60  ;;  %v3567_v60 = vld [vmem:[%s4991_s3 + $0x58] sm:$0xff]  ;;  %v3574_v0 = vld [vmem:[%s4991_s3 + $0x90] sm:$0xff] }
  0xc8   : > { %3080 = vmatmul.msk.bf16.gmra.mxu0 %vm917_vm5, %v880_v50  ;;  %v700_v10 = vsel %vm529_vm3, %v3967_v33, %v689_v1  ;;  %v849_v4 = vrot.slane %v664_v2, 5  ;;  %v731_v33 = vpop.permute.xlu2 %730  ;;  %v3577_v50 = vld [vmem:[%s4991_s3 + $0xa8] sm:$0xff] }
  0xc9   : > { %v704_v5 = vsel %vm534_vm4, %v700_v10, %v696_v3  ;;  %v742_v14 = vsel %vm529_vm3, %v3987_v56, %v731_v33  ;;  %v3579_v56 = vld [vmem:[%s4991_s3 + $0xb8] sm:$0xff]  ;;  %v3566_v10 = vld [vmem:[%s4991_s3 + $0x50] sm:$0xff]  ;;  %v3573_v3 = vld [vmem:[%s4991_s3 + $0x88] sm:$0xff] }
  0xca   : > { %v854_v7 = vrot.slane %v704_v5, 4  ;;  %v850_v9 = vsel %vm847_vm7, %v848_v59, %v849_v4  ;;  %1582 = vmatpush.bf16.msra.mxu3 %v3579_v56  ;;  %v3575_v59 = vld [vmem:[%s4991_s3 + $0x98] sm:$0xff]  ;;  %v3565_v4 = vld [vmem:[%s4991_s3 + $0x48] sm:$0xff] }
  0xcc   : > { %v888_v11 = vsel %vm853_vm8, %v850_v9, %v854_v7 }
  0xce   : > { %v691_v8 = vpop.permute.xlu0 %690  ;;  %1583 = vmatpush.bf16.msra.mxu3 %v3578_v41 }
  0xcf   : > { %v698_v18 = vpop.permute.xlu1 %697  ;;  %v702_v12 = vsel %vm529_vm3, %v3975_v42, %v691_v8  ;;  %v3563_v42 = vld [vmem:[%s4991_s3 + $0x38] sm:$0xff]  ;;  %v3572_v8 = vld [vmem:[%s4991_s3 + $0x80] sm:$0xff] }
  0xd0   : > { %v706_v13 = vsel %vm534_vm4, %v702_v12, %v698_v18  ;;  %v740_v28 = vpop.permute.xlu2 %739  ;;  %1484 = vmatpush.bf16.msra.mxu1 %v3563_v42  ;;  %v4203_v12 = vld [vmem:[%s4992_s2] ss:$0 sm:$0xff]  ;;  %s3003_s2 = scalar_lea.hbm %s4981_s13, %s3891_s20 }
  0xd1   : > { %v855_v16 = vrot.slane %v706_v13, 4  ;;  %s3007_s15 = sshll.u32 %s3003_s2, 4  ;;  %s3008_s15 = int_to_ptr.hbm [resolvable:$true] %s3007_s15 }
  0xd2   : > { %1584 = vmatpush.bf16.msra.mxu3 %v3577_v50 }
  0xd3   : > { %v856_v25 = vsel %vm853_vm8, %v854_v7, %v855_v16 }
  0xd4   : > { %1485 = vmatpush.bf16.msra.mxu1 %v3562_v29 }
  0xd6   : > { %v738_v15 = vpop.permute.xlu0 %737  ;;  %1585 = vmatpush.bf16.msra.mxu3 %v3576_v53 }
  0xd7   : > { %v746_v17 = vsel %vm534_vm4, %v742_v14, %v738_v15  ;;  %v733_v24 = vpop.permute.xlu1 %732 }
  0xd8   : > { %3081 = vmatmul.msk.bf16.gmra.mxu0 %vm917_vm5, %v884_v63  ;;  %v860_v19 = vrot.slane %v746_v17, 3  ;;  %v744_v30 = vsel %vm529_vm3, %v3997_v6, %v733_v24  ;;  %1486 = vmatpush.bf16.msra.mxu1 %v3561_v20  ;;  %v775_v22 = vpop.permute.xlu2 %774  ;;  %v3560_v6 = vld [vmem:[%s4991_s3 + $0x20] sm:$0xff] }
  0xd9   : > { %v748_v32 = vsel %vm534_vm4, %v744_v30, %v740_v28  ;;  %v786_v45 = vsel %vm529_vm3, %v4017_v36, %v775_v22 }
  0xda   : > { %v892_v26 = vsel %vm859_vm9, %v856_v25, %v860_v19  ;;  %v861_v37 = vrot.slane %v748_v32, 3  ;;  %1586 = vmatpush.bf16.msra.mxu3 %v3575_v59 }
  0xdc   : > { %v862_v40 = vsel %vm859_vm9, %v860_v19, %v861_v37  ;;  %1487 = vmatpush.bf16.msra.mxu1 %v3560_v6 }
  0xde   : > { %v773_v31 = vpop.permute.xlu0 %772  ;;  %1587 = vmatpush.bf16.msra.mxu3 %v3574_v0 }
  0xdf   : > { %v784_v34 = vsel %vm529_vm3, %v4008_v27, %v773_v31  ;;  %v780_v35 = vpop.permute.xlu1 %779  ;;  %v3571_v27 = vld [vmem:[%s4991_s3 + $0x78] sm:$0xff] }
  0xe0   : > { %v788_v38 = vsel %vm534_vm4, %v784_v34, %v780_v35  ;;  %1533 = vmatpush.bf16.msra.mxu2 %v3571_v27  ;;  %1488 = vmatpush.bf16.msra.mxu1 %v3559_v21  ;;  %v822_v52 = vpop.permute.xlu2 %821 }
  0xe1   : > { %v866_v39 = vrot.slane %v788_v38, 2 }
  0xe2   : > { %1588 = vmatpush.bf16.msra.mxu3 %v3573_v3 }
  0xe3   : > { %v896_v43 = vsel %vm865_vm10, %v862_v40, %v866_v39 }
  0xe4   : > { %1534 = vmatpush.bf16.msra.mxu2 %v3570_v44  ;;  %1489 = vmatpush.bf16.msra.mxu1 %v3558_v51 }
  0xe6   : > { %v782_v47 = vpop.permute.xlu0 %781  ;;  %1589 = vmatpush.bf16.msra.mxu3 %v3572_v8 }
  0xe7   : > { %v815_v46 = vpop.permute.xlu1 %814  ;;  %v790_v36 = vsel %vm534_vm4, %v786_v45, %v782_v47 }
  0xe8   : > { %3082 = vmatmul.msk.bf16.gmra.mxu0 %vm917_vm5, %v888_v11  ;;  %v826_v48 = vsel %vm529_vm3, %v4024_v49, %v815_v46  ;;  %1535 = vmatpush.bf16.msra.mxu2 %v3569_v23  ;;  %v867_v57 = vrot.slane %v790_v36, 2  ;;  %v3568_v49 = vld [vmem:[%s4991_s3 + $0x60] sm:$0xff] }
  0xe9   : > { %v830_v58 = vsel %vm534_vm4, %v826_v48, %v822_v52  ;;  %1490 = vmatpush.bf16.msra.mxu1 %v3557_v55  ;;  %v3564_v11 = vld [vmem:[%s4991_s3 + $0x40] sm:$0xff]  ;;  %s3724_s3 = sshra.s32 %s3008_s15, 4  ;;  %s3725_s3 = int_to_ptr.hbm [resolvable:$true] %s3724_s3 }
  0xea   : > { %v871_v61 = vrot.slane %v830_v58, 1  ;;  %v868_v63 = vsel %vm865_vm10, %v866_v39, %v867_v57  ;;  %p3731_p0 = scmp.lt.s32.totalorder %s3725_s3, %s4981_s13 }
  0xec   : > { %1536 = vmatpush.bf16.msra.mxu2 %v3568_v49  ;;  %v900_v1 = vsel %vm521_vm1, %v868_v63, %v871_v61 }
  0xed   : > { %1491 = vmatpush.bf16.msra.mxu1 %v3556_v62 }
  0xee   : > { %v817_v2 = vpop.permute.xlu0 %816 }
  0xef   : > { %v828_v5 = vsel %vm529_vm3, %v4030_v54, %v817_v2  ;;  %v824_v7 = vpop.permute.xlu1 %823  ;;  %vm2465_vm3 = vcmask 261120  }
  0xf0   : > { %1537 = vmatpush.bf16.msra.mxu2 %v3567_v60  ;;  %v832_v9 = vsel %vm534_vm4, %v828_v5, %v824_v7  ;;  %vm4802_vm4 = vmand %vm2264_vm15, %vm501_vm0 }
  0xf1   : > { %v872_v18 = vrot.slane %v832_v9, 1 }
  0xf3   : > { %v873_v33 = vsel %vm521_vm1, %v871_v61, %v872_v18 }
  0xf4   : > { %1538 = vmatpush.bf16.msra.mxu2 %v3566_v10 }
  0xf8   : > { %3083 = vmatmul.msk.bf16.gmra.mxu0 %vm917_vm5, %v892_v26  ;;  %1539 = vmatpush.bf16.msra.mxu2 %v3565_v4 }
  0xfc   : > { %1540 = vmatpush.bf16.msra.mxu2 %v3564_v11 }
 0x108   : > { %3084 = vmatmul.msk.bf16.gmra.mxu0 %vm917_vm5, %v896_v43 }
 0x118   : > { %3085 = vmatmul.msk.bf16.gmra.mxu0 %vm917_vm5, %v900_v1 }
 0x125   : > { %v949_v54 = vpop.f32.mrf.mxu0 }
 0x126   : > { %v950_v13 = vadd.f32 %v4203_v12, %v949_v54 }
 0x128   : > { %3086 = vmatmul.msk.bf16.gmra.mxu0 %vm917_vm5, %v873_v33  ;;  %v994_v14 = vmax.f32 %v950_v13, 0.0 }
 0x12a   : > { %v1012_v17 = vpack.c.bf16 %v994_v14, %v994_v14 }
 0x12c   : > { %v1032_v25 = vunpack.c.l.b16 %v1012_v17 }
 0x12d   : > { %v951_v15 = vpop.f32.mrf.mxu0 }
 0x12e   : > { %v952_v16 = vadd.f32 %v4203_v12, %v951_v15 }
 0x130   : > { %v995_v19 = vmax.f32 %v952_v16, 0.0 }
 0x132   : > { %v1013_v24 = vpack.c.bf16 %v995_v19, %v995_v19 }
 0x134   : > { %v1033_v26 = vunpack.c.l.b16 %v1013_v24 }
 0x135   : > { %v954_v42 = vpop.f32.mrf.mxu0 }
 0x136   : > { %v1034_v56 = vpack.c.b16 %v1033_v26, %v1032_v25  ;;  %v955_v28 = vadd.f32 %v4203_v12, %v954_v42 }
 0x138   : > { %v996_v29 = vmax.f32 %v955_v28, 0.0  ;;  %1492 = vmatmul.bf16.vlgmr.msra.gmra.mxu1 %v1034_v56  ;;  %v1042_v31 = vshll.u32 %v1034_v56, 16  ;;  %v1052_v38 = vrot.slane %v1034_v56, 1  ;;  %v1040_v6 = vshrl.u32 %v1034_v56, 16 }
 0x13a   : > { %v1014_v30 = vpack.c.bf16 %v996_v29, %v996_v29  ;;  %v1044_v37 = vrot.slane %v1042_v31, 1 }
 0x13c   : > { %v1037_v32 = vunpack.c.l.b16 %v1014_v30  ;;  %v1045_v43 = vor.u32 %v1044_v37, %v1040_v6 }
 0x13d   : > { %v956_v34 = vpop.f32.mrf.mxu0 }
 0x13e   : > { %v1038_v35 = vpack.c.b16 %v1037_v32, %v1037_v32  ;;  %v957_v20 = vadd.f32 %v4203_v12, %v956_v34 }
 0x140   : > { %v997_v39 = vmax.f32 %v957_v20, 0.0  ;;  %v1053_v22 = vrot.slane %v1038_v35, 1  ;;  %v1047_v40 = vshll.u32 %v1038_v35, 16 }
 0x142   : > { %v1015_v27 = vpack.c.bf16 %v997_v39, %v997_v39  ;;  %v1054_v41 = vsel %vm521_vm1, %v1052_v38, %v1053_v22  ;;  %v1049_v21 = vrot.slane %v1047_v40, 1 }
 0x143   : > { %1590 = vmatmul.bf16.vlgmr.msra.gmra.mxu3 %v1054_v41 }
 0x144   : > { %v1058_v44 = vunpack.c.l.b16 %v1015_v27  ;;  %v1050_v45 = vsel %vm501_vm0, %v1045_v43, %v1049_v21 }
 0x145   : > { %v959_v46 = vpop.f32.mrf.mxu0  ;;  %1541 = vmatmul.bf16.vlgmr.msra.gmra.mxu2 %v1050_v45 }
 0x146   : > { %v1060_v47 = vpack.c.b16 %v1058_v44, %v1037_v32  ;;  %v960_v50 = vadd.f32 %v4203_v12, %v959_v46 }
 0x148   : > { %v998_v51 = vmax.f32 %v960_v50, 0.0  ;;  %v1065_v23 = vshll.u32 %v1060_v47, 16  ;;  %v1063_v58 = vshrl.u32 %v1060_v47, 16  ;;  %v1077_v59 = vrot.slane %v1060_v47, 1 }
 0x14a   : > { %v1016_v48 = vpack.c.bf16 %v998_v51, %v998_v51  ;;  %v1067_v52 = vrot.slane %v1065_v23, 1 }
 0x14c   : > { %v1059_v36 = vunpack.c.l.b16 %v1016_v48  ;;  %v1068_v63 = vor.u32 %v1067_v52, %v1063_v58 }
 0x14d   : > { %v961_v53 = vpop.f32.mrf.mxu0 }
 0x14e   : > { %v1061_v55 = vpack.c.b16 %v1059_v36, %v1059_v36  ;;  %v962_v57 = vadd.f32 %v4203_v12, %v961_v53 }
 0x150   : > { %v999_v49 = vmax.f32 %v962_v57, 0.0  ;;  %v1078_v61 = vrot.slane %v1061_v55, 1  ;;  %v1070_v62 = vshll.u32 %v1061_v55, 16  ;;  %v1074_v60 = vshrl.u32 %v1061_v55, 16 }
 0x152   : > { %v1017_v0 = vpack.c.bf16 %v999_v49, %v999_v49  ;;  %v1079_v1 = vsel %vm521_vm1, %v1077_v59, %v1078_v61  ;;  %v1228_v10 = vrot.slane %v1078_v61, 1  ;;  %v1072_v2 = vrot.slane %v1070_v62, 1 }
 0x153   : > { %v1227_v3 = vrot.slane %v1079_v1, 1  ;;  %1497 = vmatmul.bf16.gmra.mxu1 %v1079_v1 }
 0x154   : > { %v1082_v4 = vunpack.c.l.b16 %v1017_v0  ;;  %v1073_v5 = vsel %vm501_vm0, %v1068_v63, %v1072_v2  ;;  %v1076_v7 = vor.u32 %v1074_v60, %v1072_v2 }
 0x155   : > { %v964_v8 = vpop.f32.mrf.mxu0  ;;  %v1229_v9 = vsel %vm521_vm1, %v1227_v3, %v1228_v10  ;;  %v1224_v11 = vrot.slane %v1073_v5, 1 }
 0x156   : > { %v965_v18 = vadd.f32 %v4203_v12, %v964_v8  ;;  %1595 = vmatmul.bf16.gmra.mxu3 %v1229_v9  ;;  %v1225_v54 = vrot.slane %v1076_v7, 1  ;;  %v1084_v33 = vpack.c.b16 %v1082_v4, %v1059_v36 }
 0x158   : > { %v1000_v13 = vmax.f32 %v965_v18, 0.0  ;;  %v1226_v14 = vsel %vm521_vm1, %v1224_v11, %v1225_v54  ;;  %v1089_v16 = vshll.u32 %v1084_v33, 16  ;;  %v1233_v26 = vrot.slane %v1084_v33, 2 }
 0x159   : > { %1546 = vmatmul.bf16.gmra.mxu2 %v1226_v14  ;;  %v1101_v42 = vrot.slane %v1084_v33, 1  ;;  %v1087_v32 = vshrl.u32 %v1084_v33, 16 }
 0x15a   : > { %v1018_v15 = vpack.c.bf16 %v1000_v13, %v1000_v13  ;;  %v1091_v56 = vrot.slane %v1089_v16, 1 }
 0x15c   : > { %v1083_v17 = vunpack.c.l.b16 %v1018_v15  ;;  %v1092_v39 = vor.u32 %v1091_v56, %v1087_v32 }
 0x15d   : > { %v966_v19 = vpop.f32.mrf.mxu0 }
 0x15e   : > { %v1085_v24 = vpack.c.b16 %v1083_v17, %v1083_v17  ;;  %v967_v25 = vadd.f32 %v4203_v12, %v966_v19 }
 0x160   : > { %v1001_v28 = vmax.f32 %v967_v25, 0.0  ;;  %v1234_v29 = vrot.slane %v1085_v24, 2  ;;  %v1102_v30 = vrot.slane %v1085_v24, 1  ;;  %v1094_v31 = vshll.u32 %v1085_v24, 16 }
 0x161   : > { %v1098_v6 = vshrl.u32 %v1085_v24, 16 }
 0x162   : > { %v1019_v34 = vpack.c.bf16 %v1001_v28, %v1001_v28  ;;  %v1235_v35 = vsel %vm865_vm10, %v1233_v26, %v1234_v29  ;;  %v1103_v20 = vsel %vm521_vm1, %v1101_v42, %v1102_v30  ;;  %v1240_v37 = vrot.slane %v1102_v30, 2 }
 0x163   : > { %1502 = vmatmul.bf16.gmra.mxu1 %v1235_v35  ;;  %v1239_v38 = vrot.slane %v1103_v20, 2  ;;  %v1096_v22 = vrot.slane %v1094_v31, 1 }
 0x164   : > { %v1106_v40 = vunpack.c.l.b16 %v1019_v34 }
 0x165   : > { %v969_v27 = vpop.f32.mrf.mxu0  ;;  %v1241_v41 = vsel %vm865_vm10, %v1239_v38, %v1240_v37  ;;  %v1097_v43 = vsel %vm501_vm0, %v1092_v39, %v1096_v22  ;;  %v1100_v21 = vor.u32 %v1098_v6, %v1096_v22 }
 0x166   : > { %v1108_v44 = vpack.c.b16 %v1106_v40, %v1083_v17  ;;  %v970_v45 = vadd.f32 %v4203_v12, %v969_v27  ;;  %1600 = vmatmul.bf16.gmra.mxu3 %v1241_v41  ;;  %v1236_v46 = vrot.slane %v1097_v43, 2 }
 0x167   : > { %v1237_v47 = vrot.slane %v1100_v21, 2 }
 0x168   : > { %v1002_v50 = vmax.f32 %v970_v45, 0.0  ;;  %v1113_v23 = vshll.u32 %v1108_v44, 16  ;;  %v1111_v57 = vshrl.u32 %v1108_v44, 16  ;;  %v1245_v49 = vrot.slane %v1108_v44, 3 }
 0x169   : > { %v1238_v51 = vsel %vm865_vm10, %v1236_v46, %v1237_v47 }
 0x16a   : > { %v1020_v48 = vpack.c.bf16 %v1002_v50, %v1002_v50  ;;  %1551 = vmatmul.bf16.gmra.mxu2 %v1238_v51  ;;  %v1115_v53 = vrot.slane %v1113_v23, 1 }
 0x16c   : > { %v1107_v36 = vunpack.c.l.b16 %v1020_v48  ;;  %v1116_v63 = vor.u32 %v1115_v53, %v1111_v57 }
 0x16d   : > { %v971_v52 = vpop.f32.mrf.mxu0 }
 0x16e   : > { %v1109_v55 = vpack.c.b16 %v1107_v36, %v1107_v36  ;;  %v972_v58 = vadd.f32 %v4203_v12, %v971_v52  ;;  %v1125_v10 = vpack.c.b16 %v1107_v36, %v1106_v40 }
 0x170   : > { %v1246_v59 = vrot.slane %v1109_v55, 3  ;;  %v1118_v61 = vshll.u32 %v1109_v55, 16  ;;  %v1122_v0 = vshrl.u32 %v1109_v55, 16  ;;  %v1003_v1 = vmax.f32 %v972_v58, 0.0 }
 0x172   : > { %v1247_v62 = vsel %vm859_vm9, %v1245_v49, %v1246_v59  ;;  %v1120_v60 = vrot.slane %v1118_v61, 1  ;;  %v1021_v9 = vpack.c.bf16 %v1003_v1, %v1003_v1 }
 0x173   : > { %1507 = vmatmul.bf16.gmra.mxu1 %v1247_v62 }
 0x174   : > { %v1121_v2 = vsel %vm501_vm0, %v1116_v63, %v1120_v60  ;;  %v1124_v3 = vor.u32 %v1122_v0, %v1120_v60  ;;  %v1129_v33 = vunpack.c.l.b16 %v1021_v9 }
 0x175   : > { %v974_v4 = vpop.f32.mrf.mxu0  ;;  %v1248_v5 = vrot.slane %v1121_v2, 3 }
 0x176   : > { %v975_v7 = vadd.f32 %v4203_v12, %v974_v4  ;;  %1605 = vmatmul.bf16.gmra.mxu3 %v1125_v10  ;;  %v1249_v8 = vrot.slane %v1124_v3, 3 }
 0x178   : > { %v1004_v11 = vmax.f32 %v975_v7, 0.0  ;;  %v1250_v18 = vsel %vm859_vm9, %v1248_v5, %v1249_v8 }
 0x17a   : > { %v1022_v54 = vpack.c.bf16 %v1004_v11, %v1004_v11  ;;  %1556 = vmatmul.bf16.gmra.mxu2 %v1250_v18 }
 0x17c   : > { %v1130_v13 = vunpack.c.l.b16 %v1022_v54 }
 0x17d   : > { %v976_v14 = vpop.f32.mrf.mxu0 }
 0x17e   : > { %v1131_v15 = vpack.c.b16 %v1130_v13, %v1129_v33  ;;  %v977_v16 = vadd.f32 %v4203_v12, %v976_v14 }
 0x180   : > { %v1005_v17 = vmax.f32 %v977_v16, 0.0  ;;  %v1139_v24 = vshll.u32 %v1131_v15, 16  ;;  %v1149_v29 = vrot.slane %v1131_v15, 1  ;;  %v1137_v32 = vshrl.u32 %v1131_v15, 16 }
 0x182   : > { %v1023_v19 = vpack.c.bf16 %v1005_v17, %v1005_v17  ;;  %v1141_v28 = vrot.slane %v1139_v24, 1 }
 0x183   : > { %1512 = vmatmul.bf16.gmra.mxu1 %v1131_v15 }
 0x184   : > { %v1134_v25 = vunpack.c.l.b16 %v1023_v19  ;;  %v1142_v37 = vor.u32 %v1141_v28, %v1137_v32 }
 0x185   : > { %v979_v26 = vpop.f32.mrf.mxu0 }
 0x186   : > { %v1135_v42 = vpack.c.b16 %v1134_v25, %v1134_v25  ;;  %v980_v56 = vadd.f32 %v4203_v12, %v979_v26 }
 0x188   : > { %v1006_v30 = vmax.f32 %v980_v56, 0.0  ;;  %v1150_v31 = vrot.slane %v1135_v42, 1  ;;  %v1144_v34 = vshll.u32 %v1135_v42, 16 }
 0x18a   : > { %v1024_v35 = vpack.c.bf16 %v1006_v30, %v1006_v30  ;;  %v1151_v20 = vsel %vm521_vm1, %v1149_v29, %v1150_v31  ;;  %v1146_v38 = vrot.slane %v1144_v34, 1 }
 0x18b   : > { %1610 = vmatmul.bf16.gmra.mxu3 %v1151_v20 }
 0x18c   : > { %v1155_v39 = vunpack.c.l.b16 %v1024_v35  ;;  %v1147_v22 = vsel %vm501_vm0, %v1142_v37, %v1146_v38 }
 0x18d   : > { %v981_v6 = vpop.f32.mrf.mxu0  ;;  %1561 = vmatmul.bf16.gmra.mxu2 %v1147_v22 }
 0x18e   : > { %v1157_v40 = vpack.c.b16 %v1155_v39, %v1134_v25  ;;  %v982_v27 = vadd.f32 %v4203_v12, %v981_v6 }
 0x190   : > { %v1007_v41 = vmax.f32 %v982_v27, 0.0  ;;  %v1162_v43 = vshll.u32 %v1157_v40, 16  ;;  %v1160_v51 = vshrl.u32 %v1157_v40, 16  ;;  %v1174_v48 = vrot.slane %v1157_v40, 1 }
 0x192   : > { %v1025_v21 = vpack.c.bf16 %v1007_v41, %v1007_v41  ;;  %v1164_v45 = vrot.slane %v1162_v43, 1 }
 0x194   : > { %v1156_v44 = vunpack.c.l.b16 %v1025_v21  ;;  %v1165_v53 = vor.u32 %v1164_v45, %v1160_v51 }
 0x195   : > { %v984_v46 = vpop.f32.mrf.mxu0 }
 0x196   : > { %v1158_v47 = vpack.c.b16 %v1156_v44, %v1156_v44  ;;  %v985_v50 = vadd.f32 %v4203_v12, %v984_v46 }
 0x198   : > { %v1008_v23 = vmax.f32 %v985_v50, 0.0  ;;  %v1175_v36 = vrot.slane %v1158_v47, 1  ;;  %v1167_v52 = vshll.u32 %v1158_v47, 16  ;;  %v1171_v55 = vshrl.u32 %v1158_v47, 16  ;;  %v3243_v50 = vld [vmem:[%s4973_s5 + $0x70] sm:$0xf] }
 0x19a   : > { %v1026_v57 = vpack.c.bf16 %v1008_v23, %v1008_v23  ;;  %v1176_v58 = vsel %vm521_vm1, %v1174_v48, %v1175_v36  ;;  %v1260_v49 = vrot.slane %v1175_v36, 1  ;;  %v1169_v59 = vrot.slane %v1167_v52, 1 }
 0x19b   : > { %v1259_v61 = vrot.slane %v1176_v58, 1  ;;  %1517 = vmatmul.bf16.gmra.mxu1 %v1176_v58 }
 0x19c   : > { %v1179_v62 = vunpack.c.l.b16 %v1026_v57  ;;  %v1170_v63 = vsel %vm501_vm0, %v1165_v53, %v1169_v59  ;;  %v1173_v60 = vor.u32 %v1171_v55, %v1169_v59 }
 0x19d   : > { %v986_v0 = vpop.f32.mrf.mxu0  ;;  %v1261_v1 = vsel %vm521_vm1, %v1259_v61, %v1260_v49  ;;  %v1256_v10 = vrot.slane %v1170_v63, 1 }
 0x19e   : > { %v987_v2 = vadd.f32 %v4203_v12, %v986_v0  ;;  %1615 = vmatmul.bf16.gmra.mxu3 %v1261_v1  ;;  %v1257_v3 = vrot.slane %v1173_v60, 1  ;;  %v1181_v4 = vpack.c.b16 %v1179_v62, %v1156_v44  ;;  %v4262_v0 = vld [vmem:[%s4993_s4] ss:$0 sm:$0xff]  ;;  %v3594_v1 = vld [vmem:[%s4973_s5 + $0x74] sm:$0xf]  ;;  %s3726_s4 = scalar_lea.hbm %s3725_s3, 8 }
 0x19f   : > { %p3727_p11 = scmp.ne.s32.totalorder %s3725_s3, %s3726_s4  ;;  %p3732_p1 = scmp.lt.s32.totalorder %s3730_s24, %s3726_s4 }
 0x1a0   : > { %v1009_v5 = vmax.f32 %v987_v2, 0.0  ;;  %v1258_v7 = vsel %vm521_vm1, %v1256_v10, %v1257_v3  ;;  %v1186_v9 = vshll.u32 %v1181_v4, 16  ;;  %v1265_v13 = vrot.slane %v1181_v4, 2  ;;  %v3245_v10 = vld [vmem:[%s4973_s5 + $0x78] sm:$0xf0] }
 0x1a1   : > { %1566 = vmatmul.bf16.gmra.mxu2 %v1258_v7  ;;  %v1198_v14 = vrot.slane %v1181_v4, 1  ;;  %v1184_v25 = vshrl.u32 %v1181_v4, 16  ;;  %v3610_v2 = vld [vmem:[%s4973_s5 + $0xf4] sm:$0xf]  ;;  %v3248_v3 = vor.u32 %v3594_v1, %v3245_v10  ;;  %v3309_v4 = vld [vmem:[%s4973_s5 + $0xf8] sm:$0xf0]  ;;  %p3728_p12 = pnand %p3727_p11, %p3881_p5  ;;  %p3733_p2 = por %p3732_p1, %p3731_p0 }
 0x1a2   : > { %v1027_v8 = vpack.c.bf16 %v1009_v5, %v1009_v5  ;;  %v1188_v15 = vrot.slane %v1186_v9, 1  ;;  %v3312_v5 = vor.u32 %v3610_v2, %v3309_v4  ;;  %v3587_v4 = vld [vmem:[%s4973_s5 + $0x34] sm:$0xf0] }
 0x1a3   : > { %2094 = vmatpush.bf16.msrb.mxu2 %v3248_v3  ;;  %v3211_v3 = vld [vmem:[%s4973_s5 + $0x30] sm:$0xf]  ;;  %p3729_p13 = pneg %p3728_p12 }
 0x1a4   : > { %v1180_v11 = vunpack.c.l.b16 %v1027_v8  ;;  %v1189_v30 = vor.u32 %v1188_v15, %v1184_v25  ;;  %2113 = vmatpush.bf16.msrb.mxu3 %v3312_v5 }
 0x1a5   : > { %v989_v18 = vpop.f32.mrf.mxu0  ;;  %p3734_p3 = pnand %p3733_p2, %p3729_p13 }
 0x1a6   : > { %v1182_v54 = vpack.c.b16 %v1180_v11, %v1180_v11  ;;  %v990_v33 = vadd.f32 %v4203_v12, %v989_v18 }
 0x1a8   : > { %v1010_v16 = vmax.f32 %v990_v33, 0.0  ;;  %v1266_v17 = vrot.slane %v1182_v54, 2  ;;  %v1199_v19 = vrot.slane %v1182_v54, 1  ;;  %v1191_v24 = vshll.u32 %v1182_v54, 16  ;;  %v3235_v33 = vld [vmem:[%s4973_s5 + $0x60] sm:$0xf] }
 0x1a9   : > { %v1195_v32 = vshrl.u32 %v1182_v54, 16 }
 0x1aa   : > { %v1028_v26 = vpack.c.bf16 %v1010_v16, %v1010_v16  ;;  %v1267_v42 = vsel %vm865_vm10, %v1265_v13, %v1266_v17  ;;  %v1200_v56 = vsel %vm521_vm1, %v1198_v14, %v1199_v19  ;;  %v1272_v28 = vrot.slane %v1199_v19, 2  ;;  %v3593_v13 = vld [vmem:[%s4973_s5 + $0x64] sm:$0xf0]  ;;  %v3307_v14 = vld [vmem:[%s4973_s5 + $0xf0] sm:$0xf] }
 0x1ab   : > { %1522 = vmatmul.bf16.gmra.mxu1 %v1267_v42  ;;  %v1271_v29 = vrot.slane %v1200_v56, 2  ;;  %v1193_v31 = vrot.slane %v1191_v24, 1  ;;  %v3236_v15 = vor.u32 %v3593_v13, %v3235_v33  ;;  %v3611_v16 = vld [vmem:[%s4973_s5 + $0xf4] sm:$0xf0]  ;;  %v3213_v33 = vld [vmem:[%s4973_s5 + $0x38] sm:$0xf0] }
 0x1ac   : > { %v1203_v34 = vunpack.c.l.b16 %v1028_v26  ;;  %v3308_v19 = vor.u32 %v3611_v16, %v3307_v14  ;;  %v3285_v16 = vld [vmem:[%s4973_s5 + $0xc8] sm:$0xf0] }
 0x1ad   : > { %v991_v35 = vpop.f32.mrf.mxu0  ;;  %v1273_v20 = vsel %vm865_vm10, %v1271_v29, %v1272_v28  ;;  %v1194_v37 = vsel %vm501_vm0, %v1189_v30, %v1193_v31  ;;  %v1197_v38 = vor.u32 %v1195_v32, %v1193_v31  ;;  %v3592_v29 = vld [vmem:[%s4973_s5 + $0x64] sm:$0xf]  ;;  %v3237_v30 = vld [vmem:[%s4973_s5 + $0x68] sm:$0xf0] }
 0x1ae   : > { %v1205_v39 = vpack.c.b16 %v1203_v34, %v1180_v11  ;;  %v992_v22 = vadd.f32 %v4203_v12, %v991_v35  ;;  %1620 = vmatmul.bf16.gmra.mxu3 %v1273_v20  ;;  %v1268_v6 = vrot.slane %v1194_v37, 2  ;;  %v3595_v12 = vld [vmem:[%s4973_s5 + $0x74] sm:$0xf0]  ;;  %2075 = vmatpush.bf16.msrb.mxu1 %v3308_v19  ;;  %v3608_v31 = vld [vmem:[%s4973_s5 + $0xe4] sm:$0xf] }
 0x1af   : > { %v1269_v40 = vrot.slane %v1197_v38, 2  ;;  %v3244_v36 = vor.u32 %v3595_v12, %v3243_v50  ;;  %v3301_v35 = vld [vmem:[%s4973_s5 + $0xe8] sm:$0xf0]  ;;  %v3203_v19 = vld [vmem:[%s4973_s5 + $0x20] sm:$0xf] }
 0x1b0   : > { %v1011_v27 = vmax.f32 %v992_v22, 0.0  ;;  %v1210_v43 = vshll.u32 %v1205_v39, 16  ;;  %v1208_v47 = vshrl.u32 %v1205_v39, 16  ;;  %v1277_v51 = vrot.slane %v1205_v39, 3 }
 0x1b1   : > { %v1270_v41 = vsel %vm865_vm10, %v1268_v6, %v1269_v40  ;;  %2056 = vmatpush.bf16.msrb.mxu0 %v3244_v36  ;;  %v3304_v20 = vor.u32 %v3608_v31, %v3301_v35  ;;  %v3299_v6 = vld [vmem:[%s4973_s5 + $0xe0] sm:$0xf]  ;;  %v3609_v40 = vld [vmem:[%s4973_s5 + $0xe4] sm:$0xf0] }
 0x1b2   : > { %v1029_v21 = vpack.c.bf16 %v1011_v27, %v1011_v27  ;;  %1571 = vmatmul.bf16.gmra.mxu2 %v1270_v41  ;;  %v1212_v45 = vrot.slane %v1210_v43, 1  ;;  %v3227_v27 = vld [vmem:[%s4973_s5 + $0x50] sm:$0xf]  ;;  %v3300_v43 = vor.u32 %v3609_v40, %v3299_v6  ;;  %v3197_v6 = vld [vmem:[%s4973_s5 + $0x18] sm:$0xf0] }
 0x1b3   : > { %2114 = vmatpush.bf16.msrb.mxu3 %v3304_v20  ;;  %v3195_v20 = vld [vmem:[%s4973_s5 + $0x10] sm:$0xf] }
 0x1b4   : > { %v1204_v44 = vunpack.c.l.b16 %v1029_v21  ;;  %v1213_v53 = vor.u32 %v1212_v45, %v1208_v47  ;;  %v3591_v21 = vld [vmem:[%s4973_s5 + $0x54] sm:$0xf0]  ;;  %2076 = vmatpush.bf16.msrb.mxu1 %v3300_v43 }
 0x1b5   : > { %v1493_v62 = vpop.f32.mrf.mxu1  ;;  %2057 = vmatpush.bf16.msrb.mxu0 %v3236_v15  ;;  %v3604_v15 = vld [vmem:[%s4973_s5 + $0xc4] sm:$0xf]  ;;  %v3603_v43 = vld [vmem:[%s4973_s5 + $0xb4] sm:$0xf0] }
 0x1b6   : > { %v1206_v46 = vpack.c.b16 %v1204_v44, %v1204_v44  ;;  %v1222_v58 = vpack.c.b16 %v1204_v44, %v1203_v34  ;;  %v1494_v7 = vadd.f32 %v4262_v0, %v1493_v62  ;;  %v3240_v34 = vor.u32 %v3592_v29, %v3237_v30  ;;  %v3283_v29 = vld [vmem:[%s4973_s5 + $0xc0] sm:$0xf]  ;;  %v3605_v30 = vld [vmem:[%s4973_s5 + $0xc4] sm:$0xf0] }
 0x1b7   : > { %v3228_v44 = vor.u32 %v3591_v21, %v3227_v27  ;;  %v3602_v21 = vld [vmem:[%s4973_s5 + $0xb4] sm:$0xf] }
 0x1b8   : > { %v1278_v23 = vrot.slane %v1206_v46, 3  ;;  %v1215_v48 = vshll.u32 %v1206_v46, 16  ;;  %v1219_v57 = vshrl.u32 %v1206_v46, 16  ;;  %2095 = vmatpush.bf16.msrb.mxu2 %v3240_v34  ;;  %v3284_v34 = vor.u32 %v3605_v30, %v3283_v29 }
 0x1b9   : > { %2058 = vmatpush.bf16.msrb.mxu0 %v3228_v44 }
 0x1ba   : > { %v1279_v52 = vsel %vm859_vm9, %v1277_v51, %v1278_v23  ;;  %v1217_v55 = vrot.slane %v1215_v48, 1  ;;  %v3590_v51 = vld [vmem:[%s4973_s5 + $0x54] sm:$0xf]  ;;  %v3229_v23 = vld [vmem:[%s4973_s5 + $0x58] sm:$0xf0] }
 0x1bb   : > { %1527 = vmatmul.bf16.gmra.mxu1 %v1279_v52  ;;  %v3232_v36 = vor.u32 %v3590_v51, %v3229_v23  ;;  %v3606_v52 = vld [vmem:[%s4973_s5 + $0xd4] sm:$0xf]  ;;  %v3580_v51 = vld [vmem:[%s4973_s5 + $0x4] sm:$0xf] }
 0x1bc   : > { %v1218_v49 = vsel %vm501_vm0, %v1213_v53, %v1217_v55  ;;  %v1221_v59 = vor.u32 %v1219_v57, %v1217_v55  ;;  %v3293_v53 = vld [vmem:[%s4973_s5 + $0xd8] sm:$0xf0]  ;;  %vm2276_vm0 = vsmask.f32 2304 }
 0x1bd   : > { %v1280_v61 = vrot.slane %v1218_v49, 3  ;;  %v1495_v9 = vpop.f32.mrf.mxu1  ;;  %v3296_v57 = vor.u32 %v3606_v52, %v3293_v53  ;;  %2096 = vmatpush.bf16.msrb.mxu2 %v3232_v36  ;;  %v3219_v49 = vld [vmem:[%s4973_s5 + $0x40] sm:$0xf]  ;;  %v3189_v36 = vld [vmem:[%s4973_s5 + $0x8] sm:$0xf0]  ;;  %vm4815_vm5 = vmand %vm847_vm7, %vm2276_vm0 }
 0x1be   : > { %1625 = vmatmul.bf16.gmra.mxu3 %v1222_v58  ;;  %v1281_v63 = vrot.slane %v1221_v59, 3  ;;  %v1496_v24 = vadd.f32 %v4262_v0, %v1495_v9  ;;  %v3589_v59 = vld [vmem:[%s4973_s5 + $0x44] sm:$0xf0]  ;;  %v3212_v9 = vor.u32 %v3587_v4, %v3211_v3  ;;  %v3192_v52 = vor.u32 %v3580_v51, %v3189_v36  ;;  %v3267_v53 = vld [vmem:[%s4973_s5 + $0xa0] sm:$0xf] }
 0x1bf   : > { %2115 = vmatpush.bf16.msrb.mxu3 %v3296_v57  ;;  %v3600_v57 = vld [vmem:[%s4973_s5 + $0xa4] sm:$0xf]  ;;  %v3259_v4 = vld [vmem:[%s4973_s5 + $0x90] sm:$0xf] }
 0x1c0   : > { %v1282_v60 = vsel %vm859_vm9, %v1280_v61, %v1281_v63  ;;  %v3588_v61 = vld [vmem:[%s4973_s5 + $0x44] sm:$0xf]  ;;  %v3220_v63 = vor.u32 %v3589_v59, %v3219_v49  ;;  %v3269_v59 = vld [vmem:[%s4973_s5 + $0xa8] sm:$0xf0] }
 0x1c2   : > { %1576 = vmatmul.bf16.gmra.mxu2 %v1282_v60  ;;  %v3221_v60 = vld [vmem:[%s4973_s5 + $0x48] sm:$0xf0]  ;;  %2059 = vmatpush.bf16.msrb.mxu0 %v3220_v63 }
 0x1c3   : > { %v3224_v2 = vor.u32 %v3588_v61, %v3221_v60  ;;  %v3272_v61 = vor.u32 %v3600_v57, %v3269_v59 }
 0x1c5   : > { %2097 = vmatpush.bf16.msrb.mxu2 %v3224_v2 }
 0x1c6   : > { %v1591_v8 = vpop.f32.mrf.mxu3  ;;  %2060 = vmatpush.bf16.msrb.mxu0 %v3212_v9 }
 0x1c8   : > { %v1542_v11 = vpop.f32.mrf.mxu2 }
 0x1c9   : > { %v1543_v18 = vadd.f32 %v1542_v11, %v1494_v7  ;;  %v3291_v7 = vld [vmem:[%s4973_s5 + $0xd0] sm:$0xf]  ;;  %v3586_v11 = vld [vmem:[%s4973_s5 + $0x34] sm:$0xf] }
 0x1ca   : > { %v3216_v14 = vor.u32 %v3586_v11, %v3213_v33  ;;  %v3261_v33 = vld [vmem:[%s4973_s5 + $0x98] sm:$0xf0] }
 0x1cb   : > { %v1592_v54 = vadd.f32 %v1591_v8, %v1543_v18  ;;  %v3607_v8 = vld [vmem:[%s4973_s5 + $0xd4] sm:$0xf0] }
 0x1cc   : > { %2098 = vmatpush.bf16.msrb.mxu2 %v3216_v14  ;;  %v3251_v14 = vld [vmem:[%s4973_s5 + $0x80] sm:$0xf] }
 0x1cd   : > { %v1631_v17 = vmax.f32 %v1592_v54, 0.0  ;;  %v3292_v54 = vor.u32 %v3607_v8, %v3291_v7  ;;  %v3598_v7 = vld [vmem:[%s4973_s5 + $0x94] sm:$0xf] }
 0x1ce   : > { %v1593_v42 = vpop.f32.mrf.mxu3 }
 0x1cf   : > { %1647 = vst [vmem:[#allocation2] sm:$0xff] %v1631_v17  ;;  %2077 = vmatpush.bf16.msrb.mxu1 %v3292_v54  ;;  %v3288_v17 = vor.u32 %v3604_v15, %v3285_v16  ;;  %v3597_v15 = vld [vmem:[%s4973_s5 + $0x84] sm:$0xf0]  ;;  %v3596_v16 = vld [vmem:[%s4973_s5 + $0x84] sm:$0xf] }
 0x1d0   : > { %v1498_v25 = vpop.f32.mrf.mxu1  ;;  %v1544_v26 = vpop.f32.mrf.mxu2 }
 0x1d1   : > { %v1545_v56 = vadd.f32 %v1544_v26, %v1496_v24  ;;  %v1499_v39 = vadd.f32 %v4262_v0, %v1498_v25  ;;  %v3585_v24 = vld [vmem:[%s4973_s5 + $0x24] sm:$0xf0]  ;;  %v3584_v25 = vld [vmem:[%s4973_s5 + $0x24] sm:$0xf]  ;;  %2116 = vmatpush.bf16.msrb.mxu3 %v3288_v17 }
 0x1d3   : > { %v1594_v28 = vadd.f32 %v1593_v42, %v1545_v56  ;;  %v3204_v42 = vor.u32 %v3585_v24, %v3203_v19  ;;  %v3205_v56 = vld [vmem:[%s4973_s5 + $0x28] sm:$0xf0]  ;;  %2078 = vmatpush.bf16.msrb.mxu1 %v3284_v34  ;;  %v3252_v24 = vor.u32 %v3597_v15, %v3251_v14 }
 0x1d5   : > { %v1632_v32 = vmax.f32 %v1594_v28, 0.0  ;;  %v3208_v28 = vor.u32 %v3584_v25, %v3205_v56  ;;  %2061 = vmatpush.bf16.msrb.mxu0 %v3204_v42  ;;  %v3253_v25 = vld [vmem:[%s4973_s5 + $0x88] sm:$0xf0] }
 0x1d6   : > { %v3256_v56 = vor.u32 %v3596_v16, %v3253_v25 }
 0x1d7   : > { %1648 = vst [vmem:[#allocation2 + $0x8] sm:$0xff] %v1632_v32  ;;  %2099 = vmatpush.bf16.msrb.mxu2 %v3208_v28 }
 0x1d8   : > { %v1500_v37 = vpop.f32.mrf.mxu1 }
 0x1d9   : > { %v1596_v38 = vpop.f32.mrf.mxu3  ;;  %v1501_v12 = vadd.f32 %v4262_v0, %v1500_v37  ;;  %v3583_v37 = vld [vmem:[%s4973_s5 + $0x14] sm:$0xf0] }
 0x1dc   : > { %v1547_v22 = vpop.f32.mrf.mxu2 }
 0x1dd   : > { %v1548_v41 = vadd.f32 %v1547_v22, %v1499_v39  ;;  %v3196_v22 = vor.u32 %v3583_v37, %v3195_v20 }
 0x1de   : > { %v1663_v9 = vld [vmem:[#allocation2] ss:$3 sm:$0x1f]  ;;  %v1665_v11 = vld [vmem:[#allocation2 + $0x1] ss:$3 sm:$0x1f] }
 0x1df   : > { %v1597_v45 = vadd.f32 %v1596_v38, %v1548_v41  ;;  %v3582_v38 = vld [vmem:[%s4973_s5 + $0x14] sm:$0xf]  ;;  %v3275_v41 = vld [vmem:[%s4973_s5 + $0xb0] sm:$0xf]  ;;  %2062 = vmatpush.bf16.msrb.mxu0 %v3196_v22 }
 0x1e0   : > { %v1503_v46 = vpop.f32.mrf.mxu1  ;;  %v3200_v27 = vor.u32 %v3582_v38, %v3197_v6  ;;  %v1667_v22 = vld [vmem:[#allocation2 + $0x2] ss:$3 sm:$0x1f] }
 0x1e1   : > { %v1633_v47 = vmax.f32 %v1597_v45, 0.0  ;;  %v1598_v50 = vpop.f32.mrf.mxu3  ;;  %v1504_v5 = vadd.f32 %v4262_v0, %v1503_v46  ;;  %v3276_v45 = vor.u32 %v3603_v43, %v3275_v41  ;;  %v3277_v46 = vld [vmem:[%s4973_s5 + $0xb8] sm:$0xf0] }
 0x1e2   : > { %2100 = vmatpush.bf16.msrb.mxu2 %v3200_v27 }
 0x1e3   : > { %1649 = vst [vmem:[#allocation2 + $0x10] sm:$0xff] %v1633_v47  ;;  %v3280_v47 = vor.u32 %v3602_v21, %v3277_v46  ;;  %2079 = vmatpush.bf16.msrb.mxu1 %v3276_v45 }
 0x1e4   : > { %v1549_v48 = vpop.f32.mrf.mxu2 }
 0x1e5   : > { %v1550_v55 = vadd.f32 %v1549_v48, %v1501_v12  ;;  %v3581_v12 = vld [vmem:[%s4973_s5 + $0x4] sm:$0xf0]  ;;  %2117 = vmatpush.bf16.msrb.mxu3 %v3280_v47 }
 0x1e6   : > { %2101 = vmatpush.bf16.msrb.mxu2 %v3192_v52 }
 0x1e7   : > { %v1599_v58 = vadd.f32 %v1598_v50, %v1550_v55  ;;  %v3187_v50 = vld [vmem:[%s4973_s5] sm:$0xf]  ;;  %v3601_v55 = vld [vmem:[%s4973_s5 + $0xa4] sm:$0xf0] }
 0x1e8   : > { %v1505_v62 = vpop.f32.mrf.mxu1  ;;  %v3188_v48 = vor.u32 %v3581_v12, %v3187_v50  ;;  %v3268_v49 = vor.u32 %v3601_v55, %v3267_v53 }
 0x1e9   : > { %v1634_v1 = vmax.f32 %v1599_v58, 0.0  ;;  %v1601_v10 = vpop.f32.mrf.mxu3  ;;  %v1506_v39 = vadd.f32 %v4262_v0, %v1505_v62  ;;  %2118 = vmatpush.bf16.msrb.mxu3 %v3272_v61 }
 0x1ea   : > { %2063 = vmatpush.bf16.msrb.mxu0 %v3188_v48  ;;  %2080 = vmatpush.bf16.msrb.mxu1 %v3268_v49 }
 0x1eb   : > { %1650 = vst [vmem:[#allocation2 + $0x18] sm:$0xff] %v1634_v1 }
 0x1ed   : > { %v1552_v18 = vpop.f32.mrf.mxu2 }
 0x1ee   : > { %v1553_v13 = vadd.f32 %v1552_v18, %v1504_v5  ;;  %v3599_v5 = vld [vmem:[%s4973_s5 + $0x94] sm:$0xf0] }
 0x1ef   : > { %v3260_v54 = vor.u32 %v3599_v5, %v3259_v4 }
 0x1f0   : > { %v1602_v26 = vadd.f32 %v1601_v10, %v1553_v13  ;;  %v1508_v32 = vpop.f32.mrf.mxu1  ;;  %v3264_v13 = vor.u32 %v3598_v7, %v3261_v33 }
 0x1f1   : > { %v1603_v35 = vpop.f32.mrf.mxu3  ;;  %v1509_v62 = vadd.f32 %v4262_v0, %v1508_v32  ;;  %2081 = vmatpush.bf16.msrb.mxu1 %v3260_v54  ;;  %v1668_v32 = vmax.f32 %v1663_v9, %v1665_v11 }
 0x1f2   : > { %v1635_v31 = vmax.f32 %v1602_v26, 0.0  ;;  %v1682_v10 = vld [vmem:[#allocation2 + $0x10] ss:$3 sm:$0x1f]  ;;  %2119 = vmatpush.bf16.msrb.mxu3 %v3264_v13 }
 0x1f3   : > { %v1684_v2 = vld [vmem:[#allocation2 + $0x11] ss:$3 sm:$0x1f]  ;;  %v1686_v19 = vld [vmem:[#allocation2 + $0x12] ss:$3 sm:$0x1f] }
 0x1f4   : > { %1651 = vst [vmem:[#allocation2 + $0x20] sm:$0xff] %v1635_v31  ;;  %v1687_v18 = vmax.f32 %v1682_v10, %v1684_v2 }
 0x1f5   : > { %v1554_v40 = vpop.f32.mrf.mxu2  ;;  %2082 = vmatpush.bf16.msrb.mxu1 %v3252_v24 }
 0x1f6   : > { %v1555_v44 = vadd.f32 %v1554_v40, %v1506_v39  ;;  %v1688_v29 = vmax.f32 %v1687_v18, %v1686_v19  ;;  %2120 = vmatpush.bf16.msrb.mxu3 %v3256_v56  ;;  %v1669_v40 = vmax.f32 %v1668_v32, %v1667_v22 }
 0x1f8   : > { %v1604_v23 = vadd.f32 %v1603_v35, %v1555_v44  ;;  %v1510_v63 = vpop.f32.mrf.mxu1  ;;  %v1689_v6 = vpack.c.bf16 %v1688_v29, %v1688_v29  ;;  %v1670_v21 = vpack.c.bf16 %v1669_v40, %v1669_v40 }
 0x1f9   : > { %v1606_v60 = vpop.f32.mrf.mxu3  ;;  %v1511_v28 = vadd.f32 %v4262_v0, %v1510_v63 }
 0x1fa   : > { %v1636_v58 = vmax.f32 %v1604_v23, 0.0  ;;  %v1691_v43 = vunpack.c.l.b16 %v1689_v6  ;;  %v1672_v23 = vunpack.c.l.b16 %v1670_v21  ;;  %v1814_v63 = vrot.slane %v1689_v6, 6 }
 0x1fc   : > { %1652 = vst [vmem:[#allocation2 + $0x28] sm:$0xff] %v1636_v58  ;;  %v1692_v12 = vpack.c.b16 %v1691_v43, %v1691_v43  ;;  %v1673_v49 = vpack.c.b16 %v1672_v23, %v1672_v23  ;;  %v1828_v54 = vsel %vm841_vm6, %v1670_v21, %v1814_v63 }
 0x1fd   : > { %v1557_v1 = vpop.f32.mrf.mxu2 }
 0x1fe   : > { %v1558_v3 = vadd.f32 %v1557_v1, %v1509_v62  ;;  %v1696_v57 = vshll.u32 %v1692_v12, 16  ;;  %v1694_v33 = vshrl.u32 %v1692_v12, 16  ;;  %v1675_v56 = vshrl.u32 %v1673_v49, 16 }
 0x200   : > { %v1607_v8 = vadd.f32 %v1606_v60, %v1558_v3  ;;  %v1513_v35 = vpop.f32.mrf.mxu1  ;;  %v1698_v4 = vrot.slane %v1696_v57, 1 }
 0x201   : > { %v1608_v38 = vpop.f32.mrf.mxu3  ;;  %v1514_v45 = vadd.f32 %v4262_v0, %v1513_v35 }
 0x202   : > { %v1637_v17 = vmax.f32 %v1607_v8, 0.0  ;;  %v1677_v8 = vshll.u32 %v1673_v49, 16 }
 0x203   : > { %v1701_v26 = vld [vmem:[#allocation2 + $0x20] ss:$3 sm:$0x1f]  ;;  %v1703_v42 = vld [vmem:[#allocation2 + $0x21] ss:$3 sm:$0x1f] }
 0x204   : > { %1653 = vst [vmem:[#allocation2 + $0x30] sm:$0xff] %v1637_v17  ;;  %v1706_v30 = vmax.f32 %v1701_v26, %v1703_v42  ;;  %v1705_v34 = vld [vmem:[#allocation2 + $0x22] ss:$3 sm:$0x1f]  ;;  %v1699_v17 = vor.u32 %v1698_v4, %v1694_v33  ;;  %v1679_v26 = vrot.slane %v1677_v8, 1 }
 0x205   : > { %v1559_v31 = vpop.f32.mrf.mxu2 }
 0x206   : > { %v1560_v20 = vadd.f32 %v1559_v31, %v1511_v28  ;;  %v1707_v37 = vmax.f32 %v1706_v30, %v1705_v34  ;;  %v1815_v30 = vrot.slane %v1699_v17, 6  ;;  %v1680_v35 = vor.u32 %v1679_v26, %v1675_v56 }
 0x208   : > { %v1609_v39 = vadd.f32 %v1608_v38, %v1560_v20  ;;  %v1708_v27 = vpack.c.bf16 %v1707_v37, %v1707_v37  ;;  %v1515_v47 = vpop.f32.mrf.mxu1  ;;  %v1831_v22 = vsel %vm841_vm6, %v1680_v35, %v1815_v30 }
 0x209   : > { %v1516_v60 = vadd.f32 %v4262_v0, %v1515_v47 }
 0x20a   : > { %v1638_v41 = vmax.f32 %v1609_v39, 0.0  ;;  %v1710_v44 = vunpack.c.l.b16 %v1708_v27  ;;  %v1816_v1 = vrot.slane %v1708_v27, 4 }
 0x20c   : > { %1654 = vst [vmem:[#allocation2 + $0x38] sm:$0xff] %v1638_v41  ;;  %v1711_v48 = vpack.c.b16 %v1710_v44, %v1710_v44  ;;  %v1833_v14 = vsel %vm853_vm8, %v1828_v54, %v1816_v1 }
 0x20e   : > { %v1611_v46 = vpop.f32.mrf.mxu3  ;;  %v1715_v61 = vshll.u32 %v1711_v48, 16  ;;  %v1713_v15 = vshrl.u32 %v1711_v48, 16 }
 0x210   : > { %v1562_v50 = vpop.f32.mrf.mxu2  ;;  %v1717_v9 = vrot.slane %v1715_v61, 1 }
 0x211   : > { %v1563_v51 = vadd.f32 %v1562_v50, %v1514_v45 }
 0x212   : > { %v1718_v25 = vor.u32 %v1717_v9, %v1713_v15 }
 0x213   : > { %v1612_v36 = vadd.f32 %v1611_v46, %v1563_v51  ;;  %v1720_v52 = vld [vmem:[#allocation2 + $0x30] ss:$3 sm:$0x1f]  ;;  %v1722_v53 = vld [vmem:[#allocation2 + $0x31] ss:$3 sm:$0x1f] }
 0x214   : > { %v1725_v55 = vmax.f32 %v1720_v52, %v1722_v53  ;;  %v1724_v59 = vld [vmem:[#allocation2 + $0x32] ss:$3 sm:$0x1f]  ;;  %v1817_v34 = vrot.slane %v1718_v25, 4 }
 0x215   : > { %v1639_v58 = vmax.f32 %v1612_v36, 0.0 }
 0x216   : > { %v1726_v62 = vmax.f32 %v1725_v55, %v1724_v59  ;;  %v1613_v5 = vpop.f32.mrf.mxu3  ;;  %v1835_v40 = vsel %vm853_vm8, %v1831_v22, %v1817_v34 }
 0x217   : > { %1655 = vst [vmem:[#allocation2 + $0x40] sm:$0xff] %v1639_v58 }
 0x218   : > { %v1518_v10 = vpop.f32.mrf.mxu1  ;;  %v1564_v2 = vpop.f32.mrf.mxu2  ;;  %v1727_v3 = vpack.c.bf16 %v1726_v62, %v1726_v62 }
 0x219   : > { %v1565_v7 = vadd.f32 %v1564_v2, %v1516_v60  ;;  %v1519_v37 = vadd.f32 %v4262_v0, %v1518_v10 }
 0x21a   : > { %v1729_v11 = vunpack.c.l.b16 %v1727_v3  ;;  %v1818_v18 = vrot.slane %v1727_v3, 2 }
 0x21b   : > { %v1614_v13 = vadd.f32 %v1613_v5, %v1565_v7 }
 0x21c   : > { %v1837_v16 = vsel %vm865_vm10, %v1833_v14, %v1818_v18  ;;  %v1730_v19 = vpack.c.b16 %v1729_v11, %v1729_v11 }
 0x21d   : > { %v1640_v24 = vmax.f32 %v1614_v13, 0.0  ;;  %2064 = vmatmul.bf16.vlgmr.msrb.gmra.mxu0 %v1837_v16  ;;  %2102 = vmatmul.bf16.vlgmr.msrb.gmra.mxu2 %v1837_v16 }
 0x21e   : > { %v1734_v42 = vshll.u32 %v1730_v19, 16  ;;  %v1732_v28 = vshrl.u32 %v1730_v19, 16 }
 0x21f   : > { %1656 = vst [vmem:[#allocation2 + $0x48] sm:$0xff] %v1640_v24 }
 0x220   : > { %v1736_v29 = vrot.slane %v1734_v42, 1  ;;  %v1520_v31 = vpop.f32.mrf.mxu1 }
 0x221   : > { %v1616_v32 = vpop.f32.mrf.mxu3  ;;  %v1521_v44 = vadd.f32 %v4262_v0, %v1520_v31 }
 0x222   : > { %v1737_v20 = vor.u32 %v1736_v29, %v1732_v28 }
 0x224   : > { %v1567_v38 = vpop.f32.mrf.mxu2  ;;  %v1819_v39 = vrot.slane %v1737_v20, 2 }
 0x225   : > { %v1568_v6 = vadd.f32 %v1567_v38, %v1519_v37 }
 0x226   : > { %v1840_v27 = vsel %vm865_vm10, %v1835_v40, %v1819_v39  ;;  %v1739_v9 = vld [vmem:[#allocation2 + $0x40] ss:$3 sm:$0x1f]  ;;  %v1741_v11 = vld [vmem:[#allocation2 + $0x41] ss:$3 sm:$0x1f] }
 0x227   : > { %v1617_v41 = vadd.f32 %v1616_v32, %v1568_v6  ;;  %2083 = vmatmul.bf16.vlgmr.msrb.gmra.mxu1 %v1840_v27  ;;  %2121 = vmatmul.bf16.vlgmr.msrb.gmra.mxu3 %v1840_v27  ;;  %v1744_v19 = vmax.f32 %v1739_v9, %v1741_v11  ;;  %v1743_v28 = vld [vmem:[#allocation2 + $0x42] ss:$3 sm:$0x1f]  ;;  %v3646_v9 = vld [vmem:[%s4975_s7 + $0x114] sm:$0xf] }
 0x228   : > { %v1523_v45 = vpop.f32.mrf.mxu1  ;;  %v3393_v11 = vld [vmem:[%s4975_s7 + $0x118] sm:$0xf0] }
 0x229   : > { %v1641_v43 = vmax.f32 %v1617_v41, 0.0  ;;  %v1618_v21 = vpop.f32.mrf.mxu3  ;;  %v1524_v23 = vadd.f32 %v4262_v0, %v1523_v45  ;;  %v1745_v30 = vmax.f32 %v1744_v19, %v1743_v28  ;;  %v3385_v19 = vld [vmem:[%s4975_s7 + $0x108] sm:$0xf0]  ;;  %v3407_v28 = vld [vmem:[%s4975_s7 + $0x130] sm:$0xf] }
 0x22b   : > { %1657 = vst [vmem:[#allocation2 + $0x50] sm:$0xff] %v1641_v43  ;;  %v1746_v35 = vpack.c.bf16 %v1745_v30, %v1745_v30 }
 0x22c   : > { %v1569_v46 = vpop.f32.mrf.mxu2 }
 0x22d   : > { %v1570_v47 = vadd.f32 %v1569_v46, %v1521_v44  ;;  %v1748_v37 = vunpack.c.l.b16 %v1746_v35 }
 0x22f   : > { %v1619_v50 = vadd.f32 %v1618_v21, %v1570_v47  ;;  %v1749_v27 = vpack.c.b16 %v1748_v37, %v1748_v37  ;;  %v3643_v37 = vld [vmem:[%s4975_s7 + $0xf4] sm:$0xf0] }
 0x230   : > { %v1525_v48 = vpop.f32.mrf.mxu1 }
 0x231   : > { %v1642_v12 = vmax.f32 %v1619_v50, 0.0  ;;  %v1621_v51 = vpop.f32.mrf.mxu3  ;;  %v1526_v58 = vadd.f32 %v4262_v0, %v1525_v48  ;;  %v1753_v50 = vshll.u32 %v1749_v27, 16 }
 0x233   : > { %1658 = vst [vmem:[#allocation2 + $0x58] sm:$0xff] %v1642_v12 }
 0x235   : > { %v1572_v36 = vpop.f32.mrf.mxu2 }
 0x236   : > { %v1573_v52 = vadd.f32 %v1572_v36, %v1524_v23 }
 0x238   : > { %v1622_v53 = vadd.f32 %v1621_v51, %v1573_v52  ;;  %v1528_v61 = vpop.f32.mrf.mxu1 }
 0x239   : > { %v1623_v57 = vpop.f32.mrf.mxu3  ;;  %v1529_v60 = vadd.f32 %v4262_v0, %v1528_v61 }
 0x23a   : > { %v1643_v55 = vmax.f32 %v1622_v53, 0.0  ;;  %v1758_v2 = vld [vmem:[#allocation2 + $0x50] ss:$3 sm:$0x1f] }
 0x23b   : > { %v1760_v3 = vld [vmem:[#allocation2 + $0x51] ss:$3 sm:$0x1f]  ;;  %v1762_v54 = vld [vmem:[#allocation2 + $0x52] ss:$3 sm:$0x1f] }
 0x23c   : > { %1659 = vst [vmem:[#allocation2 + $0x60] sm:$0xff] %v1643_v55  ;;  %v1763_v7 = vmax.f32 %v1758_v2, %v1760_v3 }
 0x23d   : > { %v1574_v49 = vpop.f32.mrf.mxu2 }
 0x23e   : > { %v1575_v59 = vadd.f32 %v1574_v49, %v1526_v58  ;;  %v1764_v15 = vmax.f32 %v1763_v7, %v1762_v54  ;;  %v3396_v54 = vor.u32 %v3646_v9, %v3393_v11  ;;  %v3345_v9 = vld [vmem:[%s4975_s7 + $0xb8] sm:$0xf0]  ;;  %v3343_v11 = vld [vmem:[%s4975_s7 + $0xb0] sm:$0xf] }
 0x240   : > { %v1624_v62 = vadd.f32 %v1623_v57, %v1575_v59  ;;  %v1530_v8 = vpop.f32.mrf.mxu1  ;;  %v1765_v29 = vpack.c.bf16 %v1764_v15, %v1764_v15  ;;  %v1755_v59 = vrot.slane %v1753_v50, 1  ;;  %2508 = vmatpush.bf16.msra.mxu2 %v3396_v54  ;;  %v3638_v50 = vld [vmem:[%s4975_s7 + $0xd4] sm:$0xf]  ;;  %v3401_v54 = vld [vmem:[%s4975_s7 + $0x128] sm:$0xf0] }
 0x241   : > { %v1626_v1 = vpop.f32.mrf.mxu3  ;;  %v1531_v14 = vadd.f32 %v4262_v0, %v1530_v8 }
 0x242   : > { %v1644_v63 = vmax.f32 %v1624_v62, 0.0  ;;  %v1767_v34 = vunpack.c.l.b16 %v1765_v29  ;;  %v1820_v44 = vrot.slane %v1765_v29, 6  ;;  %v1751_v62 = vshrl.u32 %v1749_v27, 16  ;;  %v3651_v29 = vld [vmem:[%s4975_s7 + $0x134] sm:$0xf0] }
 0x244   : > { %1660 = vst [vmem:[#allocation2 + $0x68] sm:$0xff] %v1644_v63  ;;  %v1768_v0 = vpack.c.b16 %v1767_v34, %v1767_v34  ;;  %v1844_v48 = vsel %vm841_vm6, %v1746_v35, %v1820_v44  ;;  %v1756_v2 = vor.u32 %v1755_v59, %v1751_v62  ;;  %v3642_v34 = vld [vmem:[%s4975_s7 + $0xf4] sm:$0xf]  ;;  %v3377_v35 = vld [vmem:[%s4975_s7 + $0xf8] sm:$0xf0] }
 0x245   : > { %v1577_v10 = vpop.f32.mrf.mxu2  ;;  %v3353_v62 = vld [vmem:[%s4975_s7 + $0xc8] sm:$0xf0] }
 0x246   : > { %v1578_v4 = vadd.f32 %v1577_v10, %v1529_v60  ;;  %v1772_v40 = vshll.u32 %v1768_v0, 16  ;;  %v1770_v36 = vshrl.u32 %v1768_v0, 16  ;;  %v3380_v0 = vor.u32 %v3642_v34, %v3377_v35 }
 0x248   : > { %v1627_v5 = vadd.f32 %v1626_v1, %v1578_v4  ;;  %v1774_v47 = vrot.slane %v1772_v40, 1  ;;  %v1890_v40 = vld [vmem:[%s4974_s6] sm:$0x3] }
 0x249   : > { %v1628_v42 = vpop.f32.mrf.mxu3 }
 0x24a   : > { %v1645_v18 = vmax.f32 %v1627_v5, 0.0  ;;  %v1775_v57 = vor.u32 %v1774_v47, %v1770_v36 }
 0x24b   : > { %v1777_v33 = vld [vmem:[#allocation2 + $0x60] ss:$3 sm:$0x1f]  ;;  %v1779_v13 = vld [vmem:[#allocation2 + $0x61] ss:$3 sm:$0x1f] }
 0x24c   : > { %1661 = vst [vmem:[#allocation2 + $0x70] sm:$0xff] %v1645_v18  ;;  %v1782_v16 = vmax.f32 %v1777_v33, %v1779_v13  ;;  %v1781_v24 = vld [vmem:[#allocation2 + $0x62] ss:$3 sm:$0x1f]  ;;  %v1821_v1 = vrot.slane %v1775_v57, 6 }
 0x24d   : > { %v1579_v17 = vpop.f32.mrf.mxu2  ;;  %v3391_v18 = vld [vmem:[%s4975_s7 + $0x110] sm:$0xf]  ;;  %v3647_v33 = vld [vmem:[%s4975_s7 + $0x114] sm:$0xf0]  ;;  %v3650_v13 = vld [vmem:[%s4975_s7 + $0x134] sm:$0xf] }
 0x24e   : > { %v1580_v25 = vadd.f32 %v1579_v17, %v1531_v14  ;;  %v1783_v26 = vmax.f32 %v1782_v16, %v1781_v24  ;;  %v1847_v5 = vsel %vm841_vm6, %v1756_v2, %v1821_v1  ;;  %v3409_v14 = vld [vmem:[%s4975_s7 + $0x138] sm:$0xf0]  ;;  %v3392_v15 = vor.u32 %v3647_v33, %v3391_v18  ;;  %v3644_v17 = vld [vmem:[%s4975_s7 + $0x104] sm:$0xf] }
 0x24f   : > { %v3412_v16 = vor.u32 %v3650_v13, %v3409_v14  ;;  %v3648_v18 = vld [vmem:[%s4975_s7 + $0x124] sm:$0xf]  ;;  %v3635_v13 = vld [vmem:[%s4975_s7 + $0xb4] sm:$0xf0] }
 0x250   : > { %v1629_v56 = vadd.f32 %v1628_v42, %v1580_v25  ;;  %v1784_v31 = vpack.c.bf16 %v1783_v26, %v1783_v26  ;;  %2472 = vmatpush.bf16.msra.mxu0 %v3392_v15  ;;  %v3388_v25 = vor.u32 %v3644_v17, %v3385_v19  ;;  %v3383_v26 = vld [vmem:[%s4975_s7 + $0x100] sm:$0xf]  ;;  %v3645_v42 = vld [vmem:[%s4975_s7 + $0x104] sm:$0xf0]  ;;  %v3404_v15 = vor.u32 %v3648_v18, %v3401_v54 }
 0x251   : > { %2532 = vmatpush.bf16.msra.mxu3 %v3412_v16  ;;  %v3344_v16 = vor.u32 %v3635_v13, %v3343_v11  ;;  %v3451_v11 = vld [vmem:[%s4975_s7 + $0x40] sm:$0xf]  ;;  %v3621_v18 = vld [vmem:[%s4975_s7 + $0x44] sm:$0xf0] }
 0x252   : > { %v1646_v32 = vmax.f32 %v1629_v56, 0.0  ;;  %v1786_v20 = vunpack.c.l.b16 %v1784_v31  ;;  %v1822_v45 = vrot.slane %v1784_v31, 4  ;;  %v3384_v56 = vor.u32 %v3645_v42, %v3383_v26  ;;  %2509 = vmatpush.bf16.msra.mxu2 %v3388_v25  ;;  %v3649_v25 = vld [vmem:[%s4975_s7 + $0x124] sm:$0xf0]  ;;  %v3632_v26 = vld [vmem:[%s4975_s7 + $0xa4] sm:$0xf] }
 0x253   : > { %v3408_v31 = vor.u32 %v3651_v29, %v3407_v28  ;;  %v3337_v28 = vld [vmem:[%s4975_s7 + $0xa8] sm:$0xf0]  ;;  %v3335_v29 = vld [vmem:[%s4975_s7 + $0xa0] sm:$0xf] }
 0x254   : > { %1662 = vst [vmem:[#allocation2 + $0x78] sm:$0xff] %v1646_v32  ;;  %v1787_v38 = vpack.c.b16 %v1786_v20, %v1786_v20  ;;  %v1849_v52 = vsel %vm853_vm8, %v1844_v48, %v1822_v45  ;;  %2473 = vmatpush.bf16.msra.mxu0 %v3384_v56  ;;  %v3375_v20 = vld [vmem:[%s4975_s7 + $0xf0] sm:$0xf] }
 0x255   : > { %2496 = vmatpush.bf16.msra.mxu1 %v3408_v31  ;;  %2533 = vmatpush.bf16.msra.mxu3 %v3404_v15  ;;  %v3340_v31 = vor.u32 %v3632_v26, %v3337_v28 }
 0x256   : > { %v1791_v43 = vshll.u32 %v1787_v38, 16  ;;  %v1789_v53 = vshrl.u32 %v1787_v38, 16  ;;  %2510 = vmatpush.bf16.msra.mxu2 %v3380_v0  ;;  %v3477_v0 = vld [vmem:[%s4975_s7 + $0x78] sm:$0xf0] }
 0x258   : > { %v1793_v12 = vrot.slane %v1791_v43, 1  ;;  %v3641_v43 = vld [vmem:[%s4975_s7 + $0xe4] sm:$0xf0] }
 0x25a   : > { %v1794_v49 = vor.u32 %v1793_v12, %v1789_v53  ;;  %v3361_v12 = vld [vmem:[%s4975_s7 + $0xd8] sm:$0xf0] }
 0x25b   : > { %v1796_v39 = vld [vmem:[#allocation2 + $0x70] ss:$3 sm:$0x1f]  ;;  %v1798_v22 = vld [vmem:[#allocation2 + $0x71] ss:$3 sm:$0x1f]  ;;  %v3364_v36 = vor.u32 %v3638_v50, %v3361_v12 }
 0x25c   : > { %v1801_v6 = vmax.f32 %v1796_v39, %v1798_v22  ;;  %v1800_v41 = vld [vmem:[#allocation2 + $0x72] ss:$3 sm:$0x1f]  ;;  %v1823_v10 = vrot.slane %v1794_v49, 4  ;;  %v3376_v39 = vor.u32 %v3643_v37, %v3375_v20  ;;  %v3640_v22 = vld [vmem:[%s4975_s7 + $0xe4] sm:$0xf] }
 0x25d   : > { %v3626_v20 = vld [vmem:[%s4975_s7 + $0x74] sm:$0xf]  ;;  %v3467_v12 = vld [vmem:[%s4975_s7 + $0x60] sm:$0xf] }
 0x25e   : > { %v1802_v21 = vmax.f32 %v1801_v6, %v1800_v41  ;;  %v1851_v7 = vsel %vm853_vm8, %v1847_v5, %v1823_v10  ;;  %v3369_v6 = vld [vmem:[%s4975_s7 + $0xe8] sm:$0xf0]  ;;  %2474 = vmatpush.bf16.msra.mxu0 %v3376_v39  ;;  %v3367_v41 = vld [vmem:[%s4975_s7 + $0xe0] sm:$0xf]  ;;  %v3637_v10 = vld [vmem:[%s4975_s7 + $0xc4] sm:$0xf0] }
 0x25f   : > { %v3372_v27 = vor.u32 %v3640_v22, %v3369_v6  ;;  %v3368_v44 = vor.u32 %v3641_v43, %v3367_v41  ;;  %v3475_v39 = vld [vmem:[%s4975_s7 + $0x70] sm:$0xf]  ;;  %v3627_v22 = vld [vmem:[%s4975_s7 + $0x74] sm:$0xf0]  ;;  %v3630_v6 = vld [vmem:[%s4975_s7 + $0x94] sm:$0xf] }
 0x260   : > { %v1803_v46 = vpack.c.bf16 %v1802_v21, %v1802_v21  ;;  %v4541_v21 = vperm.slane %v1890_v40, 1  ;;  %v3493_v41 = vld [vmem:[%s4975_s7 + $0x98] sm:$0xf0]  ;;  %v3624_v43 = vld [vmem:[%s4975_s7 + $0x64] sm:$0xf] }
 0x261   : > { %2511 = vmatpush.bf16.msra.mxu2 %v3372_v27  ;;  %v3476_v27 = vor.u32 %v3627_v22, %v3475_v39 }
 0x262   : > { %v1805_v51 = vunpack.c.l.b16 %v1803_v46  ;;  %v1824_v23 = vrot.slane %v1803_v46, 2  ;;  %v4543_v46 = vperm.slane %v1890_v40, 0  ;;  %2475 = vmatpush.bf16.msra.mxu0 %v3368_v44  ;;  %v3469_v44 = vld [vmem:[%s4975_s7 + $0x68] sm:$0xf0] }
 0x263   : > { %v3472_v50 = vor.u32 %v3624_v43, %v3469_v44 }
 0x264   : > { %v1853_v55 = vsel %vm865_vm10, %v1849_v52, %v1824_v23  ;;  %v1806_v58 = vpack.c.b16 %v1805_v51, %v1805_v51  ;;  %v3359_v51 = vld [vmem:[%s4975_s7 + $0xd0] sm:$0xf]  ;;  %v3639_v52 = vld [vmem:[%s4975_s7 + $0xd4] sm:$0xf0] }
 0x265   : > { %2069 = vmatmul.bf16.gmra.mxu0 %v1853_v55  ;;  %2107 = vmatmul.bf16.gmra.mxu2 %v1853_v55  ;;  %v3360_v55 = vor.u32 %v3639_v52, %v3359_v51  ;;  %v3625_v51 = vld [vmem:[%s4975_s7 + $0x64] sm:$0xf0] }
 0x266   : > { %v1810_v61 = vshll.u32 %v1806_v58, 16  ;;  %v1808_v63 = vshrl.u32 %v1806_v58, 16  ;;  %2512 = vmatpush.bf16.msra.mxu2 %v3364_v36  ;;  %v3468_v52 = vor.u32 %v3625_v51, %v3467_v12 }
 0x267   : > { %2476 = vmatpush.bf16.msra.mxu0 %v3360_v55  ;;  %v3622_v55 = vld [vmem:[%s4975_s7 + $0x54] sm:$0xf] }
 0x268   : > { %v1812_v60 = vrot.slane %v1810_v61, 1  ;;  %v3636_v61 = vld [vmem:[%s4975_s7 + $0xc4] sm:$0xf] }
 0x269   : > { %v3356_v1 = vor.u32 %v3636_v61, %v3353_v62  ;;  %v3459_v61 = vld [vmem:[%s4975_s7 + $0x50] sm:$0xf]  ;;  %v3623_v62 = vld [vmem:[%s4975_s7 + $0x54] sm:$0xf0] }
 0x26a   : > { %v1813_v3 = vor.u32 %v1812_v60, %v1808_v63  ;;  %v3351_v63 = vld [vmem:[%s4975_s7 + $0xc0] sm:$0xf] }
 0x26b   : > { %2513 = vmatpush.bf16.msra.mxu2 %v3356_v1 }
 0x26c   : > { %v1825_v4 = vrot.slane %v1813_v3, 2  ;;  %v3352_v3 = vor.u32 %v3637_v10, %v3351_v63 }
 0x26e   : > { %v1856_v8 = vsel %vm865_vm10, %v1851_v7, %v1825_v4  ;;  %2477 = vmatpush.bf16.msra.mxu0 %v3352_v3  ;;  %v3460_v3 = vor.u32 %v3623_v62, %v3459_v61 }
 0x26f   : > { %2088 = vmatmul.bf16.gmra.mxu1 %v1856_v8  ;;  %2126 = vmatmul.bf16.gmra.mxu3 %v1856_v8  ;;  %v3634_v8 = vld [vmem:[%s4975_s7 + $0xb4] sm:$0xf] }
 0x270   : > { %v3348_v33 = vor.u32 %v3634_v8, %v3345_v9 }
 0x272   : > { %2514 = vmatpush.bf16.msra.mxu2 %v3348_v33  ;;  %2478 = vmatpush.bf16.msra.mxu0 %v3344_v16 }
 0x276   : > { %2515 = vmatpush.bf16.msra.mxu2 %v3340_v31 }
 0x29a   : > { %v2065_v32 = vpop.f32.mrf.mxu0 }
 0x29b   : > { %v2066_v49 = vadd.f32 %v2065_v32, %v4543_v46 }
 0x2a0   : > { %v2103_v24 = vpop.f32.mrf.mxu2 }
 0x2a1   : > { %v2104_v23 = vadd.f32 %v2103_v24, %v4541_v21  ;;  %v3399_v24 = vld [vmem:[%s4975_s7 + $0x120] sm:$0xf] }
 0x2a2   : > { %v2067_v53 = vpop.f32.mrf.mxu0  ;;  %v3400_v56 = vor.u32 %v3649_v25, %v3399_v24  ;;  %v3452_v24 = vor.u32 %v3621_v18, %v3451_v11 }
 0x2a3   : > { %v2068_v60 = vadd.f32 %v2067_v53, %v4543_v46  ;;  %v3631_v53 = vld [vmem:[%s4975_s7 + $0x94] sm:$0xf0] }
 0x2a4   : > { %v2084_v38 = vpop.f32.mrf.mxu1  ;;  %2497 = vmatpush.bf16.msra.mxu1 %v3400_v56 }
 0x2a5   : > { %v2085_v2 = vadd.f32 %v2084_v38, %v2066_v49  ;;  %v3480_v38 = vor.u32 %v3626_v20, %v3477_v0 }
 0x2a7   : > { %v2132_v14 = vmax.f32 %v2085_v2, 0.0  ;;  %2686 = vmatpush.bf16.msrb.mxu2 %v3480_v38 }
 0x2a8   : > { %v2105_v45 = vpop.f32.mrf.mxu2 }
 0x2a9   : > { %v2106_v48 = vadd.f32 %v2105_v45, %v4541_v21 }
 0x2aa   : > { %v2122_v30 = vpop.f32.mrf.mxu3 }
 0x2ab   : > { %v2123_v57 = vadd.f32 %v2122_v30, %v2104_v23  ;;  %v3633_v30 = vld [vmem:[%s4975_s7 + $0xa4] sm:$0xf0]  ;;  %v3491_v23 = vld [vmem:[%s4975_s7 + $0x90] sm:$0xf]  ;;  %2687 = vmatpush.bf16.msrb.mxu2 %v3472_v50  ;;  %v3628_v50 = vld [vmem:[%s4975_s7 + $0x84] sm:$0xf] }
 0x2ac   : > { %v2086_v59 = vpop.f32.mrf.mxu1  ;;  %v3336_v32 = vor.u32 %v3633_v30, %v3335_v29 }
 0x2ad   : > { %v2133_v4 = vmax.f32 %v2123_v57, 0.0  ;;  %v2087_v5 = vadd.f32 %v2086_v59, %v2068_v60  ;;  %v3461_v57 = vld [vmem:[%s4975_s7 + $0x58] sm:$0xf0]  ;;  %v3492_v59 = vor.u32 %v3631_v53, %v3491_v23  ;;  %v3485_v53 = vld [vmem:[%s4975_s7 + $0x88] sm:$0xf0] }
 0x2ae   : > { %2479 = vmatpush.bf16.msra.mxu0 %v3336_v32  ;;  %v3464_v1 = vor.u32 %v3622_v55, %v3461_v57  ;;  %v3616_v55 = vld [vmem:[%s4975_s7 + $0x24] sm:$0xf]  ;;  %v3437_v57 = vld [vmem:[%s4975_s7 + $0x28] sm:$0xf0]  ;;  %v3488_v61 = vor.u32 %v3628_v50, %v3485_v53 }
 0x2af   : > { %v2134_v17 = vmax.f32 %v2087_v5, 0.0  ;;  %v2140_v19 = vpack.c.bf16 %v2133_v4, %v2132_v14  ;;  %2674 = vmatpush.bf16.msrb.mxu1 %v3492_v59  ;;  %v3620_v4 = vld [vmem:[%s4975_s7 + $0x44] sm:$0xf]  ;;  %v3453_v5 = vld [vmem:[%s4975_s7 + $0x48] sm:$0xf0]  ;;  %v3440_v62 = vor.u32 %v3616_v55, %v3437_v57 }
 0x2b0   : > { %2688 = vmatpush.bf16.msrb.mxu2 %v3464_v1  ;;  %v3456_v15 = vor.u32 %v3620_v4, %v3453_v5  ;;  %v3483_v1 = vld [vmem:[%s4975_s7 + $0x80] sm:$0xf]  ;;  %v3629_v5 = vld [vmem:[%s4975_s7 + $0x84] sm:$0xf0] }
 0x2b1   : > { %v2145_v34 = vunpack.c.l.b16 %v2140_v19  ;;  %v2146_v35 = vunpack.c.h.b16 %v2140_v19 }
 0x2b2   : > { %v2124_v47 = vpop.f32.mrf.mxu3  ;;  %2650 = vmatpush.bf16.msrb.mxu0 %v3476_v27  ;;  %v3443_v27 = vld [vmem:[%s4975_s7 + $0x30] sm:$0xf] }
 0x2b3   : > { %v2125_v58 = vadd.f32 %v2124_v47, %v2106_v48  ;;  %v3496_v47 = vor.u32 %v3630_v6, %v3493_v41  ;;  %v4642_v48 = vpack.c.b16 %v2145_v34, %v2145_v34  ;;  %v4644_v36 = vpack.c.b16 %v2146_v35, %v2146_v35  ;;  %v3618_v6 = vld [vmem:[%s4975_s7 + $0x34] sm:$0xf] }
 0x2b4   : > { %2689 = vmatpush.bf16.msrb.mxu2 %v3456_v15 }
 0x2b5   : > { %v2135_v7 = vmax.f32 %v2125_v58, 0.0  ;;  %2710 = vmatpush.bf16.msrb.mxu3 %v3496_v47  ;;  %v2154_v10 = vshll.u32 %v4642_v48, 16  ;;  %v2161_v2 = vshll.u32 %v4644_v36, 16  ;;  %v2152_v28 = vshrl.u32 %v4642_v48, 16  ;;  %v3619_v47 = vld [vmem:[%s4975_s7 + $0x34] sm:$0xf0] }
 0x2b6   : > { %2651 = vmatpush.bf16.msrb.mxu0 %v3468_v52  ;;  %v2159_v29 = vshrl.u32 %v4644_v36, 16  ;;  %v2280_v32 = vrot.slane %v4642_v48, 1  ;;  %v2281_v34 = vrot.slane %v4644_v36, 1  ;;  %v3444_v52 = vor.u32 %v3619_v47, %v3443_v27 }
 0x2b7   : > { %v2141_v42 = vpack.c.bf16 %v2135_v7, %v2134_v17  ;;  %v2156_v16 = vrot.slane %v2154_v10, 1  ;;  %v2163_v17 = vrot.slane %v2161_v2, 1 }
 0x2b9   : > { %v2168_v37 = vunpack.c.l.b16 %v2141_v42  ;;  %v2169_v40 = vunpack.c.h.b16 %v2141_v42  ;;  %v4689_v38 = vor.u32 %v2156_v16, %v2152_v28  ;;  %v4691_v39 = vor.u32 %v2163_v17, %v2159_v29  ;;  %2711 = vmatpush.bf16.msrb.mxu3 %v3488_v61 }
 0x2ba   : > { %2652 = vmatpush.bf16.msrb.mxu0 %v3460_v3 }
 0x2bb   : > { %v4655_v58 = vpack.c.b16 %v2168_v37, %v2168_v37  ;;  %v4663_v63 = vpack.c.b16 %v2169_v40, %v2169_v40  ;;  %v3445_v40 = vld [vmem:[%s4975_s7 + $0x38] sm:$0xf0]  ;;  %v2294_v2 = vsel %vm4705_vm13, %v4689_v38, %v2280_v32  ;;  %v2295_v3 = vsel %vm4705_vm13, %v4691_v39, %v2281_v34  ;;  %v3612_v34 = vld [vmem:[%s4975_s7 + $0x4] sm:$0xf] }
 0x2bd   : > { %v2175_v7 = vshrl.u32 %v4655_v58, 16  ;;  %v2178_v8 = vshll.u32 %v4655_v58, 16  ;;  %v2183_v54 = vshrl.u32 %v4663_v63, 16  ;;  %v2186_v33 = vshll.u32 %v4663_v63, 16 }
 0x2be   : > { %2653 = vmatpush.bf16.msrb.mxu0 %v3452_v24  ;;  %v2284_v15 = vrot.slane %v4655_v58, 6 }
 0x2bf   : > { %v2177_v25 = vrot.slane %v2175_v7, 5  ;;  %v2180_v26 = vrot.slane %v2178_v8, 6  ;;  %v2185_v30 = vrot.slane %v2183_v54, 5  ;;  %v2188_v31 = vrot.slane %v2186_v33, 6  ;;  %v3614_v7 = vld [vmem:[%s4975_s7 + $0x14] sm:$0xf] }
 0x2c0   : > { %v3429_v8 = vld [vmem:[%s4975_s7 + $0x18] sm:$0xf0]  ;;  %v3484_v54 = vor.u32 %v3629_v5, %v3483_v1  ;;  %v3427_v33 = vld [vmem:[%s4975_s7 + $0x10] sm:$0xf] }
 0x2c1   : > { %v4710_v44 = vor.u32 %v2180_v26, %v2177_v25  ;;  %v4718_v12 = vor.u32 %v2188_v31, %v2185_v30 }
 0x2c2   : > { %2654 = vmatpush.bf16.msrb.mxu0 %v3444_v52  ;;  %2675 = vmatpush.bf16.msrb.mxu1 %v3484_v54 }
 0x2c3   : > { %v2298_v16 = vsel %vm847_vm7, %v2294_v2, %v4710_v44  ;;  %v2302_v17 = vsel %vm847_vm7, %v2295_v3, %v4718_v12 }
 0x2e2   : > { %v2070_v45 = vpop.f32.mrf.mxu0 }
 0x2e3   : > { %v2071_v9 = vadd.f32 %v2070_v45, %v4543_v46  ;;  %v3448_v45 = vor.u32 %v3618_v6, %v3445_v40  ;;  %v3419_v6 = vld [vmem:[%s4975_s7] sm:$0xf]  ;;  %v3613_v40 = vld [vmem:[%s4975_s7 + $0x4] sm:$0xf0] }
 0x2e4   : > { %v3420_v57 = vor.u32 %v3613_v40, %v3419_v6  ;;  %v3656_v6 = vld [vmem:[%s4977_s9 + $0x20] sm:$0xff] }
 0x2e5   : > { %2690 = vmatpush.bf16.msrb.mxu2 %v3448_v45 }
 0x2e8   : > { %v2108_v49 = vpop.f32.mrf.mxu2 }
 0x2e9   : > { %v2109_v13 = vadd.f32 %v2108_v49, %v4541_v21  ;;  %2691 = vmatpush.bf16.msrb.mxu2 %v3440_v62 }
 0x2ea   : > { %v2072_v42 = vpop.f32.mrf.mxu0 }
 0x2eb   : > { %v2073_v22 = vadd.f32 %v2072_v42, %v4543_v46  ;;  %v2285_v46 = vrot.slane %v4663_v63, 6  ;;  %v3432_v42 = vor.u32 %v3614_v7, %v3429_v8 }
 0x2ec   : > { %v2089_v60 = vpop.f32.mrf.mxu1 }
 0x2ed   : > { %v2090_v14 = vadd.f32 %v2089_v60, %v2071_v9  ;;  %v3617_v60 = vld [vmem:[%s4975_s7 + $0x24] sm:$0xf0]  ;;  %2692 = vmatpush.bf16.msrb.mxu2 %v3432_v42 }
 0x2ef   : > { %v2136_v35 = vmax.f32 %v2090_v14, 0.0 }
 0x2f0   : > { %v2110_v20 = vpop.f32.mrf.mxu2 }
 0x2f1   : > { %v2111_v51 = vadd.f32 %v2110_v20, %v4541_v21  ;;  %v3435_v21 = vld [vmem:[%s4975_s7 + $0x20] sm:$0xf] }
 0x2f2   : > { %v2127_v19 = vpop.f32.mrf.mxu3  ;;  %v3436_v4 = vor.u32 %v3617_v60, %v3435_v21 }
 0x2f3   : > { %v2128_v56 = vadd.f32 %v2127_v19, %v2109_v13  ;;  %v3615_v13 = vld [vmem:[%s4975_s7 + $0x14] sm:$0xf0] }
 0x2f4   : > { %v2091_v37 = vpop.f32.mrf.mxu1  ;;  %2655 = vmatpush.bf16.msrb.mxu0 %v3436_v4  ;;  %v3428_v29 = vor.u32 %v3615_v13, %v3427_v33  ;;  %v2173_v33 = vrot.slane %v4663_v63, 5  ;;  %v2172_v13 = vrot.slane %v4655_v58, 5 }
 0x2f5   : > { %v2137_v0 = vmax.f32 %v2128_v56, 0.0  ;;  %v2092_v23 = vadd.f32 %v2091_v37, %v2073_v22  ;;  %v2304_v37 = vsel %vm4773_vm14, %v2298_v16, %v2284_v15  ;;  %v2305_v22 = vsel %vm4773_vm14, %v2302_v17, %v2285_v46 }
 0x2f6   : > { %v2243_v15 = vsel %vm4705_vm13, %v4644_v36, %v4691_v39  ;;  %v2242_v17 = vsel %vm4705_vm13, %v4642_v48, %v4689_v38 }
 0x2f7   : > { %v2142_v43 = vpack.c.bf16 %v2137_v0, %v2136_v35  ;;  %v2138_v14 = vmax.f32 %v2092_v23, 0.0  ;;  %v3421_v35 = vld [vmem:[%s4975_s7 + $0x8] sm:$0xf0]  ;;  %v2246_v63 = vsel %vm847_vm7, %v2242_v17, %v2172_v13 }
 0x2f8   : > { %2656 = vmatpush.bf16.msrb.mxu0 %v3428_v29  ;;  %v3424_v46 = vor.u32 %v3612_v34, %v3421_v35  ;;  %v3658_v34 = vld [vmem:[%s4977_s9 + $0x30] sm:$0xff] }
 0x2f9   : > { %v2193_v49 = vunpack.c.l.b16 %v2142_v43  ;;  %v2194_v59 = vunpack.c.h.b16 %v2142_v43 }
 0x2fa   : > { %v2129_v10 = vpop.f32.mrf.mxu3  ;;  %2693 = vmatpush.bf16.msrb.mxu2 %v3424_v46  ;;  %v2722_v46 = vld [vmem:[%s4976_s8] sm:$0x3] }
 0x2fb   : > { %v4754_v9 = vpack.c.b16 %v2193_v49, %v2193_v49  ;;  %v4756_v11 = vpack.c.b16 %v2194_v59, %v2194_v59  ;;  %v2130_v18 = vadd.f32 %v2129_v10, %v2111_v51  ;;  %v4898_v5 = vperm.slane %v2722_v46, 1 }
 0x2fc   : > { %2657 = vmatpush.bf16.msrb.mxu0 %v3420_v57 }
 0x2fd   : > { %v2204_v19 = vshll.u32 %v4756_v11, 16  ;;  %v2211_v24 = vshrl.u32 %v4756_v11, 16  ;;  %v2139_v25 = vmax.f32 %v2130_v18, 0.0  ;;  %v2200_v56 = vshll.u32 %v4754_v9, 16 }
 0x2fe   : > { %v2207_v28 = vshrl.u32 %v4754_v9, 16  ;;  %v2288_v50 = vrot.slane %v4754_v9, 3  ;;  %v2289_v51 = vrot.slane %v4756_v11, 3  ;;  %v2197_v16 = vrot.slane %v4754_v9, 2 }
 0x2ff   : > { %v4779_v30 = vrot.slane %v2204_v19, 3  ;;  %v2213_v31 = vrot.slane %v2211_v24, 2  ;;  %v2143_v32 = vpack.c.bf16 %v2139_v25, %v2138_v14  ;;  %v2202_v20 = vrot.slane %v2200_v56, 3 }
 0x300   : > { %v2209_v0 = vrot.slane %v2207_v28, 2  ;;  %v2198_v14 = vrot.slane %v4756_v11, 2  ;;  %v2250_v19 = vsel %vm847_vm7, %v2243_v15, %v2173_v33  ;;  %v2254_v11 = vsel %vm4773_vm14, %v2246_v63, %v4710_v44  ;;  %v3660_v15 = vld [vmem:[%s4977_s9 + $0x40] sm:$0xff] }
 0x301   : > { %v2218_v27 = vunpack.c.l.b16 %v2143_v32  ;;  %v2219_v43 = vunpack.c.h.b16 %v2143_v32  ;;  %v2214_v45 = vor.u32 %v2213_v31, %v4779_v30  ;;  %v2255_v58 = vsel %vm4773_vm14, %v2250_v19, %v4718_v12  ;;  %v3659_v31 = vld [vmem:[%s4977_s9 + $0x38] sm:$0xff] }
 0x302   : > { %v2210_v47 = vor.u32 %v2209_v0, %v2202_v20  ;;  %v2262_v36 = vsel %vm865_vm10, %v2255_v58, %v2198_v14  ;;  %v2258_v39 = vsel %vm865_vm10, %v2254_v11, %v2197_v16 }
 0x303   : > { %v2220_v23 = vpack.c.b16 %v2218_v27, %v2218_v27  ;;  %v2221_v52 = vpack.c.b16 %v2219_v43, %v2219_v43  ;;  %v2310_v55 = vsel %vm865_vm10, %v2305_v22, %v2214_v45  ;;  %v2267_v48 = vsel %vm4802_vm4, %v2262_v36, %v4779_v30  ;;  %v3663_v36 = vld [vmem:[%s4979_s11 + $0x8] sm:$0xff] }
 0x304   : > { %v2307_v49 = vsel %vm865_vm10, %v2304_v37, %v2210_v47  ;;  %v2313_v59 = vsel %vm4802_vm4, %v2310_v55, %v2289_v51  ;;  %v2266_v38 = vsel %vm4802_vm4, %v2258_v39, %v2202_v20  ;;  %v3657_v37 = vld [vmem:[%s4977_s9 + $0x28] sm:$0xff] }
 0x305   : > { %v2312_v61 = vsel %vm4802_vm4, %v2307_v49, %v2288_v50  ;;  %3413 = vmatmul.msk.bf16.vlgmr.msra.gmra.mxu1 %vm2465_vm3, %v2313_v59  ;;  %3415 = vmatmul.msk.bf16.vlgmr.msra.gmra.mxu3 %vm2465_vm3, %v2313_v59  ;;  %v2232_v62 = vshrl.u32 %v2221_v52, 16  ;;  %v2225_v21 = vshrl.u32 %v2220_v23, 16  ;;  %v2235_v10 = vshll.u32 %v2221_v52, 16  ;;  %v3653_v59 = vld [vmem:[%s4977_s9 + $0x8] sm:$0xff] }
 0x306   : > { %2480 = vmatmul.bf16.vlgmr.msra.gmra.mxu0 %v2312_v61  ;;  %2516 = vmatmul.bf16.vlgmr.msra.gmra.mxu2 %v2312_v61  ;;  %v2228_v2 = vshll.u32 %v2220_v23, 16  ;;  %v2223_v41 = vrot.slane %v2221_v52, 7  ;;  %v2222_v12 = vrot.slane %v2220_v23, 7  ;;  %v2724_v49 = vperm.slane %v2722_v46, 0 }
 0x307   : > { %v2234_v60 = vrot.slane %v2232_v62, 7  ;;  %v2227_v1 = vrot.slane %v2225_v21, 7  ;;  %2927 = vmatpush.bf16.msra.mxu0 %v3659_v31  ;;  %2984 = vmatpush.bf16.msra.mxu2 %v3663_v36 }
 0x308   : > { %v2274_v44 = vsel %vm835_vm2, %v2214_v45, %v2223_v41  ;;  %v2270_v9 = vsel %vm835_vm2, %v2210_v47, %v2222_v12  ;;  %v3655_v45 = vld [vmem:[%s4977_s9 + $0x18] sm:$0xff] }
 0x309   : > { %v2237_v3 = vor.u32 %v2235_v10, %v2234_v60  ;;  %v2230_v4 = vor.u32 %v2228_v2, %v2227_v1  ;;  %v3652_v1 = vld [vmem:[%s4977_s9] sm:$0xff] }
 0x30b   : > { %v2320_v7 = vsel %vm835_vm2, %v2289_v51, %v2237_v3  ;;  %v2316_v8 = vsel %vm835_vm2, %v2288_v50, %v2230_v4  ;;  %v2279_v24 = vsel %vm4815_vm5, %v2274_v44, %v2237_v3  ;;  %v2278_v25 = vsel %vm4815_vm5, %v2270_v9, %v2230_v4  ;;  %2928 = vmatpush.bf16.msra.mxu0 %v3658_v34  ;;  %v3654_v50 = vld [vmem:[%s4977_s9 + $0x10] sm:$0xff] }
 0x30c   : > { %v2323_v18 = vsel %vm4815_vm5, %v2320_v7, %v2221_v52  ;;  %v2322_v54 = vsel %vm4815_vm5, %v2316_v8, %v2220_v23  ;;  %v3661_v23 = vld [vmem:[%s4977_s9 + $0x48] sm:$0xff] }
 0x30d   : > { %2946 = vmatpush.bf16.msra.mxu1 %v3661_v23 }
 0x30f   : > { %2929 = vmatpush.bf16.msra.mxu0 %v3657_v37 }
 0x311   : > { %2947 = vmatpush.bf16.msra.mxu1 %v3660_v15 }
 0x313   : > { %2930 = vmatpush.bf16.msra.mxu0 %v3656_v6 }
 0x315   : > { %3414 = vmatmul.msk.bf16.gmra.mxu1 %vm2465_vm3, %v2323_v18  ;;  %3416 = vmatmul.msk.bf16.gmra.mxu3 %vm2465_vm3, %v2323_v18 }
 0x316   : > { %2485 = vmatmul.bf16.gmra.mxu0 %v2322_v54  ;;  %2521 = vmatmul.bf16.gmra.mxu2 %v2322_v54 }
 0x317   : > { %2931 = vmatpush.bf16.msra.mxu0 %v3655_v45 }
 0x31b   : > { %2932 = vmatpush.bf16.msra.mxu0 %v3654_v50 }
 0x31f   : > { %2933 = vmatpush.bf16.msra.mxu0 %v3653_v59 }
 0x323   : > { %2934 = vmatpush.bf16.msra.mxu0 %v3652_v1 }
 0x325   : > { %3497 = vmatmul.msk.bf16.vlgmr.msrb.gmra.mxu1 %vm2465_vm3, %v2267_v48  ;;  %3499 = vmatmul.msk.bf16.vlgmr.msrb.gmra.mxu3 %vm2465_vm3, %v2267_v48 }
 0x326   : > { %2658 = vmatmul.bf16.vlgmr.msrb.gmra.mxu0 %v2266_v38  ;;  %2694 = vmatmul.bf16.vlgmr.msrb.gmra.mxu2 %v2266_v38 }
 0x335   : > { %3498 = vmatmul.msk.bf16.gmra.mxu1 %vm2465_vm3, %v2279_v24  ;;  %3500 = vmatmul.msk.bf16.gmra.mxu3 %vm2465_vm3, %v2279_v24  ;;  %v3662_v24 = vld [vmem:[%s4979_s11] sm:$0xff] }
 0x336   : > { %2663 = vmatmul.bf16.gmra.mxu0 %v2278_v25  ;;  %2699 = vmatmul.bf16.gmra.mxu2 %v2278_v25 }
 0x337   : > { %2985 = vmatpush.bf16.msra.mxu2 %v3662_v24 }
 0x382   : > { %v2499_v26 = vpop.f32.mrf.mxu1 }
 0x383   : > { %v2481_v42 = vpop.f32.mrf.mxu0 }
 0x384   : > { %v2500_v52 = vadd.f32 %v2499_v26, %v2481_v42 }
 0x388   : > { %v2535_v56 = vpop.f32.mrf.mxu3 }
 0x389   : > { %v2517_v28 = vpop.f32.mrf.mxu2 }
 0x38a   : > { %v2501_v29 = vpop.f32.mrf.mxu1  ;;  %v2536_v62 = vadd.f32 %v2535_v56, %v2517_v28 }
 0x38b   : > { %v2483_v30 = vpop.f32.mrf.mxu0 }
 0x38c   : > { %v2502_v2 = vadd.f32 %v2501_v29, %v2483_v30 }
 0x390   : > { %v2537_v32 = vpop.f32.mrf.mxu3 }
 0x391   : > { %v2519_v35 = vpop.f32.mrf.mxu2 }
 0x392   : > { %v2504_v20 = vpop.f32.mrf.mxu1  ;;  %v2538_v58 = vadd.f32 %v2537_v32, %v2519_v35 }
 0x393   : > { %v2486_v0 = vpop.f32.mrf.mxu0 }
 0x394   : > { %v2505_v12 = vadd.f32 %v2504_v20, %v2486_v0 }
 0x398   : > { %v4873_v22 = vpop.f32.mrf.mxu3 }
 0x399   : > { %v4878_v40 = vpop.f32.mrf.mxu2 }
 0x39a   : > { %v2506_v27 = vpop.f32.mrf.mxu1  ;;  %v2541_v35 = vadd.f32 %v4873_v22, %v4878_v40 }
 0x39b   : > { %v2488_v43 = vpop.f32.mrf.mxu0 }
 0x3a0   : > { %v2542_v47 = vpop.f32.mrf.mxu3 }
 0x3a1   : > { %v2524_v51 = vpop.f32.mrf.mxu2 }
 0x3a2   : > { %v2677_v53 = vpop.f32.mrf.mxu1 }
 0x3a3   : > { %v2659_v55 = vpop.f32.mrf.mxu0 }
 0x3a4   : > { %v2660_v57 = vadd.f32 %v2659_v55, %v2500_v52 }
 0x3a6   : > { %v2678_v61 = vadd.f32 %v2677_v53, %v2660_v57 }
 0x3a8   : > { %v2728_v21 = vadd.f32 %v2724_v49, %v2678_v61  ;;  %v2713_v60 = vpop.f32.mrf.mxu3 }
 0x3a9   : > { %v2695_v10 = vpop.f32.mrf.mxu2 }
 0x3aa   : > { %v2734_v3 = vmax.f32 %v2728_v21, 0.0  ;;  %v2696_v4 = vadd.f32 %v2695_v10, %v2536_v62  ;;  %v2679_v7 = vpop.f32.mrf.mxu1 }
 0x3ab   : > { %v2661_v8 = vpop.f32.mrf.mxu0 }
 0x3ac   : > { %v2742_v18 = vrot.slane %v2734_v3, 1  ;;  %v2714_v54 = vadd.f32 %v2713_v60, %v2696_v4  ;;  %v2662_v33 = vadd.f32 %v2661_v8, %v2502_v2  ;;  %v2748_v39 = vrot.slane %v2734_v3, 2 }
 0x3ae   : > { %v2729_v13 = vadd.f32 %v4898_v5, %v2714_v54  ;;  %v2680_v14 = vadd.f32 %v2679_v7, %v2662_v33  ;;  %v2746_v16 = vadd.f32 %v2742_v18, %v2734_v3 }
 0x3b0   : > { %v2735_v17 = vmax.f32 %v2729_v13, 0.0  ;;  %v2730_v19 = vadd.f32 %v2724_v49, %v2680_v14  ;;  %v2715_v63 = vpop.f32.mrf.mxu3  ;;  %v2752_v25 = vadd.f32 %v2748_v39, %v2746_v16 }
 0x3b1   : > { %v2697_v11 = vpop.f32.mrf.mxu2 }
 0x3b2   : > { %v2743_v48 = vrot.slane %v2735_v17, 1  ;;  %v2736_v38 = vmax.f32 %v2730_v19, 0.0  ;;  %v2682_v41 = vpop.f32.mrf.mxu1  ;;  %v2698_v44 = vadd.f32 %v2697_v11, %v2538_v58  ;;  %v2790_v20 = vrot.slane %v2752_v25, 2 }
 0x3b3   : > { %v2664_v9 = vpop.f32.mrf.mxu0  ;;  %v2749_v0 = vrot.slane %v2735_v17, 2 }
 0x3b4   : > { %v2756_v26 = vrot.slane %v2736_v38, 2  ;;  %v2762_v42 = vrot.slane %v2736_v38, 1  ;;  %v2716_v56 = vadd.f32 %v2715_v63, %v2698_v44  ;;  %v2665_v28 = vadd.f32 %v2664_v9, %v2505_v12 }
 0x3b5   : > { %v2747_v29 = vadd.f32 %v2743_v48, %v2735_v17  ;;  %v2822_v57 = vsel %vm835_vm2, %v2752_v25, %v2790_v20 }
 0x3b6   : > { %v2760_v30 = vadd.f32 %v2756_v26, %v2746_v16  ;;  %v2766_v31 = vadd.f32 %v2762_v42, %v2736_v38  ;;  %v2731_v32 = vadd.f32 %v4898_v5, %v2716_v56  ;;  %v2683_v34 = vadd.f32 %v2682_v41, %v2665_v28 }
 0x3b7   : > { %v2753_v47 = vadd.f32 %v2749_v0, %v2747_v29 }
 0x3b8   : > { %v2718_v37 = vpop.f32.mrf.mxu3  ;;  %v2768_v6 = vadd.f32 %v2766_v31, %v2756_v26  ;;  %v2737_v27 = vmax.f32 %v2731_v32, 0.0  ;;  %v2732_v43 = vadd.f32 %v2724_v49, %v2683_v34  ;;  %v2796_v50 = vrot.slane %v2760_v30, 4 }
 0x3b9   : > { %v2700_v45 = vpop.f32.mrf.mxu2  ;;  %v2791_v21 = vrot.slane %v2753_v47, 2 }
 0x3ba   : > { %v2701_v51 = vadd.f32 %v2700_v45, %v2541_v35  ;;  %v2684_v46 = vpop.f32.mrf.mxu1  ;;  %v2757_v23 = vrot.slane %v2737_v27, 2  ;;  %v2763_v52 = vrot.slane %v2737_v27, 1  ;;  %v2738_v53 = vmax.f32 %v2732_v43, 0.0  ;;  %v3708_v35 = vld [vmem:[%s4978_s10] ss:$0 sm:$0xff] }
 0x3bb   : > { %v2666_v55 = vpop.f32.mrf.mxu0  ;;  %v2802_v61 = vrot.slane %v2768_v6, 6  ;;  %v2824_v60 = vsel %vm841_vm6, %v2822_v57, %v2796_v50  ;;  %v2823_v14 = vsel %vm835_vm2, %v2753_v47, %v2791_v21  ;;  %v3709_v50 = vld [vmem:[%s4980_s12] ss:$0 sm:$0xff] }
 0x3bc   : > { %v2719_v59 = vadd.f32 %v2718_v37, %v2701_v51  ;;  %v2761_v22 = vadd.f32 %v2757_v23, %v2747_v29  ;;  %v2767_v40 = vadd.f32 %v2763_v52, %v2737_v27  ;;  %v2772_v62 = vrot.slane %v2738_v53, 1 }
 0x3bd   : > { %v2778_v49 = vrot.slane %v2738_v53, 2  ;;  %v2826_v33 = vsel %vm847_vm7, %v2824_v60, %v2802_v61 }
 0x3be   : > { %v2733_v1 = vadd.f32 %v4898_v5, %v2719_v59  ;;  %v2769_v10 = vadd.f32 %v2767_v40, %v2757_v23  ;;  %v2797_v2 = vrot.slane %v2761_v22, 4  ;;  %v2776_v3 = vadd.f32 %v2772_v62, %v2736_v38 }
 0x3bf   : > { %v2784_v4 = vadd.f32 %v2772_v62, %v2738_v53  ;;  %v2828_v5 = vsel %vm853_vm8, %v2826_v33, %v2768_v6 }
 0x3c0   : > { %v2739_v7 = vmax.f32 %v2733_v1, 0.0  ;;  %v2720_v8 = vpop.f32.mrf.mxu3  ;;  %v2782_v18 = vadd.f32 %v2778_v49, %v2776_v3  ;;  %v2803_v15 = vrot.slane %v2769_v10, 6  ;;  %v2825_v17 = vsel %vm841_vm6, %v2823_v14, %v2797_v2 }
 0x3c1   : > { %v2786_v54 = vadd.f32 %v2784_v4, %v2778_v49  ;;  %v2702_v13 = vpop.f32.mrf.mxu2 }
 0x3c2   : > { %v2773_v16 = vrot.slane %v2739_v7, 1  ;;  %v2808_v19 = vrot.slane %v2782_v18, 2  ;;  %v2779_v11 = vrot.slane %v2739_v7, 2  ;;  %v2827_v12 = vsel %vm847_vm7, %v2825_v17, %v2803_v15 }
 0x3c3   : > { %v2814_v63 = vrot.slane %v2786_v54, 4  ;;  %v2818_v39 = vrot.slane %v2786_v54, 6  ;;  %v2829_v42 = vsel %vm853_vm8, %v2827_v12, %v2769_v10 }
 0x3c4   : > { %v2777_v58 = vadd.f32 %v2773_v16, %v2737_v27  ;;  %v2785_v36 = vadd.f32 %v2773_v16, %v2739_v7  ;;  %v2830_v48 = vsel %vm859_vm9, %v2828_v5, %v2808_v19 }
 0x3c5   : > { %v2832_v44 = vsel %vm865_vm10, %v2830_v48, %v2814_v63 }
 0x3c6   : > { %v2783_v38 = vadd.f32 %v2779_v11, %v2777_v58  ;;  %v2787_v41 = vadd.f32 %v2785_v36, %v2779_v11  ;;  %v2834_v9 = vsel %vm521_vm1, %v2832_v44, %v2818_v39 }
 0x3c7   : > { %v2836_v26 = vmul.f32 0.33333334, %v2834_v9 }
 0x3c8   : > { %v2809_v24 = vrot.slane %v2783_v38, 2  ;;  %v2815_v25 = vrot.slane %v2787_v41, 4  ;;  %v2819_v56 = vrot.slane %v2787_v41, 6 }
 0x3c9   : > { %v2838_v29 = vpack.c.bf16 %v2836_v26, %v2836_v26 }
 0x3ca   : > { %v2831_v28 = vsel %vm859_vm9, %v2829_v42, %v2809_v24 }
 0x3cb   : > { %v2833_v30 = vsel %vm865_vm10, %v2831_v28, %v2815_v25  ;;  %2935 = vmatmul.bf16.vlgmr.msra.gmra.mxu0 %v2838_v29 }
 0x3cc   : > { %v2835_v31 = vsel %vm521_vm1, %v2833_v30, %v2819_v56 }
 0x3cd   : > { %v2837_v32 = vmul.f32 0.33333334, %v2835_v31 }
 0x3cf   : > { %v2839_v34 = vpack.c.bf16 %v2837_v32, %v2837_v32 }
 0x3d1   : > { %3541 = vmatmul.msk.bf16.vlgmr.msra.gmra.mxu1 %vm2465_vm3, %v2839_v34 }
 0x448   : > { %v2936_v20 = vpop.f32.mrf.mxu0 }
 0x449   : > { %v2937_v0 = vadd.f32 %v3708_v35, %v2936_v20 }
 0x44e   : > { %v2949_v37 = vpop.f32.mrf.mxu1 }
 0x44f   : > { %v2950_v6 = vadd.f32 %v2949_v37, %v2937_v0 }
 0x450   : > { %v2938_v43 = vpop.f32.mrf.mxu0 }
 0x451   : > { %v2953_v27 = vmax.f32 %v2950_v6, 0.0 }
 0x453   : > { %v2954_v45 = vpack.c.bf16 %v2953_v27, %v2953_v27 }
 0x455   : > { %3550 = vmatmul.msk.bf16.vlgmr.msra.gmra.mxu2 %vm2465_vm3, %v2954_v45 }
 0x456   : > { %v2951_v47 = vpop.f32.mrf.mxu1 }
 0x4d8   : > { %v2987_v51 = vpop.f32.mrf.mxu2 }
 0x4d9   : > { %v2988_v46 = vadd.f32 %v3709_v50, %v2987_v51 }
 0x4db   : > { %2991 = vst [vmem:[%s436_s1] sm:$0xff] %v2988_v46 }
 0x4dc   : > { %3737 = shalt.err (!%p3734_p3)
}
 0x4dd   : > { %3665 = dma.vmem_to_hbm [thread:$0]  (%p3881_p5), %s3006_s29, 128, %s3008_s15, %s2993_s16  }
 0x4e0   : > { %v2989_v23 = vpop.f32.mrf.mxu2 }
 0x4e1 PF: > { %p3671_p4 = scmp.ge.s32.totalorder %s3772_s28, 2  ;;  %s3019_s21 = sand.u32 1, %s3760_s25  }
 0x4e2   : > { %s3020_s2 = scalar_lea.sflag [#allocation4], %s3019_s21 }
 0x4e3   : > { %p3668_p7 = pnand %p3671_p4, %p3885_p6 }
 0x4e5   : > { %p3669_p8 = pneg %p3668_p7 }
 0x4e7   : > { %3755 = dma.done.wait (%p3669_p8), %s3020_s2, 128  }
 0x4e8   : > { %3757 = vsyncadd (%p3669_p8), %s3020_s2, 4294967168  ;;  %p23_p9 = scmp.ge.s32.totalorder %s3869_s14, 4   ;;  %s5002_s25 = smov %s3764_s26 }
 0x4e9   : > { %s5003_s26 = smov %s3768_s27  ;;  %s5004_s27 = smov %s3879_s17 }
 0x4ea   : > { %s5005_s28 = smov %s3869_s14  ;;  %25 = sbr.rel (!%p23_p9) target bundleno = 9 (0x9), region = 131 }
 0x4ef   :  { %3026 = vsyncpa [#allocation4], 1 }
 0x4f0   :  { %3028 = vsyncpa [#allocation4 + $0x1], 1 }

</bundles_post_ra>
